<compile_context>
chip_gen: v5e
topology: v5e:2x2
jax: 0.10.0
libtpu: 0.0.40
codegen_flags: <defaults>
</compile_context>

<pallas_src>
import functools

import jax
import jax.numpy as jnp
from jax.experimental import pallas as pl
from jax.experimental.pallas import tpu as pltpu

LRELU_SLOPE = 0.2
BN_EPS = 1e-3   # module spec: BatchNorm3d(eps=0.001)


def _round_up(x, m):
    return (x + m - 1) // m * m


def _cdiv(a, b):
    return -(-a // b)


# --------------------------------------------------------------------------------------
# Kernel 1: fused (M,K)@(K,N) + bias + LeakyReLU  (the k=2/s=2 transposed conv with
#           stride==kernel is a pure channel matmul to 8*Cout "tap" columns).
# --------------------------------------------------------------------------------------
def _mm_bias_lrelu_kernel(x_ref, w_ref, b_ref, o_ref, *, slope):
    y = jnp.dot(x_ref[...], w_ref[...], preferred_element_type=jnp.float32)
    y = y + b_ref[...]
    y = jnp.maximum(y, slope * y)          # LeakyReLU (slope < 1)
    o_ref[...] = y.astype(o_ref.dtype)


def matmul_bias_lrelu(x, w, b, *, out_dtype=jnp.bfloat16, slope=LRELU_SLOPE, target_tm=1024):
    """x:(M,K) @ w:(K,N) + b, fused LeakyReLU.  bf16 MXU operands, f32 accumulation.
    No forced multi-block split: on single-TC v5e/v6e an extra grid step is pure overhead;
    large M still tiles (and the axis is 'parallel' so v7x can shard it)."""
    M, K = x.shape
    nc = w.shape[1]
    kp = _round_up(max(K, 1), 8)
    tm = _round_up(min(M, target_tm), 8)
    grid_m = _cdiv(M, tm)
    mp = grid_m * tm

    xb = jnp.pad(x.astype(jnp.bfloat16), ((0, mp - M), (0, kp - K)))
    wb = jnp.pad(w.astype(jnp.bfloat16), ((0, kp - K), (0, 0)))
    bb = b.reshape(1, nc).astype(jnp.float32)

    out = pl.pallas_call(
        functools.partial(_mm_bias_lrelu_kernel, slope=slope),
        out_shape=jax.ShapeDtypeStruct((mp, nc), out_dtype),
        grid_spec=pltpu.PrefetchScalarGridSpec(
            num_scalar_prefetch=0,
            grid=(grid_m,),
            in_specs=[
                pl.BlockSpec((tm, kp), lambda i: (i, 0)),
                pl.BlockSpec((kp, nc), lambda i: (0, 0)),
                pl.BlockSpec((1, nc), lambda i: (0, 0)),
            ],
            out_specs=pl.BlockSpec((tm, nc), lambda i: (i, 0)),
        ),
        compiler_params=pltpu.CompilerParams(dimension_semantics=("parallel",)),
    )(xb, wb, bb)
    return out[:M] if mp != M else out


# --------------------------------------------------------------------------------------
# Kernel 2: 3x3x3 conv (stride 1, pad 1) + bias + LeakyReLU (+ optional fused BatchNorm
#           partial statistics), one sample per program.
#
#   Input slab per sample:  rows = (depth page, padded h), lanes = (padded w, ci), bf16.
#   Weights: block-Toeplitz over (w_in, ci) x (w_out, co) so the kw taps live inside the
#   contraction dim -> 9 dots per sample (kd x kh), K = (wc+2)*Cip, N = (wc+2)*Co.
#   kh shift is applied on the f32 accumulators.  Output rows = (d, padded h), lanes =
#   (padded w, co); the garbage h/w positions are dropped by the caller.
# --------------------------------------------------------------------------------------
def _conv3x3x3_kernel(x_ref, w_ref, b_ref, *out_refs, hs, l_rows, hc, slope, with_stats):
    lx = l_rows + 16                                     # a few slack rows (aligned window)
    acc = [None, None, None]
    for kd in range(3):
        lhs = x_ref[0, kd * hs:kd * hs + lx, :]          # aligned bf16 window (hs % 16 == 0)
        for kh in range(3):
            r = jnp.dot(lhs, w_ref[kd, kh], preferred_element_type=jnp.float32)
            acc[kh] = r if acc[kh] is None else acc[kh] + r
    # kh shift on the 32-bit accumulators (cheap, well-supported sublane slices).
    y = acc[0][0:l_rows] + acc[1][1:1 + l_rows] + acc[2][2:2 + l_rows]
    y = y + b_ref[...]
    y = jnp.maximum(y, slope * y)                        # LeakyReLU
    out_refs[0][0] = y.astype(out_refs[0].dtype)
    if with_stats:
        # BatchNorm partials fused into the epilogue: mask garbage h rows, reduce over rows.
        h_idx = jax.lax.broadcasted_iota(jnp.int32, (l_rows, 1), 0) % hs
        ym = jnp.where(h_idx < hc, y, 0.0)
        s1 = jnp.sum(ym, axis=0, keepdims=True)
        s2 = jnp.sum(ym * ym, axis=0, keepdims=True)
        out_refs[1][0] = jnp.concatenate([s1, s2], axis=0)


def conv3d_3x3_lrelu(x, w, b, *, with_stats=False, out_dtype=jnp.bfloat16):
    """x: (n, dc, hc, wc, c) NDHWC.  w: (co, cin, 3, 3, 3) PyTorch Conv3d layout.  b: (co,).
    Returns y (n, dc*hs, (wc+2)*co) [+ stats (n, 2, (wc+2)*co)]; valid region is
    rows (d, h<hc) and lane blocks w<wc.
    TODO(synk): the block-Toeplitz weight grows as ((wc+2)*C)^2; for large W*C switch to
    W-tiling + channel-axis K folding and a rolling depth buffer."""
    n, dc, hc, wc, c = x.shape
    co, cin = w.shape[0], w.shape[1]
    assert cin == c, (cin, c)
    cip = _round_up(c, 8)
    wp = wc + 2
    hs = _round_up(hc + 2, 16)           # padded rows per depth page (bf16-tile aligned)
    l_rows = dc * hs
    r_rows = (dc + 3) * hs               # 1 leading + 2 trailing zero depth pages
    lane_in = wp * cip
    lane_out = wp * co

    # One zero-pad pass: D(1,2) H(1, hs-hc-1) W(1,1) C(0, cip-c); rows=(page,h), lanes=(w,ci).
    xp = jnp.pad(x.astype(jnp.bfloat16),
                 ((0, 0), (1, 2), (1, hs - hc - 1), (1, 1), (0, cip - c)))
    slab = xp.reshape(n, r_rows, lane_in)

    # Block-Toeplitz weights: Wbig[kd,kh][(w_in*cip+ci),(w_out*co+oc)] = W[oc,ci,kd,kh,w_in-w_out]
    wt = jnp.transpose(w, (2, 3, 4, 1, 0)).astype(jnp.float32)          # (3,3,3,cin,co)
    wt = jnp.pad(wt, ((0, 0), (0, 0), (0, 0), (0, cip - cin), (0, 0)))  # (3,3,3,cip,co)
    w_in = jnp.arange(wp)[:, None]
    w_out = jnp.arange(wp)[None, :]
    kw = w_in - w_out
    mask = jnp.where((kw >= 0) & (kw <= 2), 1.0, 0.0)
    wbig = mask[None, None, :, :, None, None] * wt[:, :, jnp.clip(kw, 0, 2), :, :]
    wbig = jnp.transpose(wbig, (0, 1, 2, 4, 3, 5)).reshape(3, 3, lane_in, lane_out)
    wbig = wbig.astype(jnp.bfloat16)

    btile = jnp.tile(b.astype(jnp.float32), wp).reshape(1, lane_out)

    out_shape = [jax.ShapeDtypeStruct((n, l_rows, lane_out), out_dtype)]
    out_specs = [pl.BlockSpec((1, l_rows, lane_out), lambda i: (i, 0, 0))]
    if with_stats:
        out_shape.append(jax.ShapeDtypeStruct((n, 2, lane_out), jnp.float32))
        out_specs.append(pl.BlockSpec((1, 2, lane_out), lambda i: (i, 0, 0)))

    return pl.pallas_call(
        functools.partial(_conv3x3x3_kernel, hs=hs, l_rows=l_rows, hc=hc,
                          slope=LRELU_SLOPE, with_stats=with_stats),
        out_shape=tuple(out_shape) if with_stats else out_shape[0],
        grid_spec=pltpu.PrefetchScalarGridSpec(
            num_scalar_prefetch=0,
            grid=(n,),
            in_specs=[
                pl.BlockSpec((1, r_rows, lane_in), lambda i: (i, 0, 0)),
                pl.BlockSpec((3, 3, lane_in, lane_out), lambda i: (0, 0, 0, 0)),
                pl.BlockSpec((1, lane_out), lambda i: (0, 0)),
            ],
            out_specs=tuple(out_specs) if with_stats else out_specs[0],
        ),
        compiler_params=pltpu.CompilerParams(
            dimension_semantics=("parallel",),
            vmem_limit_bytes=32 << 20),      # explicit budget; blocks here are << this
    )(slab, wbig, btile)


# --------------------------------------------------------------------------------------
# Kernel 3: fused (double-)BatchNorm affine, lane-dense full-width stores (no in-kernel
#           crop; the caller's final transpose performs the valid-region extraction).
# --------------------------------------------------------------------------------------
def _affine_kernel(x_ref, s_ref, t_ref, o_ref):
    o_ref[...] = x_ref[...].astype(jnp.float32) * s_ref[...] + t_ref[...]


def bn_affine(y, scale, shift, *, wp):
    n, l_rows, lane = y.shape
    srow = jnp.tile(scale.astype(jnp.float32), wp).reshape(1, 1, lane)
    trow = jnp.tile(shift.astype(jnp.float32), wp).reshape(1, 1, lane)
    return pl.pallas_call(
        _affine_kernel,
        out_shape=jax.ShapeDtypeStruct((n, l_rows, lane), jnp.float32),
        grid_spec=pltpu.PrefetchScalarGridSpec(
            num_scalar_prefetch=0,
            grid=(n,),
            in_specs=[
                pl.BlockSpec((1, l_rows, lane), lambda i: (i, 0, 0)),
                pl.BlockSpec((1, 1, lane), lambda i: (0, 0, 0)),
                pl.BlockSpec((1, 1, lane), lambda i: (0, 0, 0)),
            ],
            out_specs=pl.BlockSpec((1, l_rows, lane), lambda i: (i, 0, 0)),
        ),
        compiler_params=pltpu.CompilerParams(dimension_semantics=("parallel",)),
    )(y, srow, trow)


# --------------------------------------------------------------------------------------
# Layer glue (XLA ops between Pallas calls are zero-pads / slices / metadata reshapes /
# the final transpose, each fusing into a single copy pass).
# --------------------------------------------------------------------------------------
def _center_crop(t, dc, hc, wc):
    od = (t.shape[1] - dc) // 2
    oh = (t.shape[2] - hc) // 2
    ow = (t.shape[3] - wc) // 2
    return t[:, od:od + dc, oh:oh + hc, ow:ow + wc, :]


def _valid(y, *, dc, hs, hc, wp, wc, c):
    """Extract the valid (d, h, w) region out of the conv kernel's padded layout."""
    n = y.shape[0]
    return y.reshape(n, dc, hs, wp, c)[:, :, :hc, :wc, :]


def upconv3d_k2s2_lrelu(x_ndhwc, w, b):
    """ConvTranspose3d(k=2, s=2) + LeakyReLU.  w: (Cin, Cout, 2, 2, 2) PyTorch layout."""
    n, d, h, w_, cin = x_ndhwc.shape
    cout = w.shape[1]
    w2 = jnp.transpose(w, (0, 2, 3, 4, 1)).reshape(cin, 8 * cout)   # (Cin, kd*kh*kw*Cout)
    b2 = jnp.tile(b, 8)
    xf = x_ndhwc.reshape(n * d * h * w_, cin)
    y = matmul_bias_lrelu(xf, w2, b2, out_dtype=jnp.bfloat16)       # (M, 8*Cout) bf16
    # TODO(synk): this tap interleave is an XLA transpose that materialises one copy of the
    # (small) upsampled tensor; scattering taps straight from the matmul out_spec would save it.
    y = y.reshape(n, d, h, w_, 2, 2, 2, cout)
    y = jnp.transpose(y, (0, 1, 4, 2, 5, 3, 6, 7)).reshape(n, 2 * d, 2 * h, 2 * w_, cout)
    return y


def init_params(key, in_chs, skip_chs, chs_1, chs_2):
    """Deterministic Xavier-style init (shapes match the PyTorch module)."""
    ks = jax.random.split(key, 6)

    def xavier(k, shape, fan_in, fan_out):
        std = (2.0 / (fan_in + fan_out)) ** 0.5
        return std * jax.random.normal(k, shape, jnp.float32)

    return {
        # ConvTranspose3d(in_chs, in_chs, 2, stride=2): weight (Cin, Cout, 2, 2, 2)
        "upconv_w": xavier(ks[0], (in_chs, in_chs, 2, 2, 2), in_chs * 8, in_chs * 8),
        "upconv_b": 0.01 * jax.random.normal(ks[1], (in_chs,), jnp.float32),
        # Conv3d(in_chs+skip_chs, chs_1, 3, pad=1): weight (Co, Ci, 3, 3, 3)
        "conv1_w": xavier(ks[2], (chs_1, in_chs + skip_chs, 3, 3, 3),
                          (in_chs + skip_chs) * 27, chs_1 * 27),
        "conv1_b": 0.01 * jax.random.normal(ks[3], (chs_1,), jnp.float32),
        # Conv3d(chs_1, chs_2, 3, pad=1)
        "conv2_w": xavier(ks[4], (chs_2, chs_1, 3, 3, 3), chs_1 * 27, chs_2 * 27),
        "conv2_b": 0.01 * jax.random.normal(ks[5], (chs_2,), jnp.float32),
        # Both BatchNorm3d layers use default gamma=1, beta=0 (training-mode batch stats).
    }


def upconv_block_forward(x_ncdhw, skip_ncdhw, params):
    n = x_ncdhw.shape[0]
    x = jnp.transpose(x_ncdhw, (0, 2, 3, 4, 1)).astype(jnp.bfloat16)
    skip = jnp.transpose(skip_ncdhw, (0, 2, 3, 4, 1)).astype(jnp.bfloat16)

    # upconv = ConvTranspose3d(k=2, s=2) + LeakyReLU(0.2)   (fused Pallas matmul)
    up = upconv3d_k2s2_lrelu(x, params["upconv_w"], params["upconv_b"])

    # TODO(synk): exact crop/concat convention of layers.crop_concat3d unknown; using
    # center-crop to the common spatial size and [upsampled, skip] channel order.
    dc = min(up.shape[1], skip.shape[1])
    hc = min(up.shape[2], skip.shape[2])
    wc = min(up.shape[3], skip.shape[3])
    cat = jnp.concatenate([_center_crop(up, dc, hc, wc),
                           _center_crop(skip, dc, hc, wc)], axis=-1)

    hs = _round_up(hc + 2, 16)
    wp = wc + 2
    c1 = params["conv1_w"].shape[0]
    c2 = params["conv2_w"].shape[0]

    # ConvBlock conv1: 3x3x3 + LeakyReLU (bf16 activation feeds conv2's pad directly)
    y1 = conv3d_3x3_lrelu(cat, params["conv1_w"], params["conv1_b"],
                          with_stats=False, out_dtype=jnp.bfloat16)
    y1v = _valid(y1, dc=dc, hs=hs, hc=hc, wp=wp, wc=wc, c=c1)

    # ConvBlock conv2: 3x3x3 + LeakyReLU with fused BatchNorm partial statistics
    y2, stats = conv3d_3x3_lrelu(y1v, params["conv2_w"], params["conv2_b"],
                                 with_stats=True, out_dtype=jnp.bfloat16)

    # Finalize the tiny per-sample partials and compose the two stacked training-mode
    # BatchNorm3d layers (gamma=1, beta=0) analytically into ONE per-channel affine.
    stv = stats.reshape(n, 2, wp, c2)[:, :, :wc, :]           # drop garbage w columns
    cnt = n * dc * hc * wc
    s1 = jnp.sum(stv[:, 0], axis=(0, 1))
    s2 = jnp.sum(stv[:, 1], axis=(0, 1))
    mean = s1 / cnt
    # TODO(synk): E[x^2]-E[x]^2 in f32 can cancel for large-mean activations; a two-pass /
    # Welford reduction would match PyTorch's numerics more closely.
    var = jnp.maximum(s2 / cnt - jnp.square(mean), 0.0)       # biased var (PyTorch normalization)
    inv1 = jax.lax.rsqrt(var + BN_EPS)
    inv2 = jax.lax.rsqrt(var / (var + BN_EPS) + BN_EPS)       # post-BN1 batch var = v/(v+eps)
    scale = inv1 * inv2
    shift = -mean * scale

    # Fused double-BN affine (lane-dense, unmasked stores), then one copy pass doing the
    # valid-region crop + NCDHW transpose.
    out = bn_affine(y2, scale, shift, wp=wp)
    out = _valid(out, dc=dc, hs=hs, hc=hc, wp=wp, wc=wc, c=c2)
    return jnp.transpose(out, (0, 4, 1, 2, 3))


if __name__ == "__main__":
    in_chs, skip_chs, chs_1, chs_2 = 4, 4, 8, 8
    N, D, H, W = 2, 4, 4, 4

    key = jax.random.PRNGKey(0)
    kx, ks, kp = jax.random.split(key, 3)
    x = jax.random.normal(kx, (N, in_chs, D, H, W), jnp.float32)                      # decoder feature
    x_skip = jax.random.normal(ks, (N, skip_chs, 2 * D, 2 * H, 2 * W), jnp.float32)   # encoder skip

    params = init_params(kp, in_chs, skip_chs, chs_1, chs_2)

    fwd = jax.jit(upconv_block_forward)
    out = jax.block_until_ready(fwd(x, x_skip, params))

    assert out.shape == (N, chs_2, 2 * D, 2 * H, 2 * W), out.shape
    assert bool(jnp.all(jnp.isfinite(out)))
    print("KERNEL_OK")
</pallas_src>

<mosaic_0001>
module attributes {stable_mosaic.version = 11 : i64} {
  func.func @_mm_bias_lrelu_kernel(%arg0: i32, %arg1: memref<128x8xbf16, #tpu.memory_space<vmem>>, %arg2: memref<8x32xbf16, #tpu.memory_space<vmem>>, %arg3: memref<1x32xf32, #tpu.memory_space<vmem>>, %arg4: memref<128x32xbf16, #tpu.memory_space<vmem>>) attributes {dimension_semantics = [#tpu.dimension_semantics<parallel>], iteration_bounds = array<i64: 1>, scalar_prefetch = 0 : i64, scratch_operands = 0 : i64, tpu.core_type = #tpu.core_type<tc>, window_params = [{transform_indices = @transform_0, window_bounds = array<i64: 128, 8>}, {pipeline_mode = #tpu.pipeline_mode<synchronous>, transform_indices = @transform_1, window_bounds = array<i64: 8, 32>}, {pipeline_mode = #tpu.pipeline_mode<synchronous>, transform_indices = @transform_2, window_bounds = array<i64: 1, 32>}, {transform_indices = @transform_3, window_bounds = array<i64: 128, 32>}]} {
    %c0 = arith.constant 0 : index
    %c0_0 = arith.constant 0 : index
    %0 = vector.load %arg1[%c0, %c0_0] : memref<128x8xbf16, #tpu.memory_space<vmem>>, vector<128x8xbf16>
    %c0_1 = arith.constant 0 : index
    %c0_2 = arith.constant 0 : index
    %1 = vector.load %arg2[%c0_1, %c0_2] : memref<8x32xbf16, #tpu.memory_space<vmem>>, vector<8x32xbf16>
    %cst = arith.constant dense<0.000000e+00> : vector<128x32xf32>
    %2 = tpu.matmul %0, %1, %cst {dimension_numbers = #tpu.dot_dimension_numbers<[1], [0], [0], [1], [0, 0, 1, 1], [], []>} : vector<128x8xbf16>, vector<8x32xbf16>, vector<128x32xf32> -> vector<128x32xf32>
    %c0_3 = arith.constant 0 : index
    %c0_4 = arith.constant 0 : index
    %3 = vector.load %arg3[%c0_3, %c0_4] : memref<1x32xf32, #tpu.memory_space<vmem>>, vector<1x32xf32>
    %4 = vector.broadcast %3 : vector<1x32xf32> to vector<128x32xf32>
    %5 = arith.addf %2, %4 : vector<128x32xf32>
    %cst_5 = arith.constant 2.000000e-01 : f32
    %6 = vector.broadcast %cst_5 : f32 to vector<128x32xf32>
    %7 = arith.mulf %6, %5 : vector<128x32xf32>
    %8 = arith.maximumf %5, %7 : vector<128x32xf32>
    %9 = arith.truncf %8 : vector<128x32xf32> to vector<128x32xbf16>
    %c0_6 = arith.constant 0 : index
    %c0_7 = arith.constant 0 : index
    %10 = vector.load %arg4[%c0_6, %c0_7] : memref<128x32xbf16, #tpu.memory_space<vmem>>, vector<128x32xbf16>
    tpu.vector_store %arg4[%c0_6, %c0_7], %9 {strides = array<i32>} : memref<128x32xbf16, #tpu.memory_space<vmem>>, vector<128x32xbf16>,
    return
  }
  func.func @transform_0(%arg0: i32) -> (i32, i32) {
    %c0_i32 = arith.constant 0 : i32
    %c0_i32_0 = arith.constant 0 : i32
    return %arg0, %c0_i32 : i32, i32
  }
  func.func @transform_1(%arg0: i32) -> (i32, i32) {
    %c0_i32 = arith.constant 0 : i32
    %c0_i32_0 = arith.constant 0 : i32
    %c0_i32_1 = arith.constant 0 : i32
    return %c0_i32, %c0_i32_0 : i32, i32
  }
  func.func @transform_2(%arg0: i32) -> (i32, i32) {
    %c0_i32 = arith.constant 0 : i32
    %c0_i32_0 = arith.constant 0 : i32
    %c0_i32_1 = arith.constant 0 : i32
    return %c0_i32, %c0_i32_0 : i32, i32
  }
  func.func @transform_3(%arg0: i32) -> (i32, i32) {
    %c0_i32 = arith.constant 0 : i32
    %c0_i32_0 = arith.constant 0 : i32
    return %arg0, %c0_i32 : i32, i32
  }
}

module attributes {stable_mosaic.version = 11 : i64} {
  func.func @_conv3x3x3_kernel(%arg0: i32, %arg1: memref<1x176x80xbf16, #tpu.memory_space<vmem>>, %arg2: memref<3x3x80x80xbf16, #tpu.memory_space<vmem>>, %arg3: memref<1x80xf32, #tpu.memory_space<vmem>>, %arg4: memref<1x128x80xbf16, #tpu.memory_space<vmem>>) attributes {dimension_semantics = [#tpu.dimension_semantics<parallel>], iteration_bounds = array<i64: 2>, scalar_prefetch = 0 : i64, scratch_operands = 0 : i64, tpu.core_type = #tpu.core_type<tc>, window_params = [{transform_indices = @transform_0, window_bounds = array<i64: 1, 176, 80>}, {pipeline_mode = #tpu.pipeline_mode<synchronous>, transform_indices = @transform_1, window_bounds = array<i64: 3, 3, 80, 80>}, {pipeline_mode = #tpu.pipeline_mode<synchronous>, transform_indices = @transform_2, window_bounds = array<i64: 1, 80>}, {transform_indices = @transform_3, window_bounds = array<i64: 1, 128, 80>}]} {
    %c0 = arith.constant 0 : index
    %c0_0 = arith.constant 0 : index
    %c0_1 = arith.constant 0 : index
    %0 = vector.load %arg1[%c0, %c0_0, %c0_1] : memref<1x176x80xbf16, #tpu.memory_space<vmem>>, vector<1x144x80xbf16>
    %1 = vector.shape_cast %0 : vector<1x144x80xbf16> to vector<144x80xbf16>
    %c0_2 = arith.constant 0 : index
    %c0_3 = arith.constant 0 : index
    %c0_4 = arith.constant 0 : index
    %c0_5 = arith.constant 0 : index
    %2 = vector.load %arg2[%c0_2, %c0_3, %c0_4, %c0_5] : memref<3x3x80x80xbf16, #tpu.memory_space<vmem>>, vector<1x1x80x80xbf16>
    %3 = vector.shape_cast %2 : vector<1x1x80x80xbf16> to vector<80x80xbf16>
    %cst = arith.constant dense<0.000000e+00> : vector<144x80xf32>
    %4 = tpu.matmul %1, %3, %cst {dimension_numbers = #tpu.dot_dimension_numbers<[1], [0], [0], [1], [0, 0, 1, 1], [], []>} : vector<144x80xbf16>, vector<80x80xbf16>, vector<144x80xf32> -> vector<144x80xf32>
    %c0_6 = arith.constant 0 : index
    %c1 = arith.constant 1 : index
    %c0_7 = arith.constant 0 : index
    %c0_8 = arith.constant 0 : index
    %5 = vector.load %arg2[%c0_6, %c1, %c0_7, %c0_8] : memref<3x3x80x80xbf16, #tpu.memory_space<vmem>>, vector<1x1x80x80xbf16>
    %6 = vector.shape_cast %5 : vector<1x1x80x80xbf16> to vector<80x80xbf16>
    %cst_9 = arith.constant dense<0.000000e+00> : vector<144x80xf32>
    %7 = tpu.matmul %1, %6, %cst_9 {dimension_numbers = #tpu.dot_dimension_numbers<[1], [0], [0], [1], [0, 0, 1, 1], [], []>} : vector<144x80xbf16>, vector<80x80xbf16>, vector<144x80xf32> -> vector<144x80xf32>
    %c0_10 = arith.constant 0 : index
    %c2 = arith.constant 2 : index
    %c0_11 = arith.constant 0 : index
    %c0_12 = arith.constant 0 : index
    %8 = vector.load %arg2[%c0_10, %c2, %c0_11, %c0_12] : memref<3x3x80x80xbf16, #tpu.memory_space<vmem>>, vector<1x1x80x80xbf16>
    %9 = vector.shape_cast %8 : vector<1x1x80x80xbf16> to vector<80x80xbf16>
    %cst_13 = arith.constant dense<0.000000e+00> : vector<144x80xf32>
    %10 = tpu.matmul %1, %9, %cst_13 {dimension_numbers = #tpu.dot_dimension_numbers<[1], [0], [0], [1], [0, 0, 1, 1], [], []>} : vector<144x80xbf16>, vector<80x80xbf16>, vector<144x80xf32> -> vector<144x80xf32>
    %c0_14 = arith.constant 0 : index
    %c16 = arith.constant 16 : index
    %c0_15 = arith.constant 0 : index
    %11 = vector.load %arg1[%c0_14, %c16, %c0_15] : memref<1x176x80xbf16, #tpu.memory_space<vmem>>, vector<1x144x80xbf16>
    %12 = vector.shape_cast %11 : vector<1x144x80xbf16> to vector<144x80xbf16>
    %c1_16 = arith.constant 1 : index
    %c0_17 = arith.constant 0 : index
    %c0_18 = arith.constant 0 : index
    %c0_19 = arith.constant 0 : index
    %13 = vector.load %arg2[%c1_16, %c0_17, %c0_18, %c0_19] : memref<3x3x80x80xbf16, #tpu.memory_space<vmem>>, vector<1x1x80x80xbf16>
    %14 = vector.shape_cast %13 : vector<1x1x80x80xbf16> to vector<80x80xbf16>
    %cst_20 = arith.constant dense<0.000000e+00> : vector<144x80xf32>
    %15 = tpu.matmul %12, %14, %cst_20 {dimension_numbers = #tpu.dot_dimension_numbers<[1], [0], [0], [1], [0, 0, 1, 1], [], []>} : vector<144x80xbf16>, vector<80x80xbf16>, vector<144x80xf32> -> vector<144x80xf32>
    %16 = arith.addf %4, %15 : vector<144x80xf32>
    %c1_21 = arith.constant 1 : index
    %c1_22 = arith.constant 1 : index
    %c0_23 = arith.constant 0 : index
    %c0_24 = arith.constant 0 : index
    %17 = vector.load %arg2[%c1_21, %c1_22, %c0_23, %c0_24] : memref<3x3x80x80xbf16, #tpu.memory_space<vmem>>, vector<1x1x80x80xbf16>
    %18 = vector.shape_cast %17 : vector<1x1x80x80xbf16> to vector<80x80xbf16>
    %cst_25 = arith.constant dense<0.000000e+00> : vector<144x80xf32>
    %19 = tpu.matmul %12, %18, %cst_25 {dimension_numbers = #tpu.dot_dimension_numbers<[1], [0], [0], [1], [0, 0, 1, 1], [], []>} : vector<144x80xbf16>, vector<80x80xbf16>, vector<144x80xf32> -> vector<144x80xf32>
    %20 = arith.addf %7, %19 : vector<144x80xf32>
    %c1_26 = arith.constant 1 : index
    %c2_27 = arith.constant 2 : index
    %c0_28 = arith.constant 0 : index
    %c0_29 = arith.constant 0 : index
    %21 = vector.load %arg2[%c1_26, %c2_27, %c0_28, %c0_29] : memref<3x3x80x80xbf16, #tpu.memory_space<vmem>>, vector<1x1x80x80xbf16>
    %22 = vector.shape_cast %21 : vector<1x1x80x80xbf16> to vector<80x80xbf16>
    %cst_30 = arith.constant dense<0.000000e+00> : vector<144x80xf32>
    %23 = tpu.matmul %12, %22, %cst_30 {dimension_numbers = #tpu.dot_dimension_numbers<[1], [0], [0], [1], [0, 0, 1, 1], [], []>} : vector<144x80xbf16>, vector<80x80xbf16>, vector<144x80xf32> -> vector<144x80xf32>
    %24 = arith.addf %10, %23 : vector<144x80xf32>
    %c0_31 = arith.constant 0 : index
    %c32 = arith.constant 32 : index
    %c0_32 = arith.constant 0 : index
    %25 = vector.load %arg1[%c0_31, %c32, %c0_32] : memref<1x176x80xbf16, #tpu.memory_space<vmem>>, vector<1x144x80xbf16>
    %26 = vector.shape_cast %25 : vector<1x144x80xbf16> to vector<144x80xbf16>
    %c2_33 = arith.constant 2 : index
    %c0_34 = arith.constant 0 : index
    %c0_35 = arith.constant 0 : index
    %c0_36 = arith.constant 0 : index
    %27 = vector.load %arg2[%c2_33, %c0_34, %c0_35, %c0_36] : memref<3x3x80x80xbf16, #tpu.memory_space<vmem>>, vector<1x1x80x80xbf16>
    %28 = vector.shape_cast %27 : vector<1x1x80x80xbf16> to vector<80x80xbf16>
    %cst_37 = arith.constant dense<0.000000e+00> : vector<144x80xf32>
    %29 = tpu.matmul %26, %28, %cst_37 {dimension_numbers = #tpu.dot_dimension_numbers<[1], [0], [0], [1], [0, 0, 1, 1], [], []>} : vector<144x80xbf16>, vector<80x80xbf16>, vector<144x80xf32> -> vector<144x80xf32>
    %30 = arith.addf %16, %29 : vector<144x80xf32>
    %c2_38 = arith.constant 2 : index
    %c1_39 = arith.constant 1 : index
    %c0_40 = arith.constant 0 : index
    %c0_41 = arith.constant 0 : index
    %31 = vector.load %arg2[%c2_38, %c1_39, %c0_40, %c0_41] : memref<3x3x80x80xbf16, #tpu.memory_space<vmem>>, vector<1x1x80x80xbf16>
    %32 = vector.shape_cast %31 : vector<1x1x80x80xbf16> to vector<80x80xbf16>
    %cst_42 = arith.constant dense<0.000000e+00> : vector<144x80xf32>
    %33 = tpu.matmul %26, %32, %cst_42 {dimension_numbers = #tpu.dot_dimension_numbers<[1], [0], [0], [1], [0, 0, 1, 1], [], []>} : vector<144x80xbf16>, vector<80x80xbf16>, vector<144x80xf32> -> vector<144x80xf32>
    %34 = arith.addf %20, %33 : vector<144x80xf32>
    %c2_43 = arith.constant 2 : index
    %c2_44 = arith.constant 2 : index
    %c0_45 = arith.constant 0 : index
    %c0_46 = arith.constant 0 : index
    %35 = vector.load %arg2[%c2_43, %c2_44, %c0_45, %c0_46] : memref<3x3x80x80xbf16, #tpu.memory_space<vmem>>, vector<1x1x80x80xbf16>
    %36 = vector.shape_cast %35 : vector<1x1x80x80xbf16> to vector<80x80xbf16>
    %cst_47 = arith.constant dense<0.000000e+00> : vector<144x80xf32>
    %37 = tpu.matmul %26, %36, %cst_47 {dimension_numbers = #tpu.dot_dimension_numbers<[1], [0], [0], [1], [0, 0, 1, 1], [], []>} : vector<144x80xbf16>, vector<80x80xbf16>, vector<144x80xf32> -> vector<144x80xf32>
    %38 = arith.addf %24, %37 : vector<144x80xf32>
    %39 = vector.extract_strided_slice %30 {offsets = [0, 0], sizes = [128, 80], strides = [1, 1]} : vector<144x80xf32> to vector<128x80xf32>
    %40 = vector.extract_strided_slice %34 {offsets = [1, 0], sizes = [128, 80], strides = [1, 1]} : vector<144x80xf32> to vector<128x80xf32>
    %41 = arith.addf %39, %40 : vector<128x80xf32>
    %42 = vector.extract_strided_slice %38 {offsets = [2, 0], sizes = [128, 80], strides = [1, 1]} : vector<144x80xf32> to vector<128x80xf32>
    %43 = arith.addf %41, %42 : vector<128x80xf32>
    %c0_48 = arith.constant 0 : index
    %c0_49 = arith.constant 0 : index
    %44 = vector.load %arg3[%c0_48, %c0_49] : memref<1x80xf32, #tpu.memory_space<vmem>>, vector<1x80xf32>
    %45 = vector.broadcast %44 : vector<1x80xf32> to vector<128x80xf32>
    %46 = arith.addf %43, %45 : vector<128x80xf32>
    %cst_50 = arith.constant 2.000000e-01 : f32
    %47 = vector.broadcast %cst_50 : f32 to vector<128x80xf32>
    %48 = arith.mulf %47, %46 : vector<128x80xf32>
    %49 = arith.maximumf %46, %48 : vector<128x80xf32>
    %50 = arith.truncf %49 : vector<128x80xf32> to vector<128x80xbf16>
    %c0_51 = arith.constant 0 : index
    %c0_52 = arith.constant 0 : index
    %c0_53 = arith.constant 0 : index
    %51 = vector.load %arg4[%c0_51, %c0_52, %c0_53] : memref<1x128x80xbf16, #tpu.memory_space<vmem>>, vector<1x128x80xbf16>
    %52 = vector.shape_cast %51 : vector<1x128x80xbf16> to vector<128x80xbf16>
    %53 = vector.shape_cast %50 : vector<128x80xbf16> to vector<1x128x80xbf16>
    tpu.vector_store %arg4[%c0_51, %c0_52, %c0_53], %53 {strides = array<i32>} : memref<1x128x80xbf16, #tpu.memory_space<vmem>>, vector<1x128x80xbf16>,
    return
  }
  func.func @transform_0(%arg0: i32) -> (i32, i32, i32) {
    %c0_i32 = arith.constant 0 : i32
    %c0_i32_0 = arith.constant 0 : i32
    %c0_i32_1 = arith.constant 0 : i32
    return %arg0, %c0_i32, %c0_i32_0 : i32, i32, i32
  }
  func.func @transform_1(%arg0: i32) -> (i32, i32, i32, i32) {
    %c0_i32 = arith.constant 0 : i32
    %c0_i32_0 = arith.constant 0 : i32
    %c0_i32_1 = arith.constant 0 : i32
    %c0_i32_2 = arith.constant 0 : i32
    %c0_i32_3 = arith.constant 0 : i32
    return %c0_i32, %c0_i32_0, %c0_i32_1, %c0_i32_2 : i32, i32, i32, i32
  }
  func.func @transform_2(%arg0: i32) -> (i32, i32) {
    %c0_i32 = arith.constant 0 : i32
    %c0_i32_0 = arith.constant 0 : i32
    %c0_i32_1 = arith.constant 0 : i32
    return %c0_i32, %c0_i32_0 : i32, i32
  }
  func.func @transform_3(%arg0: i32) -> (i32, i32, i32) {
    %c0_i32 = arith.constant 0 : i32
    %c0_i32_0 = arith.constant 0 : i32
    %c0_i32_1 = arith.constant 0 : i32
    return %arg0, %c0_i32, %c0_i32_0 : i32, i32, i32
  }
}

module attributes {stable_mosaic.version = 11 : i64} {
  func.func @_conv3x3x3_kernel(%arg0: i32, %arg1: memref<1x176x80xbf16, #tpu.memory_space<vmem>>, %arg2: memref<3x3x80x80xbf16, #tpu.memory_space<vmem>>, %arg3: memref<1x80xf32, #tpu.memory_space<vmem>>, %arg4: memref<1x128x80xbf16, #tpu.memory_space<vmem>>, %arg5: memref<1x2x80xf32, #tpu.memory_space<vmem>>) attributes {dimension_semantics = [#tpu.dimension_semantics<parallel>], iteration_bounds = array<i64: 2>, scalar_prefetch = 0 : i64, scratch_operands = 0 : i64, tpu.core_type = #tpu.core_type<tc>, window_params = [{transform_indices = @transform_0, window_bounds = array<i64: 1, 176, 80>}, {pipeline_mode = #tpu.pipeline_mode<synchronous>, transform_indices = @transform_1, window_bounds = array<i64: 3, 3, 80, 80>}, {pipeline_mode = #tpu.pipeline_mode<synchronous>, transform_indices = @transform_2, window_bounds = array<i64: 1, 80>}, {transform_indices = @transform_3, window_bounds = array<i64: 1, 128, 80>}, {transform_indices = @transform_4, window_bounds = array<i64: 1, 2, 80>}]} {
    %c0 = arith.constant 0 : index
    %c0_0 = arith.constant 0 : index
    %c0_1 = arith.constant 0 : index
    %0 = vector.load %arg1[%c0, %c0_0, %c0_1] : memref<1x176x80xbf16, #tpu.memory_space<vmem>>, vector<1x144x80xbf16>
    %1 = vector.shape_cast %0 : vector<1x144x80xbf16> to vector<144x80xbf16>
    %c0_2 = arith.constant 0 : index
    %c0_3 = arith.constant 0 : index
    %c0_4 = arith.constant 0 : index
    %c0_5 = arith.constant 0 : index
    %2 = vector.load %arg2[%c0_2, %c0_3, %c0_4, %c0_5] : memref<3x3x80x80xbf16, #tpu.memory_space<vmem>>, vector<1x1x80x80xbf16>
    %3 = vector.shape_cast %2 : vector<1x1x80x80xbf16> to vector<80x80xbf16>
    %cst = arith.constant dense<0.000000e+00> : vector<144x80xf32>
    %4 = tpu.matmul %1, %3, %cst {dimension_numbers = #tpu.dot_dimension_numbers<[1], [0], [0], [1], [0, 0, 1, 1], [], []>} : vector<144x80xbf16>, vector<80x80xbf16>, vector<144x80xf32> -> vector<144x80xf32>
    %c0_6 = arith.constant 0 : index
    %c1 = arith.constant 1 : index
    %c0_7 = arith.constant 0 : index
    %c0_8 = arith.constant 0 : index
    %5 = vector.load %arg2[%c0_6, %c1, %c0_7, %c0_8] : memref<3x3x80x80xbf16, #tpu.memory_space<vmem>>, vector<1x1x80x80xbf16>
    %6 = vector.shape_cast %5 : vector<1x1x80x80xbf16> to vector<80x80xbf16>
    %cst_9 = arith.constant dense<0.000000e+00> : vector<144x80xf32>
    %7 = tpu.matmul %1, %6, %cst_9 {dimension_numbers = #tpu.dot_dimension_numbers<[1], [0], [0], [1], [0, 0, 1, 1], [], []>} : vector<144x80xbf16>, vector<80x80xbf16>, vector<144x80xf32> -> vector<144x80xf32>
    %c0_10 = arith.constant 0 : index
    %c2 = arith.constant 2 : index
    %c0_11 = arith.constant 0 : index
    %c0_12 = arith.constant 0 : index
    %8 = vector.load %arg2[%c0_10, %c2, %c0_11, %c0_12] : memref<3x3x80x80xbf16, #tpu.memory_space<vmem>>, vector<1x1x80x80xbf16>
    %9 = vector.shape_cast %8 : vector<1x1x80x80xbf16> to vector<80x80xbf16>
    %cst_13 = arith.constant dense<0.000000e+00> : vector<144x80xf32>
    %10 = tpu.matmul %1, %9, %cst_13 {dimension_numbers = #tpu.dot_dimension_numbers<[1], [0], [0], [1], [0, 0, 1, 1], [], []>} : vector<144x80xbf16>, vector<80x80xbf16>, vector<144x80xf32> -> vector<144x80xf32>
    %c0_14 = arith.constant 0 : index
    %c16 = arith.constant 16 : index
    %c0_15 = arith.constant 0 : index
    %11 = vector.load %arg1[%c0_14, %c16, %c0_15] : memref<1x176x80xbf16, #tpu.memory_space<vmem>>, vector<1x144x80xbf16>
    %12 = vector.shape_cast %11 : vector<1x144x80xbf16> to vector<144x80xbf16>
    %c1_16 = arith.constant 1 : index
    %c0_17 = arith.constant 0 : index
    %c0_18 = arith.constant 0 : index
    %c0_19 = arith.constant 0 : index
    %13 = vector.load %arg2[%c1_16, %c0_17, %c0_18, %c0_19] : memref<3x3x80x80xbf16, #tpu.memory_space<vmem>>, vector<1x1x80x80xbf16>
    %14 = vector.shape_cast %13 : vector<1x1x80x80xbf16> to vector<80x80xbf16>
    %cst_20 = arith.constant dense<0.000000e+00> : vector<144x80xf32>
    %15 = tpu.matmul %12, %14, %cst_20 {dimension_numbers = #tpu.dot_dimension_numbers<[1], [0], [0], [1], [0, 0, 1, 1], [], []>} : vector<144x80xbf16>, vector<80x80xbf16>, vector<144x80xf32> -> vector<144x80xf32>
    %16 = arith.addf %4, %15 : vector<144x80xf32>
    %c1_21 = arith.constant 1 : index
    %c1_22 = arith.constant 1 : index
    %c0_23 = arith.constant 0 : index
    %c0_24 = arith.constant 0 : index
    %17 = vector.load %arg2[%c1_21, %c1_22, %c0_23, %c0_24] : memref<3x3x80x80xbf16, #tpu.memory_space<vmem>>, vector<1x1x80x80xbf16>
    %18 = vector.shape_cast %17 : vector<1x1x80x80xbf16> to vector<80x80xbf16>
    %cst_25 = arith.constant dense<0.000000e+00> : vector<144x80xf32>
    %19 = tpu.matmul %12, %18, %cst_25 {dimension_numbers = #tpu.dot_dimension_numbers<[1], [0], [0], [1], [0, 0, 1, 1], [], []>} : vector<144x80xbf16>, vector<80x80xbf16>, vector<144x80xf32> -> vector<144x80xf32>
    %20 = arith.addf %7, %19 : vector<144x80xf32>
    %c1_26 = arith.constant 1 : index
    %c2_27 = arith.constant 2 : index
    %c0_28 = arith.constant 0 : index
    %c0_29 = arith.constant 0 : index
    %21 = vector.load %arg2[%c1_26, %c2_27, %c0_28, %c0_29] : memref<3x3x80x80xbf16, #tpu.memory_space<vmem>>, vector<1x1x80x80xbf16>
    %22 = vector.shape_cast %21 : vector<1x1x80x80xbf16> to vector<80x80xbf16>
    %cst_30 = arith.constant dense<0.000000e+00> : vector<144x80xf32>
    %23 = tpu.matmul %12, %22, %cst_30 {dimension_numbers = #tpu.dot_dimension_numbers<[1], [0], [0], [1], [0, 0, 1, 1], [], []>} : vector<144x80xbf16>, vector<80x80xbf16>, vector<144x80xf32> -> vector<144x80xf32>
    %24 = arith.addf %10, %23 : vector<144x80xf32>
    %c0_31 = arith.constant 0 : index
    %c32 = arith.constant 32 : index
    %c0_32 = arith.constant 0 : index
    %25 = vector.load %arg1[%c0_31, %c32, %c0_32] : memref<1x176x80xbf16, #tpu.memory_space<vmem>>, vector<1x144x80xbf16>
    %26 = vector.shape_cast %25 : vector<1x144x80xbf16> to vector<144x80xbf16>
    %c2_33 = arith.constant 2 : index
    %c0_34 = arith.constant 0 : index
    %c0_35 = arith.constant 0 : index
    %c0_36 = arith.constant 0 : index
    %27 = vector.load %arg2[%c2_33, %c0_34, %c0_35, %c0_36] : memref<3x3x80x80xbf16, #tpu.memory_space<vmem>>, vector<1x1x80x80xbf16>
    %28 = vector.shape_cast %27 : vector<1x1x80x80xbf16> to vector<80x80xbf16>
    %cst_37 = arith.constant dense<0.000000e+00> : vector<144x80xf32>
    %29 = tpu.matmul %26, %28, %cst_37 {dimension_numbers = #tpu.dot_dimension_numbers<[1], [0], [0], [1], [0, 0, 1, 1], [], []>} : vector<144x80xbf16>, vector<80x80xbf16>, vector<144x80xf32> -> vector<144x80xf32>
    %30 = arith.addf %16, %29 : vector<144x80xf32>
    %c2_38 = arith.constant 2 : index
    %c1_39 = arith.constant 1 : index
    %c0_40 = arith.constant 0 : index
    %c0_41 = arith.constant 0 : index
    %31 = vector.load %arg2[%c2_38, %c1_39, %c0_40, %c0_41] : memref<3x3x80x80xbf16, #tpu.memory_space<vmem>>, vector<1x1x80x80xbf16>
    %32 = vector.shape_cast %31 : vector<1x1x80x80xbf16> to vector<80x80xbf16>
    %cst_42 = arith.constant dense<0.000000e+00> : vector<144x80xf32>
    %33 = tpu.matmul %26, %32, %cst_42 {dimension_numbers = #tpu.dot_dimension_numbers<[1], [0], [0], [1], [0, 0, 1, 1], [], []>} : vector<144x80xbf16>, vector<80x80xbf16>, vector<144x80xf32> -> vector<144x80xf32>
    %34 = arith.addf %20, %33 : vector<144x80xf32>
    %c2_43 = arith.constant 2 : index
    %c2_44 = arith.constant 2 : index
    %c0_45 = arith.constant 0 : index
    %c0_46 = arith.constant 0 : index
    %35 = vector.load %arg2[%c2_43, %c2_44, %c0_45, %c0_46] : memref<3x3x80x80xbf16, #tpu.memory_space<vmem>>, vector<1x1x80x80xbf16>
    %36 = vector.shape_cast %35 : vector<1x1x80x80xbf16> to vector<80x80xbf16>
    %cst_47 = arith.constant dense<0.000000e+00> : vector<144x80xf32>
    %37 = tpu.matmul %26, %36, %cst_47 {dimension_numbers = #tpu.dot_dimension_numbers<[1], [0], [0], [1], [0, 0, 1, 1], [], []>} : vector<144x80xbf16>, vector<80x80xbf16>, vector<144x80xf32> -> vector<144x80xf32>
    %38 = arith.addf %24, %37 : vector<144x80xf32>
    %39 = vector.extract_strided_slice %30 {offsets = [0, 0], sizes = [128, 80], strides = [1, 1]} : vector<144x80xf32> to vector<128x80xf32>
    %40 = vector.extract_strided_slice %34 {offsets = [1, 0], sizes = [128, 80], strides = [1, 1]} : vector<144x80xf32> to vector<128x80xf32>
    %41 = arith.addf %39, %40 : vector<128x80xf32>
    %42 = vector.extract_strided_slice %38 {offsets = [2, 0], sizes = [128, 80], strides = [1, 1]} : vector<144x80xf32> to vector<128x80xf32>
    %43 = arith.addf %41, %42 : vector<128x80xf32>
    %c0_48 = arith.constant 0 : index
    %c0_49 = arith.constant 0 : index
    %44 = vector.load %arg3[%c0_48, %c0_49] : memref<1x80xf32, #tpu.memory_space<vmem>>, vector<1x80xf32>
    %45 = vector.broadcast %44 : vector<1x80xf32> to vector<128x80xf32>
    %46 = arith.addf %43, %45 : vector<128x80xf32>
    %cst_50 = arith.constant 2.000000e-01 : f32
    %47 = vector.broadcast %cst_50 : f32 to vector<128x80xf32>
    %48 = arith.mulf %47, %46 : vector<128x80xf32>
    %49 = arith.maximumf %46, %48 : vector<128x80xf32>
    %50 = arith.truncf %49 : vector<128x80xf32> to vector<128x80xbf16>
    %c0_51 = arith.constant 0 : index
    %c0_52 = arith.constant 0 : index
    %c0_53 = arith.constant 0 : index
    %51 = vector.load %arg4[%c0_51, %c0_52, %c0_53] : memref<1x128x80xbf16, #tpu.memory_space<vmem>>, vector<1x128x80xbf16>
    %52 = vector.shape_cast %51 : vector<1x128x80xbf16> to vector<128x80xbf16>
    %53 = vector.shape_cast %50 : vector<128x80xbf16> to vector<1x128x80xbf16>
    tpu.vector_store %arg4[%c0_51, %c0_52, %c0_53], %53 {strides = array<i32>} : memref<1x128x80xbf16, #tpu.memory_space<vmem>>, vector<1x128x80xbf16>,
    %54 = tpu.iota {dimensions = array<i32: 0>} : vector<128x1xi32>
    %c16_i32 = arith.constant 16 : i32
    %c0_i32 = arith.constant 0 : i32
    %55 = arith.cmpi eq, %c16_i32, %c0_i32 : i32
    %c1_i32 = arith.constant 1 : i32
    %56 = arith.select %55, %c1_i32, %c16_i32 : i32
    %57 = vector.broadcast %56 : i32 to vector<128x1xi32>
    %58 = arith.remsi %54, %57 : vector<128x1xi32>
    %c0_i32_54 = arith.constant 0 : i32
    %59 = vector.broadcast %c0_i32_54 : i32 to vector<128x1xi32>
    %60 = arith.cmpi ne, %58, %59 : vector<128x1xi32>
    %c0_i32_55 = arith.constant 0 : i32
    %61 = vector.broadcast %c0_i32_55 : i32 to vector<128x1xi32>
    %62 = arith.cmpi slt, %58, %61 : vector<128x1xi32>
    %c0_i32_56 = arith.constant 0 : i32
    %63 = arith.cmpi slt, %56, %c0_i32_56 : i32
    %64 = vector.broadcast %63 : i1 to vector<128x1xi1>
    %65 = vector.broadcast %64 : vector<128x1xi1> to vector<128x1xi1>
    %66 = arith.xori %62, %65 : vector<128x1xi1>
    %67 = arith.andi %66, %60 : vector<128x1xi1>
    %68 = vector.broadcast %56 : i32 to vector<128x1xi32>
    %69 = arith.addi %58, %68 : vector<128x1xi32>
    %70 = arith.select %67, %69, %58 : vector<128x1xi1>, vector<128x1xi32>
    %c8_i32 = arith.constant 8 : i32
    %71 = vector.broadcast %c8_i32 : i32 to vector<128x1xi32>
    %72 = arith.cmpi slt, %70, %71 : vector<128x1xi32>
    %cst_57 = arith.constant 0.000000e+00 : f32
    %73 = vector.shape_cast %72 : vector<128x1xi1> to vector<128x1xi1>
    %74 = vector.broadcast %73 : vector<128x1xi1> to vector<128x80xi1>
    %75 = vector.broadcast %cst_57 : f32 to vector<128x80xf32>
    %76 = arith.select %74, %49, %75 : vector<128x80xi1>, vector<128x80xf32>
    %cst_58 = arith.constant dense<0.000000e+00> : vector<80xf32>
    %77 = vector.multi_reduction <add>, %76, %cst_58 [0] : vector<128x80xf32> to vector<80xf32>
    %78 = vector.shape_cast %77 : vector<80xf32> to vector<1x80xf32>
    %79 = arith.mulf %76, %76 : vector<128x80xf32>
    %cst_59 = arith.constant dense<0.000000e+00> : vector<80xf32>
    %80 = vector.multi_reduction <add>, %79, %cst_59 [0] : vector<128x80xf32> to vector<80xf32>
    %81 = vector.shape_cast %80 : vector<80xf32> to vector<1x80xf32>
    %82 = tpu.concatenate %78, %81 in 0 : vector<1x80xf32>, vector<1x80xf32> -> vector<2x80xf32>
    %c0_60 = arith.constant 0 : index
    %c0_61 = arith.constant 0 : index
    %c0_62 = arith.constant 0 : index
    %83 = vector.load %arg5[%c0_60, %c0_61, %c0_62] : memref<1x2x80xf32, #tpu.memory_space<vmem>>, vector<1x2x80xf32>
    %84 = vector.shape_cast %83 : vector<1x2x80xf32> to vector<2x80xf32>
    %85 = vector.shape_cast %82 : vector<2x80xf32> to vector<1x2x80xf32>
    tpu.vector_store %arg5[%c0_60, %c0_61, %c0_62], %85 {strides = array<i32>} : memref<1x2x80xf32, #tpu.memory_space<vmem>>, vector<1x2x80xf32>,
    return
  }
  func.func @transform_0(%arg0: i32) -> (i32, i32, i32) {
    %c0_i32 = arith.constant 0 : i32
    %c0_i32_0 = arith.constant 0 : i32
    %c0_i32_1 = arith.constant 0 : i32
    return %arg0, %c0_i32, %c0_i32_0 : i32, i32, i32
  }
  func.func @transform_1(%arg0: i32) -> (i32, i32, i32, i32) {
    %c0_i32 = arith.constant 0 : i32
    %c0_i32_0 = arith.constant 0 : i32
    %c0_i32_1 = arith.constant 0 : i32
    %c0_i32_2 = arith.constant 0 : i32
    %c0_i32_3 = arith.constant 0 : i32
    return %c0_i32, %c0_i32_0, %c0_i32_1, %c0_i32_2 : i32, i32, i32, i32
  }
  func.func @transform_2(%arg0: i32) -> (i32, i32) {
    %c0_i32 = arith.constant 0 : i32
    %c0_i32_0 = arith.constant 0 : i32
    %c0_i32_1 = arith.constant 0 : i32
    return %c0_i32, %c0_i32_0 : i32, i32
  }
  func.func @transform_3(%arg0: i32) -> (i32, i32, i32) {
    %c0_i32 = arith.constant 0 : i32
    %c0_i32_0 = arith.constant 0 : i32
    %c0_i32_1 = arith.constant 0 : i32
    return %arg0, %c0_i32, %c0_i32_0 : i32, i32, i32
  }
  func.func @transform_4(%arg0: i32) -> (i32, i32, i32) {
    %c0_i32 = arith.constant 0 : i32
    %c0_i32_0 = arith.constant 0 : i32
    %c0_i32_1 = arith.constant 0 : i32
    return %arg0, %c0_i32, %c0_i32_0 : i32, i32, i32
  }
}

module attributes {stable_mosaic.version = 11 : i64} {
  func.func @_affine_kernel(%arg0: i32, %arg1: memref<1x128x80xbf16, #tpu.memory_space<vmem>>, %arg2: memref<1x1x80xf32, #tpu.memory_space<vmem>>, %arg3: memref<1x1x80xf32, #tpu.memory_space<vmem>>, %arg4: memref<1x128x80xf32, #tpu.memory_space<vmem>>) attributes {dimension_semantics = [#tpu.dimension_semantics<parallel>], iteration_bounds = array<i64: 2>, scalar_prefetch = 0 : i64, scratch_operands = 0 : i64, tpu.core_type = #tpu.core_type<tc>, window_params = [{transform_indices = @transform_0, window_bounds = array<i64: 1, 128, 80>}, {pipeline_mode = #tpu.pipeline_mode<synchronous>, transform_indices = @transform_1, window_bounds = array<i64: 1, 1, 80>}, {pipeline_mode = #tpu.pipeline_mode<synchronous>, transform_indices = @transform_2, window_bounds = array<i64: 1, 1, 80>}, {transform_indices = @transform_3, window_bounds = array<i64: 1, 128, 80>}]} {
    %c0 = arith.constant 0 : index
    %c0_0 = arith.constant 0 : index
    %c0_1 = arith.constant 0 : index
    %0 = vector.load %arg1[%c0, %c0_0, %c0_1] : memref<1x128x80xbf16, #tpu.memory_space<vmem>>, vector<1x128x80xbf16>
    %1 = arith.extf %0 : vector<1x128x80xbf16> to vector<1x128x80xf32>
    %c0_2 = arith.constant 0 : index
    %c0_3 = arith.constant 0 : index
    %c0_4 = arith.constant 0 : index
    %2 = vector.load %arg2[%c0_2, %c0_3, %c0_4] : memref<1x1x80xf32, #tpu.memory_space<vmem>>, vector<1x1x80xf32>
    %3 = vector.broadcast %2 : vector<1x1x80xf32> to vector<1x128x80xf32>
    %4 = arith.mulf %1, %3 : vector<1x128x80xf32>
    %c0_5 = arith.constant 0 : index
    %c0_6 = arith.constant 0 : index
    %c0_7 = arith.constant 0 : index
    %5 = vector.load %arg3[%c0_5, %c0_6, %c0_7] : memref<1x1x80xf32, #tpu.memory_space<vmem>>, vector<1x1x80xf32>
    %6 = vector.broadcast %5 : vector<1x1x80xf32> to vector<1x128x80xf32>
    %7 = arith.addf %4, %6 : vector<1x128x80xf32>
    %c0_8 = arith.constant 0 : index
    %c0_9 = arith.constant 0 : index
    %c0_10 = arith.constant 0 : index
    %8 = vector.load %arg4[%c0_8, %c0_9, %c0_10] : memref<1x128x80xf32, #tpu.memory_space<vmem>>, vector<1x128x80xf32>
    tpu.vector_store %arg4[%c0_8, %c0_9, %c0_10], %7 {strides = array<i32>} : memref<1x128x80xf32, #tpu.memory_space<vmem>>, vector<1x128x80xf32>,
    return
  }
  func.func @transform_0(%arg0: i32) -> (i32, i32, i32) {
    %c0_i32 = arith.constant 0 : i32
    %c0_i32_0 = arith.constant 0 : i32
    %c0_i32_1 = arith.constant 0 : i32
    return %arg0, %c0_i32, %c0_i32_0 : i32, i32, i32
  }
  func.func @transform_1(%arg0: i32) -> (i32, i32, i32) {
    %c0_i32 = arith.constant 0 : i32
    %c0_i32_0 = arith.constant 0 : i32
    %c0_i32_1 = arith.constant 0 : i32
    %c0_i32_2 = arith.constant 0 : i32
    return %c0_i32, %c0_i32_0, %c0_i32_1 : i32, i32, i32
  }
  func.func @transform_2(%arg0: i32) -> (i32, i32, i32) {
    %c0_i32 = arith.constant 0 : i32
    %c0_i32_0 = arith.constant 0 : i32
    %c0_i32_1 = arith.constant 0 : i32
    %c0_i32_2 = arith.constant 0 : i32
    return %c0_i32, %c0_i32_0, %c0_i32_1 : i32, i32, i32
  }
  func.func @transform_3(%arg0: i32) -> (i32, i32, i32) {
    %c0_i32 = arith.constant 0 : i32
    %c0_i32_0 = arith.constant 0 : i32
    %c0_i32_1 = arith.constant 0 : i32
    return %arg0, %c0_i32, %c0_i32_0 : i32, i32, i32
  }
}

</mosaic_0001>

<bundles_post_ra>
// kernel: tile.28
= control target key start
LH: loop header
LB: loop body
LE: loop exit
PB: predicated region body
PF: predicated region fallthrough
CT: control target
= control target key end

     0   :  { %s22_s0 = inlined_call_operand.vmem [shape: f32[4], index: 0, kind: input, shape index: {}]   ;;  %s23_s1 = inlined_call_operand.vmem [shape: f32[8,4], index: 1, kind: output, shape index: {}]  }
   0x1   :  { %v4_v0 = vld [vmem:[%s22_s0] ss:$0 sm:$0xff] }
   0x2   :  { %5 = vst [vmem:[%s23_s1] sm:$0xff] %v4_v0 }

// kernel: tile.29
= control target key start
LH: loop header
LB: loop body
LE: loop exit
PB: predicated region body
PF: predicated region fallthrough
CT: control target
= control target key end

     0   :  { %s67_s10 = smov 28   ;;  %s68_s11 = smov 20   ;;  %vm3_vm0 = vcmask 31744   ;;  %vm9_vm1 = vcmask 261344   ;;  %vm15_vm2 = vcmask 228544   ;;  %vm21_vm3 = vcmask 195744   ;;  %s111_s0 = inlined_call_operand.vmem [shape: f32[8,4], index: 0, kind: input, shape index: {}]   ;;  %s112_s1 = inlined_call_operand.vmem [shape: f32[1,32], index: 1, kind: output, shape index: {}]  }
   0x1   :  { %v53_v0 = vld [vmem:[%s111_s0 + $0x7] sm:$0x1]   ;;  %v55_v1 = vld [vmem:[%s111_s0 + $0x5] sm:$0x1]   ;;  %v57_v2 = vld [vmem:[%s111_s0 + $0x3] sm:$0x1]  }
   0x2   :  { %7 = vrot.lane.b32.xlu0 %v53_v0, %s67_s10  ;;  %19 = vrot.lane.b32.xlu1 %v55_v1, %s68_s11  ;;  %s69_s14 = smov 12   ;;  %v54_v3 = vld [vmem:[%s111_s0 + $0x6] sm:$0x1]   ;;  %v56_v4 = vld [vmem:[%s111_s0 + $0x4] sm:$0x1]   ;;  %s70_s21 = smov 24  }
   0x3   :  { %31 = vrot.lane.b32.xlu2 %v57_v2, %s69_s14  ;;  %v58_v5 = vld [vmem:[%s111_s0 + $0x2] sm:$0x1]   ;;  %s71_s22 = smov 16   ;;  %s72_s23 = smov 8   ;;  %v59_v6 = vld [vmem:[%s111_s0 + $0x1] sm:$0x1]  }
   0x4   :  { %s73_s26 = smov 4   ;;  %v2_v7 = vld [vmem:[%s111_s0] sm:$0x1]   ;;  %vm27_vm4 = vcmask 162944   ;;  %vm33_vm5 = vcmask 130144   ;;  %vm39_vm6 = vcmask 97344  }
   0x5   :  { %4 = vst.msk [vmem:[#allocation0] sm:$0x1] %vm3_vm0, %v2_v7   ;;  %vm45_vm7 = vcmask 64544  }
   0xa   :  { %13 = vrot.lane.b32.xlu0 %v54_v3, %s70_s21  ;;  %25 = vrot.lane.b32.xlu1 %v56_v4, %s71_s22 }
   0xb   :  { %37 = vrot.lane.b32.xlu2 %v58_v5, %s72_s23 }
  0x12   :  { %43 = vrot.lane.b32.xlu0 %v59_v6, %s73_s26 }
  0x5d   :  { %v32_v8 = vpop.permute.xlu2 %31  }
  0x65   :  { %v38_v9 = vpop.permute.xlu2 %37  }
  0x74   :  { %v8_v10 = vpop.permute.xlu0 %7   ;;  %v20_v11 = vpop.permute.xlu1 %19  }
  0x75   :  { %10 = vst.msk [vmem:[#allocation0] sm:$0x1] %vm9_vm1, %v8_v10  }
  0x7c   :  { %v14_v12 = vpop.permute.xlu0 %13   ;;  %v26_v13 = vpop.permute.xlu1 %25  }
  0x7d   :  { %16 = vst.msk [vmem:[#allocation0] sm:$0x1] %vm15_vm2, %v14_v12  }
  0x7e   :  { %22 = vst.msk [vmem:[#allocation0] sm:$0x1] %vm21_vm3, %v20_v11  }
  0x7f   :  { %28 = vst.msk [vmem:[#allocation0] sm:$0x1] %vm27_vm4, %v26_v13  }
  0x80   :  { %34 = vst.msk [vmem:[#allocation0] sm:$0x1] %vm33_vm5, %v32_v8  }
  0x81   :  { %40 = vst.msk [vmem:[#allocation0] sm:$0x1] %vm39_vm6, %v38_v9  }
  0x84   :  { %v44_v14 = vpop.permute.xlu0 %43  }
  0x85   :  { %46 = vst.msk [vmem:[#allocation0] sm:$0x1] %vm45_vm7, %v44_v14  }
  0x8c   :  { %v49_v15 = vld [vmem:[#allocation0] sm:$0x1] }
  0x8d   :  { %52 = vst [vmem:[%s112_s1] sm:$0x1] %v49_v15 }

// kernel: upconv_block_forward.4
= control target key start
LH: loop header
LB: loop body
LE: loop exit
PB: predicated region body
PF: predicated region fallthrough
CT: control target
= control target key end

     0   :  { %vm101_vm0 = vcmask 1043456   ;;  %vm76_vm1 = vcmask 64512   ;;  %vm202_vm2 = vcmask 257024   ;;  %s415_s1 = inlined_call_operand.vmem [shape: bf16[8,32], index: 1, kind: input, shape index: {}]   ;;  %s416_s0 = inlined_call_operand.vmem [shape: bf16[128,8], index: 0, kind: input, shape index: {}]   ;;  %s417_s2 = inlined_call_operand.vmem [shape: f32[1,32], index: 2, kind: input, shape index: {}]   ;;  %s418_s3 = inlined_call_operand.vmem [shape: bf16[128,32], index: 3, kind: output, shape index: {}]  }
   0x1   :  { %v31_v0 = vld [vmem:[%s415_s1] sm:$0xf]  ;;  %v265_v3 = vld [vmem:[%s416_s0 + $0x10] sm:$0xff]  ;;  %v264_v6 = vld [vmem:[%s416_s0 + $0x8] sm:$0xff] }
   0x2   :  { %v103_v1 = vsel %vm101_vm0, %v31_v0, 0  ;;  %v263_v2 = vld [vmem:[%s416_s0] sm:$0xff]  ;;  %v269_v5 = vld [vmem:[%s416_s0 + $0x30] sm:$0xff]  ;;  %v266_v7 = vld [vmem:[%s416_s0 + $0x18] sm:$0xff] }
   0x3   :  { %112 = vmatpush.bf16.msra.mxu0 %v103_v1  ;;  %271 = vmatpush.bf16.msra.mxu1 %v103_v1  ;;  %v267_v4 = vld [vmem:[%s416_s0 + $0x20] sm:$0xff]  ;;  %v268_v8 = vld [vmem:[%s416_s0 + $0x28] sm:$0xff]  ;;  %v270_v9 = vld [vmem:[%s416_s0 + $0x38] sm:$0xff] }
   0x4   :  { %272 = vmatpush.bf16.msra.mxu2 %v103_v1  ;;  %273 = vmatpush.bf16.msra.mxu3 %v103_v1  ;;  %v333_v10 = vld [vmem:[%s417_s2] ss:$0 sm:$0xff] }
   0x6   :  { %255 = vmatmul.msk.bf16.vlgmr.msra.gmra.mxu0 %vm76_vm1, %v263_v2  ;;  %257 = vmatmul.msk.bf16.vlgmr.msra.gmra.mxu1 %vm76_vm1, %v265_v3 }
   0x7   :  { %259 = vmatmul.msk.bf16.vlgmr.msra.gmra.mxu2 %vm76_vm1, %v267_v4  ;;  %261 = vmatmul.msk.bf16.vlgmr.msra.gmra.mxu3 %vm76_vm1, %v269_v5 }
  0x16   :  { %256 = vmatmul.msk.bf16.gmra.mxu0 %vm76_vm1, %v264_v6  ;;  %258 = vmatmul.msk.bf16.gmra.mxu1 %vm76_vm1, %v266_v7 }
  0x17   :  { %260 = vmatmul.msk.bf16.gmra.mxu2 %vm76_vm1, %v268_v8  ;;  %262 = vmatmul.msk.bf16.gmra.mxu3 %vm76_vm1, %v270_v9 }
  0x83   :  { %v114_v11 = vpop.f32.mrf.mxu0  ;;  %v124_v12 = vpop.f32.mrf.mxu1 }
  0x84   :  { %v115_v13 = vadd.f32 %v333_v10, %v114_v11  ;;  %v125_v14 = vadd.f32 %v333_v10, %v124_v12 }
  0x86   :  { %v154_v15 = vmul.f32 0.2, %v115_v13  ;;  %v158_v16 = vmul.f32 0.2, %v125_v14 }
  0x88   :  { %v170_v17 = vmax.f32 %v115_v13, %v154_v15  ;;  %v174_v18 = vmax.f32 %v125_v14, %v158_v16 }
  0x8a   :  { %v186_v19 = vpack.c.bf16 %v170_v17, %v170_v17  ;;  %v190_v20 = vpack.c.bf16 %v174_v18, %v174_v18  ;;  %v134_v21 = vpop.f32.mrf.mxu2  ;;  %v144_v22 = vpop.f32.mrf.mxu3 }
  0x8b   :  { %v135_v23 = vadd.f32 %v333_v10, %v134_v21  ;;  %v145_v24 = vadd.f32 %v333_v10, %v144_v22  ;;  %v116_v25 = vpop.f32.mrf.mxu0  ;;  %v126_v26 = vpop.f32.mrf.mxu1 }
  0x8c   :  { %203 = vst.msk [vmem:[%s418_s3] sm:$0xf] %vm202_vm2, %v186_v19  ;;  %v117_v27 = vadd.f32 %v333_v10, %v116_v25  ;;  %v127_v28 = vadd.f32 %v333_v10, %v126_v26 }
  0x8d   :  { %207 = vst.msk [vmem:[%s418_s3 + $0x10] sm:$0xf] %vm202_vm2, %v190_v20  ;;  %v162_v29 = vmul.f32 0.2, %v135_v23  ;;  %v166_v30 = vmul.f32 0.2, %v145_v24 }
  0x8e   :  { %v155_v31 = vmul.f32 0.2, %v117_v27  ;;  %v159_v32 = vmul.f32 0.2, %v127_v28 }
  0x8f   :  { %v178_v33 = vmax.f32 %v135_v23, %v162_v29  ;;  %v182_v34 = vmax.f32 %v145_v24, %v166_v30 }
  0x90   :  { %v171_v35 = vmax.f32 %v117_v27, %v155_v31  ;;  %v175_v36 = vmax.f32 %v127_v28, %v159_v32 }
  0x91   :  { %v194_v37 = vpack.c.bf16 %v178_v33, %v178_v33  ;;  %v198_v38 = vpack.c.bf16 %v182_v34, %v182_v34 }
  0x92   :  { %v187_v39 = vpack.c.bf16 %v171_v35, %v171_v35  ;;  %v191_v40 = vpack.c.bf16 %v175_v36, %v175_v36  ;;  %v136_v41 = vpop.f32.mrf.mxu2  ;;  %v146_v42 = vpop.f32.mrf.mxu3 }
  0x93   :  { %211 = vst.msk [vmem:[%s418_s3 + $0x20] sm:$0xf] %vm202_vm2, %v194_v37  ;;  %v137_v43 = vadd.f32 %v333_v10, %v136_v41  ;;  %v147_v44 = vadd.f32 %v333_v10, %v146_v42  ;;  %v119_v45 = vpop.f32.mrf.mxu0  ;;  %v129_v46 = vpop.f32.mrf.mxu1 }
  0x94   :  { %215 = vst.msk [vmem:[%s418_s3 + $0x30] sm:$0xf] %vm202_vm2, %v198_v38  ;;  %v120_v47 = vadd.f32 %v333_v10, %v119_v45  ;;  %v130_v48 = vadd.f32 %v333_v10, %v129_v46 }
  0x95   :  { %204 = vst.msk [vmem:[%s418_s3 + $0x4] sm:$0xf] %vm202_vm2, %v187_v39  ;;  %v163_v49 = vmul.f32 0.2, %v137_v43  ;;  %v167_v50 = vmul.f32 0.2, %v147_v44 }
  0x96   :  { %208 = vst.msk [vmem:[%s418_s3 + $0x14] sm:$0xf] %vm202_vm2, %v191_v40  ;;  %v156_v51 = vmul.f32 0.2, %v120_v47  ;;  %v160_v52 = vmul.f32 0.2, %v130_v48 }
  0x97   :  { %v179_v53 = vmax.f32 %v137_v43, %v163_v49  ;;  %v183_v54 = vmax.f32 %v147_v44, %v167_v50 }
  0x98   :  { %v172_v55 = vmax.f32 %v120_v47, %v156_v51  ;;  %v176_v56 = vmax.f32 %v130_v48, %v160_v52 }
  0x99   :  { %v195_v57 = vpack.c.bf16 %v179_v53, %v179_v53  ;;  %v199_v58 = vpack.c.bf16 %v183_v54, %v183_v54 }
  0x9a   :  { %v188_v59 = vpack.c.bf16 %v172_v55, %v172_v55  ;;  %v192_v60 = vpack.c.bf16 %v176_v56, %v176_v56  ;;  %v139_v61 = vpop.f32.mrf.mxu2  ;;  %v149_v62 = vpop.f32.mrf.mxu3 }
  0x9b   :  { %212 = vst.msk [vmem:[%s418_s3 + $0x24] sm:$0xf] %vm202_vm2, %v195_v57  ;;  %v140_v63 = vadd.f32 %v333_v10, %v139_v61  ;;  %v150_v0 = vadd.f32 %v333_v10, %v149_v62  ;;  %v121_v1 = vpop.f32.mrf.mxu0  ;;  %v131_v2 = vpop.f32.mrf.mxu1 }
  0x9c   :  { %216 = vst.msk [vmem:[%s418_s3 + $0x34] sm:$0xf] %vm202_vm2, %v199_v58  ;;  %v122_v3 = vadd.f32 %v333_v10, %v121_v1  ;;  %v132_v4 = vadd.f32 %v333_v10, %v131_v2 }
  0x9d   :  { %205 = vst.msk [vmem:[%s418_s3 + $0x8] sm:$0xf] %vm202_vm2, %v188_v59  ;;  %v164_v5 = vmul.f32 0.2, %v140_v63  ;;  %v168_v6 = vmul.f32 0.2, %v150_v0 }
  0x9e   :  { %209 = vst.msk [vmem:[%s418_s3 + $0x18] sm:$0xf] %vm202_vm2, %v192_v60  ;;  %v157_v7 = vmul.f32 0.2, %v122_v3  ;;  %v161_v8 = vmul.f32 0.2, %v132_v4 }
  0x9f   :  { %v180_v9 = vmax.f32 %v140_v63, %v164_v5  ;;  %v184_v11 = vmax.f32 %v150_v0, %v168_v6 }
  0xa0   :  { %v173_v12 = vmax.f32 %v122_v3, %v157_v7  ;;  %v177_v13 = vmax.f32 %v132_v4, %v161_v8 }
  0xa1   :  { %v196_v14 = vpack.c.bf16 %v180_v9, %v180_v9  ;;  %v200_v15 = vpack.c.bf16 %v184_v11, %v184_v11 }
  0xa2   :  { %v189_v16 = vpack.c.bf16 %v173_v12, %v173_v12  ;;  %v193_v17 = vpack.c.bf16 %v177_v13, %v177_v13  ;;  %v141_v18 = vpop.f32.mrf.mxu2  ;;  %v151_v19 = vpop.f32.mrf.mxu3 }
  0xa3   :  { %213 = vst.msk [vmem:[%s418_s3 + $0x28] sm:$0xf] %vm202_vm2, %v196_v14  ;;  %v142_v20 = vadd.f32 %v333_v10, %v141_v18  ;;  %v152_v21 = vadd.f32 %v333_v10, %v151_v19 }
  0xa4   :  { %217 = vst.msk [vmem:[%s418_s3 + $0x38] sm:$0xf] %vm202_vm2, %v200_v15 }
  0xa5   :  { %206 = vst.msk [vmem:[%s418_s3 + $0xc] sm:$0xf] %vm202_vm2, %v189_v16  ;;  %v165_v22 = vmul.f32 0.2, %v142_v20  ;;  %v169_v23 = vmul.f32 0.2, %v152_v21 }
  0xa6   :  { %210 = vst.msk [vmem:[%s418_s3 + $0x1c] sm:$0xf] %vm202_vm2, %v193_v17 }
  0xa7   :  { %v181_v24 = vmax.f32 %v142_v20, %v165_v22  ;;  %v185_v25 = vmax.f32 %v152_v21, %v169_v23 }
  0xa9   :  { %v197_v10 = vpack.c.bf16 %v181_v24, %v181_v24  ;;  %v201_v26 = vpack.c.bf16 %v185_v25, %v185_v25 }
  0xab   :  { %214 = vst.msk [vmem:[%s418_s3 + $0x2c] sm:$0xf] %vm202_vm2, %v197_v10 }
  0xac   :  { %218 = vst.msk [vmem:[%s418_s3 + $0x3c] sm:$0xf] %vm202_vm2, %v201_v26 }

// kernel: tile.33
= control target key start
LH: loop header
LB: loop body
LE: loop exit
PB: predicated region body
PF: predicated region fallthrough
CT: control target
= control target key end

     0   :  { %s28_s0 = inlined_call_operand.vmem [shape: f32[8], index: 0, kind: input, shape index: {}]   ;;  %s29_s1 = inlined_call_operand.vmem [shape: f32[10,8], index: 1, kind: output, shape index: {}]  }
   0x1   :  { %v4_v0 = vld [vmem:[%s28_s0] ss:$0 sm:$0xff] }
   0x2   :  { %5 = vst [vmem:[%s29_s1] sm:$0xff] %v4_v0 }
   0x3   :  { %8 = vst [vmem:[%s29_s1 + $0x8] sm:$0xff] %v4_v0 }

// kernel: tile.34
= control target key start
LH: loop header
LB: loop body
LE: loop exit
PB: predicated region body
PF: predicated region fallthrough
CT: control target
= control target key end

     0   :  { %s83_s10 = smov 72   ;;  %s84_s11 = smov 56   ;;  %vm3_vm0 = vcmask 64512   ;;  %vm9_vm1 = vcmask 654912   ;;  %vm15_vm2 = vcmask 589312   ;;  %vm21_vm3 = vcmask 523712   ;;  %s135_s0 = inlined_call_operand.vmem [shape: f32[10,8], index: 0, kind: input, shape index: {}]   ;;  %s136_s1 = inlined_call_operand.vmem [shape: f32[1,80], index: 1, kind: output, shape index: {}]  }
   0x1   :  { %v65_v0 = vld [vmem:[%s135_s0 + $0x9] sm:$0x1]   ;;  %v67_v1 = vld [vmem:[%s135_s0 + $0x7] sm:$0x1]   ;;  %v69_v2 = vld [vmem:[%s135_s0 + $0x5] sm:$0x1]  }
   0x2   :  { %7 = vrot.lane.b32.xlu0 %v65_v0, %s83_s10  ;;  %19 = vrot.lane.b32.xlu1 %v67_v1, %s84_s11  ;;  %s85_s14 = smov 40   ;;  %v66_v3 = vld [vmem:[%s135_s0 + $0x8] sm:$0x1]   ;;  %v68_v4 = vld [vmem:[%s135_s0 + $0x6] sm:$0x1]   ;;  %s86_s19 = smov 64  }
   0x3   :  { %31 = vrot.lane.b32.xlu2 %v69_v2, %s85_s14  ;;  %s87_s20 = smov 48   ;;  %v70_v5 = vld [vmem:[%s135_s0 + $0x4] sm:$0x1]   ;;  %s88_s23 = smov 32   ;;  %v71_v6 = vld [vmem:[%s135_s0 + $0x3] sm:$0x1]  }
   0x4   :  { %v72_v7 = vld [vmem:[%s135_s0 + $0x2] sm:$0x1]   ;;  %s89_s28 = smov 24   ;;  %s90_s29 = smov 16   ;;  %v73_v8 = vld [vmem:[%s135_s0 + $0x1] sm:$0x1]  }
   0x5   :  { %s91_s3 = smov 8   ;;  %v2_v9 = vld [vmem:[%s135_s0] sm:$0x1]   ;;  %vm27_vm4 = vcmask 458112   ;;  %vm33_vm5 = vcmask 392512   ;;  %vm39_vm6 = vcmask 326912  }
   0x6   :  { %4 = vst.msk [vmem:[#allocation0] sm:$0x1] %vm3_vm0, %v2_v9   ;;  %vm45_vm7 = vcmask 261312   ;;  %vm51_vm8 = vcmask 195712   ;;  %vm57_vm9 = vcmask 130112  }
   0xa   :  { %13 = vrot.lane.b32.xlu0 %v66_v3, %s86_s19  ;;  %25 = vrot.lane.b32.xlu1 %v68_v4, %s87_s20 }
   0xb   :  { %37 = vrot.lane.b32.xlu2 %v70_v5, %s88_s23 }
  0x12   :  { %43 = vrot.lane.b32.xlu0 %v71_v6, %s89_s28  ;;  %49 = vrot.lane.b32.xlu1 %v72_v7, %s90_s29 }
  0x13   :  { %55 = vrot.lane.b32.xlu2 %v73_v8, %s91_s3 }
  0x5d   :  { %v32_v10 = vpop.permute.xlu2 %31  }
  0x65   :  { %v38_v11 = vpop.permute.xlu2 %37  }
  0x6d   :  { %v56_v12 = vpop.permute.xlu2 %55  }
  0x74   :  { %v8_v13 = vpop.permute.xlu0 %7   ;;  %v20_v14 = vpop.permute.xlu1 %19  }
  0x75   :  { %10 = vst.msk [vmem:[#allocation0] sm:$0x1] %vm9_vm1, %v8_v13  }
  0x7c   :  { %v14_v15 = vpop.permute.xlu0 %13   ;;  %v26_v16 = vpop.permute.xlu1 %25  }
  0x7d   :  { %16 = vst.msk [vmem:[#allocation0] sm:$0x1] %vm15_vm2, %v14_v15  }
  0x7e   :  { %22 = vst.msk [vmem:[#allocation0] sm:$0x1] %vm21_vm3, %v20_v14  }
  0x7f   :  { %28 = vst.msk [vmem:[#allocation0] sm:$0x1] %vm27_vm4, %v26_v16  }
  0x80   :  { %34 = vst.msk [vmem:[#allocation0] sm:$0x1] %vm33_vm5, %v32_v10  }
  0x81   :  { %40 = vst.msk [vmem:[#allocation0] sm:$0x1] %vm39_vm6, %v38_v11  }
  0x84   :  { %v44_v17 = vpop.permute.xlu0 %43   ;;  %v50_v18 = vpop.permute.xlu1 %49  }
  0x85   :  { %46 = vst.msk [vmem:[#allocation0] sm:$0x1] %vm45_vm7, %v44_v17  }
  0x86   :  { %52 = vst.msk [vmem:[#allocation0] sm:$0x1] %vm51_vm8, %v50_v18  }
  0x87   :  { %58 = vst.msk [vmem:[#allocation0] sm:$0x1] %vm57_vm9, %v56_v12  }
  0x8e   :  { %v61_v19 = vld [vmem:[#allocation0] sm:$0x1] }
  0x8f   :  { %64 = vst [vmem:[%s136_s1] sm:$0x1] %v61_v19 }

// kernel: upconv_block_forward.5
= control target key start
LH: loop header
LB: loop body
LE: loop exit
PB: predicated region body
PF: predicated region fallthrough
CT: control target
= control target key end

     0   :  { %s2106_s12 = smov 0   ;;  %s2705_s0 = inlined_call_operand.vmem [shape: bf16[2,176,80], index: 0, kind: input, shape index: {}]   ;;  %s2706_s1 = inlined_call_operand.vmem [shape: bf16[3,3,80,80], index: 1, kind: input, shape index: {}]   ;;  %s2707_s2 = inlined_call_operand.vmem [shape: f32[1,80], index: 2, kind: input, shape index: {}]   ;;  %s2708_s3 = inlined_call_operand.vmem [shape: bf16[2,128,80], index: 3, kind: output, shape index: {}]  }
   0x1 LB: > { %s1561_s13 = sadd.s32 4294967295, %s2084_s12   ;;  %p1565_p0 = scmp.ge.s32.totalorder %s2084_s12, 1  ;;  %s2084_s12 = sphi %s2106_s12, %s13_s12  }
   0x2   : > { %p137_p1 = scmp.lt.s32.totalorder %s2084_s12, 3 }
   0x4   : > { %p138_p2 = pnand %p1565_p0, %p137_p1 }
   0x6   : > { %141 = sbr.rel (%p138_p2) target bundleno = 491 (0x1eb), region = 32 }
   0xb   : > { %v2018_v0 = vld [vmem:[%s2706_s1 + $0x98] sm:$0xff]  ;;  %v2017_v1 = vld [vmem:[%s2706_s1 + $0x90] sm:$0xff]  ;;  %p161_p3 = scmp.lt.s32.totalorder %s1561_s13, 1  ;;  %v2016_v2 = vld [vmem:[%s2706_s1 + $0x88] sm:$0xff]  ;;  %vm310_vm0 = vcmask 654336   ;;  %vm1272_vm1 = vcmask 1046528  }
   0xc   : > { %2053 = vmatpush.bf16.msra.mxu1 %v2018_v0  ;;  %2054 = vmatpush.bf16.msra.mxu2 %v2018_v0  ;;  %v2015_v3 = vld [vmem:[%s2706_s1 + $0x80] sm:$0xff]  ;;  %v2014_v4 = vld [vmem:[%s2706_s1 + $0x78] sm:$0xff]  ;;  %v2007_v6 = vld [vmem:[%s2706_s1 + $0x48] sm:$0xff]  ;;  %vm1355_vm2 = vcmask 1045504   ;;  %vm1489_vm3 = vcmask 650240  }
   0xd   : > { %2055 = vmatpush.bf16.msra.mxu3 %v2018_v0  ;;  %341 = vmatpush.bf16.msra.mxu0 %v2018_v0  ;;  %s2736_s13 = smov (!%p161_p3, %s1561_s13), 1  ;;  %v2023_v5 = vld [vmem:[%s2706_s1 + $0xc0] sm:$0xff]  ;;  %v2028_v12 = vld [vmem:[%s2706_s1 + $0xe8] sm:$0xff]  ;;  %v2022_v13 = vld [vmem:[%s2706_s1 + $0xb8] sm:$0xff] }
   0xe   : > { %s2068_s22 = smul.u32 88, %s2736_s13  ;;  %v2002_v11 = vld [vmem:[%s2706_s1 + $0x20] sm:$0xff]  ;;  %v2001_v15 = vld [vmem:[%s2706_s1 + $0x18] sm:$0xff]  ;;  %v2021_v18 = vld [vmem:[%s2706_s1 + $0xb0] sm:$0xff]  ;;  %s1988_s10 = sshll.u32 %s2736_s13, 6 }
   0xf   : > { %v2006_v14 = vld [vmem:[%s2706_s1 + $0x40] sm:$0xff]  ;;  %v2005_v17 = vld [vmem:[%s2706_s1 + $0x38] sm:$0xff]  ;;  %v2000_v19 = vld [vmem:[%s2706_s1 + $0x10] sm:$0xff]  ;;  %s2576_s15 = scalar_lea.vmem %s2708_s3, %s1988_s10 }
  0x10   : > { %2056 = vmatpush.bf16.msra.mxu1 %v2017_v1  ;;  %2057 = vmatpush.bf16.msra.mxu2 %v2017_v1  ;;  %s2135_s27 = scalar_lea.vmem %s2705_s0, %s2068_s22  ;;  %v2027_v16 = vld [vmem:[%s2706_s1 + $0xe0] sm:$0xff]  ;;  %v2026_v20 = vld [vmem:[%s2706_s1 + $0xd8] sm:$0xff]  ;;  %v2004_v21 = vld [vmem:[%s2706_s1 + $0x30] sm:$0xff] }
  0x11   : > { %2058 = vmatpush.bf16.msra.mxu3 %v2017_v1  ;;  %342 = vmatpush.bf16.msra.mxu0 %v2017_v1  ;;  %v2144_v7 = vld [vmem:[%s2135_s27 + $0x18] sm:$0xff]  ;;  %v2147_v8 = vld [vmem:[%s2135_s27 + $0x28] sm:$0xff]  ;;  %v2150_v9 = vld [vmem:[%s2135_s27 + $0x40] sm:$0xff] }
  0x12   : > { %v2153_v10 = vld [vmem:[%s2135_s27 + $0x8] sm:$0xff]  ;;  %v2025_v24 = vld [vmem:[%s2706_s1 + $0xd0] sm:$0xff]  ;;  %v2019_v26 = vld [vmem:[%s2706_s1 + $0xa0] sm:$0xff] }
  0x13   : > { %v2020_v22 = vld [vmem:[%s2706_s1 + $0xa8] sm:$0xff]  ;;  %v2212_v27 = vld [vmem:[%s2135_s27 + $0x20] sm:$0xff]  ;;  %v2215_v28 = vld [vmem:[%s2135_s27 + $0x30] sm:$0xff] }
  0x14   : > { %2059 = vmatpush.bf16.msra.mxu1 %v2016_v2  ;;  %2060 = vmatpush.bf16.msra.mxu2 %v2016_v2  ;;  %v1999_v23 = vld [vmem:[%s2706_s1 + $0x8] sm:$0xff]  ;;  %v2221_v30 = vld [vmem:[%s2135_s27 + $0x10] sm:$0xff]  ;;  %v1998_v31 = vld [vmem:[%s2706_s1] sm:$0xff] }
  0x15   : > { %2061 = vmatpush.bf16.msra.mxu3 %v2016_v2  ;;  %343 = vmatpush.bf16.msra.mxu0 %v2016_v2  ;;  %v2003_v25 = vld [vmem:[%s2706_s1 + $0x28] sm:$0xff]  ;;  %v2047_v33 = vld [vmem:[%s2706_s1 + $0x138] sm:$0xff]  ;;  %v2012_v34 = vld [vmem:[%s2706_s1 + $0x70] sm:$0xff] }
  0x16   : > { %v2218_v29 = vld [vmem:[%s2135_s27 + $0x48] sm:$0xff]  ;;  %v2052_v35 = vld [vmem:[%s2706_s1 + $0x160] sm:$0xff]  ;;  %v2042_v36 = vld [vmem:[%s2706_s1 + $0x110] sm:$0xff] }
  0x17   : > { %v2024_v32 = vld [vmem:[%s2706_s1 + $0xc8] sm:$0xff]  ;;  %v2250_v37 = vld [vmem:[%s2135_s27 + $0x38] sm:$0xff]  ;;  %v2253_v38 = vld [vmem:[%s2135_s27] sm:$0xff] }
  0x18   : > { %2062 = vmatpush.bf16.msra.mxu1 %v2015_v3  ;;  %2063 = vmatpush.bf16.msra.mxu2 %v2015_v3  ;;  %v2046_v39 = vld [vmem:[%s2706_s1 + $0x130] sm:$0xff]  ;;  %v2011_v40 = vld [vmem:[%s2706_s1 + $0x68] sm:$0xff]  ;;  %v2051_v41 = vld [vmem:[%s2706_s1 + $0x158] sm:$0xff] }
  0x19   : > { %2064 = vmatpush.bf16.msra.mxu3 %v2015_v3  ;;  %344 = vmatpush.bf16.msra.mxu0 %v2015_v3  ;;  %v2041_v42 = vld [vmem:[%s2706_s1 + $0x108] sm:$0xff]  ;;  %v2010_v44 = vld [vmem:[%s2706_s1 + $0x60] sm:$0xff]  ;;  %v2050_v45 = vld [vmem:[%s2706_s1 + $0x150] sm:$0xff] }
  0x1a   : > { %v2045_v43 = vld [vmem:[%s2706_s1 + $0x128] sm:$0xff]  ;;  %v2040_v46 = vld [vmem:[%s2706_s1 + $0x100] sm:$0xff]  ;;  %v2009_v48 = vld [vmem:[%s2706_s1 + $0x58] sm:$0xff] }
  0x1b   : > { %v2044_v47 = vld [vmem:[%s2706_s1 + $0x120] sm:$0xff]  ;;  %v2049_v49 = vld [vmem:[%s2706_s1 + $0x148] sm:$0xff]  ;;  %v2039_v50 = vld [vmem:[%s2706_s1 + $0xf8] sm:$0xff] }
  0x1c   : > { %2065 = vmatpush.bf16.msra.mxu1 %v2014_v4  ;;  %2066 = vmatpush.bf16.msra.mxu2 %v2014_v4  ;;  %v2043_v51 = vld [vmem:[%s2706_s1 + $0x118] sm:$0xff]  ;;  %v2008_v54 = vld [vmem:[%s2706_s1 + $0x50] sm:$0xff]  ;;  %v2048_v55 = vld [vmem:[%s2706_s1 + $0x140] sm:$0xff] }
  0x1d   : > { %2067 = vmatpush.bf16.msra.mxu3 %v2014_v4  ;;  %345 = vmatpush.bf16.msra.mxu0 %v2014_v4  ;;  %v2038_v58 = vld [vmem:[%s2706_s1 + $0xf0] sm:$0xff] }
  0x1f   : > { %1657 = vmatmul.msk.bf16.vlgmr.msra.gmra.mxu1 %vm310_vm0, %v2144_v7  ;;  %1659 = vmatmul.msk.bf16.vlgmr.msra.gmra.mxu2 %vm310_vm0, %v2147_v8 }
  0x20   : > { %524 = vmatpush.bf16.msrb.mxu2 %v2023_v5  ;;  %1662 = vmatmul.msk.bf16.vlgmr.msra.gmra.mxu3 %vm310_vm0, %v2150_v9 }
  0x21   : > { %607 = vmatpush.bf16.msrb.mxu3 %v2007_v6  ;;  %1655 = vmatmul.msk.bf16.vlgmr.msra.gmra.mxu0 %vm310_vm0, %v2153_v10 }
  0x22   : > { %431 = vmatpush.bf16.msrb.mxu1 %v2002_v11  ;;  %701 = vmatpush.bf16.msrb.mxu0 %v2028_v12 }
  0x24   : > { %525 = vmatpush.bf16.msrb.mxu2 %v2022_v13 }
  0x25   : > { %608 = vmatpush.bf16.msrb.mxu3 %v2006_v14 }
  0x26   : > { %432 = vmatpush.bf16.msrb.mxu1 %v2001_v15  ;;  %702 = vmatpush.bf16.msrb.mxu0 %v2027_v16 }
  0x28   : > { %526 = vmatpush.bf16.msrb.mxu2 %v2021_v18 }
  0x29   : > { %609 = vmatpush.bf16.msrb.mxu3 %v2005_v17 }
  0x2a   : > { %433 = vmatpush.bf16.msrb.mxu1 %v2000_v19  ;;  %703 = vmatpush.bf16.msrb.mxu0 %v2026_v20 }
  0x2c   : > { %527 = vmatpush.bf16.msrb.mxu2 %v2020_v22  ;;  %v2029_v22 = vld [vmem:[%s2135_s27 + $0x10] sm:$0xff] }
  0x2d   : > { %610 = vmatpush.bf16.msrb.mxu3 %v2004_v21 }
  0x2e   : > { %434 = vmatpush.bf16.msrb.mxu1 %v1999_v23  ;;  %704 = vmatpush.bf16.msrb.mxu0 %v2025_v24 }
  0x2f   : > { %1658 = vmatmul.msk.bf16.gmra.mxu1 %vm310_vm0, %v2212_v27  ;;  %1660 = vmatmul.msk.bf16.gmra.mxu2 %vm310_vm0, %v2215_v28 }
  0x30   : > { %528 = vmatpush.bf16.msrb.mxu2 %v2019_v26  ;;  %1663 = vmatmul.msk.bf16.gmra.mxu3 %vm310_vm0, %v2218_v29 }
  0x31   : > { %611 = vmatpush.bf16.msrb.mxu3 %v2003_v25  ;;  %1656 = vmatmul.msk.bf16.gmra.mxu0 %vm310_vm0, %v2221_v30 }
  0x32   : > { %435 = vmatpush.bf16.msrb.mxu1 %v1998_v31  ;;  %705 = vmatpush.bf16.msrb.mxu0 %v2024_v32 }
  0x34   : > { %968 = vmatpush.bf16.msra.mxu2 %v2042_v36 }
  0x35   : > { %1077 = vmatpush.bf16.msra.mxu3 %v2047_v33 }
  0x36   : > { %784 = vmatpush.bf16.msra.mxu1 %v2012_v34  ;;  %1188 = vmatpush.bf16.msra.mxu0 %v2052_v35 }
  0x38   : > { %969 = vmatpush.bf16.msra.mxu2 %v2041_v42 }
  0x39   : > { %1078 = vmatpush.bf16.msra.mxu3 %v2046_v39 }
  0x3a   : > { %785 = vmatpush.bf16.msra.mxu1 %v2011_v40  ;;  %1189 = vmatpush.bf16.msra.mxu0 %v2051_v41  ;;  %v2030_v40 = vld [vmem:[%s2135_s27 + $0x18] sm:$0xff] }
  0x3c   : > { %970 = vmatpush.bf16.msra.mxu2 %v2040_v46 }
  0x3d   : > { %1079 = vmatpush.bf16.msra.mxu3 %v2045_v43 }
  0x3e   : > { %786 = vmatpush.bf16.msra.mxu1 %v2010_v44  ;;  %1190 = vmatpush.bf16.msra.mxu0 %v2050_v45 }
  0x3f   : > { %1661 = vmatmul.msk.bf16.gmra.mxu2 %vm310_vm0, %v2250_v37  ;;  %1688 = vmatmul.msk.bf16.vlgmr.msrb.gmra.mxu1 %vm310_vm0, %v2253_v38 }
  0x40   : > { %1756 = vmatmul.msk.bf16.vlgmr.msrb.gmra.mxu3 %vm310_vm0, %v2253_v38  ;;  %971 = vmatpush.bf16.msra.mxu2 %v2039_v50 }
  0x41   : > { %1795 = vmatmul.msk.bf16.vlgmr.msrb.gmra.mxu0 %vm310_vm0, %v2153_v10  ;;  %1080 = vmatpush.bf16.msra.mxu3 %v2044_v47 }
  0x42   : > { %787 = vmatpush.bf16.msra.mxu1 %v2009_v48  ;;  %1191 = vmatpush.bf16.msra.mxu0 %v2049_v49 }
  0x44   : > { %972 = vmatpush.bf16.msra.mxu2 %v2038_v58 }
  0x45   : > { %1081 = vmatpush.bf16.msra.mxu3 %v2043_v51  ;;  %v2031_v51 = vld [vmem:[%s2135_s27 + $0x20] sm:$0xff] }
  0x46   : > { %788 = vmatpush.bf16.msra.mxu1 %v2008_v54  ;;  %1192 = vmatpush.bf16.msra.mxu0 %v2048_v55 }
  0x4f   : > { %1689 = vmatmul.msk.bf16.gmra.mxu1 %vm310_vm0, %v2153_v10  ;;  %1727 = vmatmul.msk.bf16.vlgmr.msrb.gmra.mxu2 %vm310_vm0, %v2153_v10 }
  0x50   : > { %1757 = vmatmul.msk.bf16.gmra.mxu3 %vm310_vm0, %v2153_v10 }
  0x51   : > { %1796 = vmatmul.msk.bf16.gmra.mxu0 %vm310_vm0, %v2221_v30 }
  0x5f   : > { %1690 = vmatmul.msk.bf16.gmra.mxu1 %vm310_vm0, %v2221_v30  ;;  %1728 = vmatmul.msk.bf16.gmra.mxu2 %vm310_vm0, %v2221_v30 }
  0x60   : > { %1758 = vmatmul.msk.bf16.gmra.mxu3 %vm310_vm0, %v2221_v30 }
  0x61   : > { %1797 = vmatmul.msk.bf16.gmra.mxu0 %vm310_vm0, %v2144_v7 }
  0x6f   : > { %1691 = vmatmul.msk.bf16.gmra.mxu1 %vm310_vm0, %v2144_v7  ;;  %1729 = vmatmul.msk.bf16.gmra.mxu2 %vm310_vm0, %v2144_v7 }
  0x70   : > { %1759 = vmatmul.msk.bf16.gmra.mxu3 %vm310_vm0, %v2144_v7 }
  0x71   : > { %1798 = vmatmul.msk.bf16.gmra.mxu0 %vm310_vm0, %v2212_v27 }
  0x7f   : > { %1692 = vmatmul.msk.bf16.gmra.mxu1 %vm310_vm0, %v2212_v27  ;;  %1730 = vmatmul.msk.bf16.gmra.mxu2 %vm310_vm0, %v2212_v27 }
  0x80   : > { %1760 = vmatmul.msk.bf16.gmra.mxu3 %vm310_vm0, %v2212_v27 }
  0x81   : > { %1799 = vmatmul.msk.bf16.gmra.mxu0 %vm310_vm0, %v2147_v8 }
  0x8f   : > { %1693 = vmatmul.msk.bf16.gmra.mxu1 %vm310_vm0, %v2147_v8  ;;  %1731 = vmatmul.msk.bf16.gmra.mxu2 %vm310_vm0, %v2147_v8 }
  0x90   : > { %1761 = vmatmul.msk.bf16.gmra.mxu3 %vm310_vm0, %v2147_v8 }
  0x91   : > { %1800 = vmatmul.msk.bf16.gmra.mxu0 %vm310_vm0, %v2215_v28 }
  0x9c   : > { %v2342_v52 = vpop.f32.mrf.mxu1 }
  0x9e   : > { %v347_v53 = vpop.f32.mrf.mxu0 }
  0x9f   : > { %1694 = vmatmul.msk.bf16.gmra.mxu1 %vm310_vm0, %v2215_v28  ;;  %1732 = vmatmul.msk.bf16.gmra.mxu2 %vm310_vm0, %v2215_v28 }
  0xa0   : > { %1762 = vmatmul.msk.bf16.gmra.mxu3 %vm310_vm0, %v2215_v28 }
  0xa1   : > { %1801 = vmatmul.msk.bf16.gmra.mxu0 %vm310_vm0, %v2250_v37 }
  0xa2   : > { %v2358_v56 = vpop.f32.mrf.mxu2 }
  0xa3   : > { %v2360_v57 = vpop.f32.mrf.mxu3 }
  0xa4   : > { %2709 = vst [vmem:[#allocation2_spill] sm:$0xff] %v2360_v57  ;;  %v359_v59 = vpop.f32.mrf.mxu1 }
  0xa6   : > { %v349_v60 = vpop.f32.mrf.mxu0 }
  0xaa   : > { %v2365_v61 = vpop.f32.mrf.mxu2 }
  0xab   : > { %v2367_v62 = vpop.f32.mrf.mxu3 }
  0xac   : > { %2710 = vst [vmem:[#allocation3_spill] sm:$0xff] %v2367_v62  ;;  %v362_v63 = vpop.f32.mrf.mxu1 }
  0xae   : > { %v352_v0 = vpop.f32.mrf.mxu0 }
  0xaf   : > { %1695 = vmatmul.msk.bf16.gmra.mxu1 %vm310_vm0, %v2250_v37  ;;  %1733 = vmatmul.msk.bf16.gmra.mxu2 %vm310_vm0, %v2250_v37 }
  0xb0   : > { %1763 = vmatmul.msk.bf16.gmra.mxu3 %vm310_vm0, %v2250_v37 }
  0xb1   : > { %1802 = vmatmul.msk.bf16.gmra.mxu0 %vm310_vm0, %v2150_v9 }
  0xb2   : > { %v2377_v1 = vpop.f32.mrf.mxu2 }
  0xb3   : > { %v387_v2 = vpop.f32.mrf.mxu3 }
  0xb4   : > { %v2379_v3 = vpop.f32.mrf.mxu1 }
  0xb6   : > { %v354_v4 = vpop.f32.mrf.mxu0 }
  0xba   : > { %v2381_v5 = vpop.f32.mrf.mxu2 }
  0xbb   : > { %v388_v6 = vpop.f32.mrf.mxu3 }
  0xbc   : > { %v437_v11 = vpop.f32.mrf.mxu1  ;;  %v2032_v6 = vld [vmem:[%s2135_s27 + $0x28] sm:$0xff] }
  0xbd   : > { %v2383_v12 = vadd.f32 %v437_v11, %v347_v53 }
  0xbe   : > { %v2385_v13 = vpop.f32.mrf.mxu0 }
  0xbf   : > { %1696 = vmatmul.msk.bf16.gmra.mxu1 %vm310_vm0, %v2150_v9  ;;  %1734 = vmatmul.msk.bf16.gmra.mxu2 %vm310_vm0, %v2150_v9 }
  0xc0   : > { %1764 = vmatmul.msk.bf16.gmra.mxu3 %vm310_vm0, %v2150_v9 }
  0xc1   : > { %1803 = vmatmul.msk.bf16.gmra.mxu0 %vm310_vm0, %v2218_v29 }
  0xc2   : > { %v2395_v14 = vpop.f32.mrf.mxu2 }
  0xc3   : > { %v613_v15 = vpop.f32.mrf.mxu3 }
  0xc4   : > { %v439_v16 = vpop.f32.mrf.mxu1 }
  0xc5   : > { %v2397_v17 = vadd.f32 %v439_v16, %v349_v60 }
  0xc6   : > { %v2399_v18 = vpop.f32.mrf.mxu0 }
  0xca   : > { %v2401_v19 = vpop.f32.mrf.mxu2 }
  0xcb   : > { %2711 = vst [vmem:[#allocation4_spill] sm:$0xff] %v2401_v19  ;;  %v615_v20 = vpop.f32.mrf.mxu3 }
  0xcc   : > { %v442_v21 = vpop.f32.mrf.mxu1 }
  0xcd   : > { %v2404_v23 = vadd.f32 %v442_v21, %v352_v0 }
  0xce   : > { %v2406_v24 = vpop.f32.mrf.mxu0 }
  0xcf   : > { %1735 = vmatmul.msk.bf16.gmra.mxu2 %vm310_vm0, %v2218_v29  ;;  %1824 = vmatmul.msk.bf16.vlgmr.msra.gmra.mxu1 %vm310_vm0, %v2253_v38 }
  0xd0   : > { %1938 = vmatmul.msk.bf16.vlgmr.msra.gmra.mxu3 %vm310_vm0, %v2029_v22 }
  0xd1   : > { %1977 = vmatmul.msk.bf16.vlgmr.msra.gmra.mxu0 %vm310_vm0, %v2029_v22 }
  0xd2   : > { %v530_v25 = vpop.f32.mrf.mxu2 }
  0xd3   : > { %v2414_v26 = vadd.f32 %v613_v15, %v530_v25  ;;  %v618_v31 = vpop.f32.mrf.mxu3 }
  0xd4   : > { %v444_v32 = vpop.f32.mrf.mxu1 }
  0xd5   : > { %v2416_v33 = vadd.f32 %v444_v32, %v354_v4 }
  0xd6   : > { %v2418_v34 = vpop.f32.mrf.mxu0 }
  0xda   : > { %v532_v35 = vpop.f32.mrf.mxu2 }
  0xdb   : > { %v2420_v36 = vadd.f32 %v615_v20, %v532_v35  ;;  %v620_v29 = vpop.f32.mrf.mxu3 }
  0xdc   : > { %v447_v39 = vpop.f32.mrf.mxu1 }
  0xdd   : > { %v2424_v38 = vadd.f32 %v447_v39, %v2342_v52 }
  0xde   : > { %v2426_v41 = vpop.f32.mrf.mxu0 }
  0xdf   : > { %1825 = vmatmul.msk.bf16.gmra.mxu1 %vm310_vm0, %v2153_v10  ;;  %1899 = vmatmul.msk.bf16.vlgmr.msra.gmra.mxu2 %vm310_vm0, %v2029_v22 }
  0xe0   : > { %1939 = vmatmul.msk.bf16.gmra.mxu3 %vm310_vm0, %v2030_v40 }
  0xe1   : > { %1978 = vmatmul.msk.bf16.gmra.mxu0 %vm310_vm0, %v2030_v40 }
  0xe2   : > { %v535_v42 = vpop.f32.mrf.mxu2 }
  0xe3   : > { %v2433_v43 = vadd.f32 %v618_v31, %v535_v42  ;;  %v623_v44 = vpop.f32.mrf.mxu3 }
  0xe4   : > { %v449_v45 = vpop.f32.mrf.mxu1 }
  0xe5   : > { %v2435_v46 = vadd.f32 %v449_v45, %v359_v59 }
  0xe6   : > { %v2437_v47 = vpop.f32.mrf.mxu0 }
  0xea   : > { %v537_v48 = vpop.f32.mrf.mxu2 }
  0xeb   : > { %v2439_v49 = vadd.f32 %v620_v29, %v537_v48  ;;  %v625_v50 = vpop.f32.mrf.mxu3 }
  0xec   : > { %v452_v10 = vpop.f32.mrf.mxu1 }
  0xed   : > { %v2442_v52 = vadd.f32 %v452_v10, %v362_v63 }
  0xee   : > { %v2444_v53 = vpop.f32.mrf.mxu0 }
  0xef   : > { %1826 = vmatmul.msk.bf16.gmra.mxu1 %vm310_vm0, %v2221_v30  ;;  %1900 = vmatmul.msk.bf16.gmra.mxu2 %vm310_vm0, %v2030_v40 }
  0xf0   : > { %1940 = vmatmul.msk.bf16.gmra.mxu3 %vm310_vm0, %v2031_v51 }
  0xf1   : > { %1979 = vmatmul.msk.bf16.gmra.mxu0 %vm310_vm0, %v2031_v51 }
  0xf2   : > { %v540_v54 = vpop.f32.mrf.mxu2 }
  0xf3   : > { %v2451_v55 = vadd.f32 %v623_v44, %v540_v54  ;;  %v628_v58 = vpop.f32.mrf.mxu3 }
  0xf4   : > { %v454_v59 = vpop.f32.mrf.mxu1 }
  0xf5   : > { %v2454_v60 = vadd.f32 %v454_v59, %v2379_v3 }
  0xf6   : > { %v2456_v63 = vpop.f32.mrf.mxu0 }
  0xfa   : > { %v542_v0 = vpop.f32.mrf.mxu2 }
  0xfb   : > { %v2458_v2 = vadd.f32 %v625_v50, %v542_v0  ;;  %v630_v30 = vpop.f32.mrf.mxu3 }
  0xfc   : > { %v2460_v4 = vpop.f32.mrf.mxu1 }
  0xfe   : > { %v2463_v11 = vpop.f32.mrf.mxu0 }
  0xff   : > { %1827 = vmatmul.msk.bf16.gmra.mxu1 %vm310_vm0, %v2144_v7  ;;  %1901 = vmatmul.msk.bf16.gmra.mxu2 %vm310_vm0, %v2031_v51  ;;  %v2033_v7 = vld [vmem:[%s2135_s27 + $0x30] sm:$0xff] }
 0x100   : > { %1941 = vmatmul.msk.bf16.gmra.mxu3 %vm310_vm0, %v2032_v6 }
 0x101   : > { %1980 = vmatmul.msk.bf16.gmra.mxu0 %vm310_vm0, %v2032_v6 }
 0x102   : > { %v545_v3 = vpop.f32.mrf.mxu2 }
 0x103   : > { %v2470_v15 = vadd.f32 %v628_v58, %v545_v3  ;;  %v633_v16 = vpop.f32.mrf.mxu3 }
 0x104   : > { %v2472_v20 = vpop.f32.mrf.mxu1 }
 0x106   : > { %v2474_v21 = vpop.f32.mrf.mxu0 }
 0x10a   : > { %v547_v22 = vpop.f32.mrf.mxu2 }
 0x10b   : > { %v2476_v25 = vadd.f32 %v630_v30, %v547_v22  ;;  %v635_v31 = vpop.f32.mrf.mxu3 }
 0x10c   : > { %v2478_v32 = vpop.f32.mrf.mxu1 }
 0x10e   : > { %v2481_v35 = vpop.f32.mrf.mxu0 }
 0x10f   : > { %1828 = vmatmul.msk.bf16.gmra.mxu1 %vm310_vm0, %v2212_v27  ;;  %1902 = vmatmul.msk.bf16.gmra.mxu2 %vm310_vm0, %v2032_v6  ;;  %v2034_v27 = vld [vmem:[%s2135_s27 + $0x38] sm:$0xff] }
 0x110   : > { %1942 = vmatmul.msk.bf16.gmra.mxu3 %vm310_vm0, %v2033_v7 }
 0x111   : > { %1981 = vmatmul.msk.bf16.gmra.mxu0 %vm310_vm0, %v2033_v7 }
 0x112   : > { %v550_v29 = vpop.f32.mrf.mxu2 }
 0x113   : > { %v2488_v39 = vadd.f32 %v633_v16, %v550_v29  ;;  %v638_v40 = vpop.f32.mrf.mxu3 }
 0x114   : > { %v2490_v42 = vpop.f32.mrf.mxu1 }
 0x116   : > { %v2492_v44 = vpop.f32.mrf.mxu0 }
 0x11a   : > { %v552_v45 = vpop.f32.mrf.mxu2 }
 0x11b   : > { %v2494_v48 = vadd.f32 %v635_v31, %v552_v45  ;;  %v640_v50 = vpop.f32.mrf.mxu3 }
 0x11c   : > { %v2496_v10 = vpop.f32.mrf.mxu1 }
 0x11d   : > { %2712 = vst [vmem:[#allocation5_spill] sm:$0xff] %v2496_v10 }
 0x11e   : > { %v2499_v51 = vpop.f32.mrf.mxu0 }
 0x11f   : > { %1829 = vmatmul.msk.bf16.gmra.mxu1 %vm310_vm0, %v2147_v8  ;;  %1903 = vmatmul.msk.bf16.gmra.mxu2 %vm310_vm0, %v2033_v7  ;;  %v2035_v8 = vld [vmem:[%s2135_s27 + $0x40] sm:$0xff] }
 0x120   : > { %1943 = vmatmul.msk.bf16.gmra.mxu3 %vm310_vm0, %v2034_v27 }
 0x121   : > { %1982 = vmatmul.msk.bf16.gmra.mxu0 %vm310_vm0, %v2034_v27 }
 0x122   : > { %v555_v54 = vpop.f32.mrf.mxu2 }
 0x123   : > { %v2506_v58 = vadd.f32 %v638_v40, %v555_v54  ;;  %v643_v59 = vpop.f32.mrf.mxu3 }
 0x124   : > { %v2508_v0 = vpop.f32.mrf.mxu1 }
 0x125   : > { %2713 = vst [vmem:[#allocation6_spill] sm:$0xff] %v2508_v0  ;;  %v2037_v0 = vld [vmem:[%s2135_s27 + $0x50] sm:$0xff] }
 0x126   : > { %v2510_v30 = vpop.f32.mrf.mxu0 }
 0x12a   : > { %v557_v6 = vpop.f32.mrf.mxu2 }
 0x12b   : > { %v2512_v3 = vadd.f32 %v640_v50, %v557_v6  ;;  %v645_v16 = vpop.f32.mrf.mxu3 }
 0x12c   : > { %v2514_v22 = vpop.f32.mrf.mxu1 }
 0x12d   : > { %2714 = vst [vmem:[#allocation7_spill] sm:$0xff] %v2514_v22 }
 0x12e   : > { %v2517_v31 = vpop.f32.mrf.mxu0 }
 0x12f   : > { %2715 = vst [vmem:[#allocation8_spill] sm:$0xff] %v2517_v31  ;;  %1830 = vmatmul.msk.bf16.gmra.mxu1 %vm310_vm0, %v2215_v28  ;;  %1904 = vmatmul.msk.bf16.gmra.mxu2 %vm310_vm0, %v2034_v27  ;;  %v2036_v28 = vld [vmem:[%s2135_s27 + $0x48] sm:$0xff] }
 0x130   : > { %1944 = vmatmul.msk.bf16.gmra.mxu3 %vm310_vm0, %v2035_v8 }
 0x131   : > { %1983 = vmatmul.msk.bf16.gmra.mxu0 %vm310_vm0, %v2035_v8 }
 0x132   : > { %v560_v7 = vpop.f32.mrf.mxu2 }
 0x133   : > { %v2524_v29 = vadd.f32 %v643_v59, %v560_v7  ;;  %v648_v40 = vpop.f32.mrf.mxu3 }
 0x134   : > { %v2526_v45 = vpop.f32.mrf.mxu1 }
 0x135   : > { %2716 = vst [vmem:[#allocation9_spill] sm:$0xff] %v2526_v45 }
 0x136   : > { %v2528_v50 = vpop.f32.mrf.mxu0 }
 0x137   : > { %2717 = vst [vmem:[#allocation10_spill] sm:$0xff] %v2528_v50 }
 0x13a   : > { %v562_v54 = vpop.f32.mrf.mxu2 }
 0x13b   : > { %v2530_v6 = vadd.f32 %v645_v16, %v562_v54  ;;  %v650_v62 = vpop.f32.mrf.mxu3 }
 0x13c   : > { %v477_v22 = vpop.f32.mrf.mxu1 }
 0x13e   : > { %v2533_v27 = vpop.f32.mrf.mxu0 }
 0x13f   : > { %2718 = vst [vmem:[#allocation11_spill] sm:$0xff] %v2533_v27  ;;  %1831 = vmatmul.msk.bf16.gmra.mxu1 %vm310_vm0, %v2250_v37  ;;  %1905 = vmatmul.msk.bf16.gmra.mxu2 %vm310_vm0, %v2035_v8 }
 0x140   : > { %1945 = vmatmul.msk.bf16.gmra.mxu3 %vm310_vm0, %v2036_v28 }
 0x141   : > { %1984 = vmatmul.msk.bf16.gmra.mxu0 %vm310_vm0, %v2036_v28 }
 0x142   : > { %v565_v59 = vpop.f32.mrf.mxu2 }
 0x143   : > { %v2540_v7 = vadd.f32 %v648_v40, %v565_v59  ;;  %v653_v16 = vpop.f32.mrf.mxu3 }
 0x144   : > { %v478_v54 = vpop.f32.mrf.mxu1 }
 0x145   : > { %2719 = vst [vmem:[#allocation12_spill] sm:$0xff] %v2540_v7 }
 0x146   : > { %v749_v45 = vpop.f32.mrf.mxu0 }
 0x14a   : > { %v567_v22 = vpop.f32.mrf.mxu2 }
 0x14b   : > { %v2542_v57 = vadd.f32 %v650_v62, %v567_v22  ;;  %v655_v50 = vpop.f32.mrf.mxu3 }
 0x14c   : > { %v790_v27 = vpop.f32.mrf.mxu1 }
 0x14d   : > { %2720 = vst [vmem:[#allocation13_spill] sm:$0xff] %v2542_v57 }
 0x14e   : > { %v1194_v19 = vpop.f32.mrf.mxu0 }
 0x14f   : > { %1832 = vmatmul.msk.bf16.gmra.mxu1 %vm310_vm0, %v2150_v9  ;;  %1906 = vmatmul.msk.bf16.gmra.mxu2 %vm310_vm0, %v2036_v28  ;;  %v791_v9 = vadd.f32 %v790_v27, %v2385_v13 }
 0x150   : > { %1946 = vmatmul.msk.bf16.gmra.mxu3 %vm310_vm0, %v2037_v0 }
 0x151   : > { %1985 = vmatmul.msk.bf16.gmra.mxu0 %vm310_vm0, %v2037_v0 }
 0x152   : > { %v570_v37 = vpop.f32.mrf.mxu2 }
 0x153   : > { %v2550_v8 = vadd.f32 %v653_v16, %v570_v37  ;;  %v1083_v40 = vpop.f32.mrf.mxu3  ;;  %v1238_v37 = vadd.f32 %v1194_v19, %v791_v9  ;;  %v2564_v19 = vld [vmem:[%s2707_s2] ss:$0 sm:$0xff] }
 0x154   : > { %v792_v45 = vpop.f32.mrf.mxu1  ;;  %v1127_v50 = vadd.f32 %v1083_v40, %v2414_v26 }
 0x155   : > { %2721 = vst [vmem:[#allocation14_spill] sm:$0xff] %v2550_v8  ;;  %v793_v59 = vadd.f32 %v792_v45, %v2399_v18 }
 0x156   : > { %v1196_v62 = vpop.f32.mrf.mxu0  ;;  %v1273_v31 = vrot.slane %v1127_v50, 1 }
 0x157   : > { %v1239_v10 = vadd.f32 %v1196_v62, %v793_v59 }
 0x159   : > { %v1357_v26 = vrot.slane %v1239_v10, 2 }
 0x15a   : > { %v572_v54 = vpop.f32.mrf.mxu2 }
 0x15b   : > { %v1085_v22 = vpop.f32.mrf.mxu3 }
 0x15c   : > { %v1128_v28 = vadd.f32 %v1085_v22, %v2420_v36  ;;  %v795_v57 = vpop.f32.mrf.mxu1  ;;  %v1356_v36 = vrot.slane %v1238_v37, 2 }
 0x15d   : > { %v796_v18 = vadd.f32 %v795_v57, %v2406_v24 }
 0x15e   : > { %v1199_v7 = vpop.f32.mrf.mxu0  ;;  %v1274_v16 = vrot.slane %v1128_v28, 1  ;;  %v1358_v57 = vsel %vm1355_vm2, %v1356_v36, %v1357_v26 }
 0x15f   : > { %1907 = vmatmul.msk.bf16.gmra.mxu2 %vm310_vm0, %v2037_v0  ;;  %v1240_v10 = vadd.f32 %v1199_v7, %v796_v18 }
 0x160   : > { %v1275_v8 = vsel %vm1272_vm1, %v1273_v31, %v1274_v16 }
 0x161   : > { %v1359_v54 = vrot.slane %v1240_v10, 2 }
 0x162   : > { %v974_v40 = vpop.f32.mrf.mxu2 }
 0x163   : > { %v1017_v45 = vadd.f32 %v974_v40, %v2383_v12  ;;  %v1088_v13 = vpop.f32.mrf.mxu3 }
 0x164   : > { %v1129_v27 = vadd.f32 %v1088_v13, %v2433_v43  ;;  %v797_v50 = vpop.f32.mrf.mxu1 }
 0x165   : > { %v1322_v62 = vadd.f32 %v1275_v8, %v1017_v45  ;;  %v798_v43 = vadd.f32 %v797_v50, %v2418_v34 }
 0x166   : > { %v1201_v0 = vpop.f32.mrf.mxu0  ;;  %v1276_v24 = vrot.slane %v1129_v27, 1 }
 0x167   : > { %v1405_v31 = vadd.f32 %v1358_v57, %v1322_v62  ;;  %v1241_v34 = vadd.f32 %v1201_v0, %v798_v43 }
 0x168   : > { %v1277_v12 = vsel %vm1272_vm1, %v1274_v16, %v1276_v24  ;;  %v1360_v16 = vsel %vm1355_vm2, %v1357_v26, %v1359_v54 }
 0x169   : > { %v1425_v59 = vadd.f32 %v2564_v19, %v1405_v31  ;;  %v1361_v50 = vrot.slane %v1241_v34, 2 }
 0x16a   : > { %v976_v22 = vpop.f32.mrf.mxu2 }
 0x16b   : > { %v1441_v8 = vmul.f32 0.2, %v1425_v59  ;;  %v1018_v9 = vadd.f32 %v976_v22, %v2397_v17  ;;  %v1090_v28 = vpop.f32.mrf.mxu3 }
 0x16c   : > { %v1130_v37 = vadd.f32 %v1090_v28, %v2439_v49  ;;  %v800_v7 = vpop.f32.mrf.mxu1 }
 0x16d   : > { %v1457_v18 = vmax.f32 %v1425_v59, %v1441_v8  ;;  %v1323_v40 = vadd.f32 %v1277_v12, %v1018_v9  ;;  %v801_v62 = vadd.f32 %v800_v7, %v2426_v41  ;;  %v1362_v8 = vsel %vm1355_vm2, %v1359_v54, %v1361_v50 }
 0x16e   : > { %v1204_v45 = vpop.f32.mrf.mxu0  ;;  %v1278_v13 = vrot.slane %v1130_v37, 1 }
 0x16f   : > { %v1473_v36 = vpack.c.bf16 %v1457_v18, %v1457_v18  ;;  %v1406_v17 = vadd.f32 %v1360_v16, %v1323_v40 }
 0x170   : > { %v1279_v27 = vsel %vm1272_vm1, %v1276_v24, %v1278_v13  ;;  %v1242_v24 = vadd.f32 %v1204_v45, %v801_v62 }
 0x171   : > { %1490 = vst.msk [vmem:[%s2576_s15] sm:$0xf] %vm1489_vm3, %v1473_v36  ;;  %v1426_v49 = vadd.f32 %v2564_v19, %v1406_v17 }
 0x172   : > { %v979_v10 = vpop.f32.mrf.mxu2 }
 0x173   : > { %v1442_v57 = vmul.f32 0.2, %v1426_v49  ;;  %v1019_v31 = vadd.f32 %v979_v10, %v2404_v23  ;;  %v1093_v0 = vpop.f32.mrf.mxu3  ;;  %v1363_v23 = vrot.slane %v1242_v24, 2 }
 0x174   : > { %v1131_v26 = vadd.f32 %v1093_v0, %v2451_v55  ;;  %v802_v12 = vpop.f32.mrf.mxu1 }
 0x175   : > { %v1458_v59 = vmax.f32 %v1426_v49, %v1442_v57  ;;  %v1324_v43 = vadd.f32 %v1279_v27, %v1019_v31  ;;  %v803_v18 = vadd.f32 %v802_v12, %v2437_v47  ;;  %v1364_v49 = vsel %vm1355_vm2, %v1361_v50, %v1363_v23 }
 0x176   : > { %v1206_v22 = vpop.f32.mrf.mxu0  ;;  %v1280_v9 = vrot.slane %v1131_v26, 1 }
 0x177   : > { %v1474_v28 = vpack.c.bf16 %v1458_v59, %v1458_v59  ;;  %v1407_v37 = vadd.f32 %v1362_v8, %v1324_v43 }
 0x178   : > { %v1281_v41 = vsel %vm1272_vm1, %v1278_v13, %v1280_v9  ;;  %v1243_v13 = vadd.f32 %v1206_v22, %v803_v18 }
 0x179   : > { %1491 = vst.msk [vmem:[%s2576_s15 + $0x4] sm:$0xf] %vm1489_vm3, %v1474_v28  ;;  %v1427_v7 = vadd.f32 %v2564_v19, %v1407_v37 }
 0x17a   : > { %v981_v55 = vpop.f32.mrf.mxu2 }
 0x17b   : > { %v1443_v40 = vmul.f32 0.2, %v1427_v7  ;;  %v1020_v34 = vadd.f32 %v981_v55, %v2416_v33  ;;  %v1095_v45 = vpop.f32.mrf.mxu3  ;;  %v1365_v33 = vrot.slane %v1243_v13, 2 }
 0x17c   : > { %v1132_v54 = vadd.f32 %v1095_v45, %v2458_v2  ;;  %v805_v16 = vpop.f32.mrf.mxu1 }
 0x17d   : > { %v1459_v36 = vmax.f32 %v1427_v7, %v1443_v40  ;;  %v1325_v17 = vadd.f32 %v1281_v41, %v1020_v34  ;;  %v806_v0 = vadd.f32 %v805_v16, %v2444_v53  ;;  %v1366_v28 = vsel %vm1355_vm2, %v1363_v23, %v1365_v33 }
 0x17e   : > { %v1209_v27 = vpop.f32.mrf.mxu0  ;;  %v1282_v62 = vrot.slane %v1132_v54, 1 }
 0x17f   : > { %v1475_v10 = vpack.c.bf16 %v1459_v36, %v1459_v36  ;;  %v1408_v57 = vadd.f32 %v1364_v49, %v1325_v17 }
 0x180   : > { %v1283_v47 = vsel %vm1272_vm1, %v1280_v9, %v1282_v62  ;;  %v1244_v9 = vadd.f32 %v1209_v27, %v806_v0 }
 0x181   : > { %1492 = vst.msk [vmem:[%s2576_s15 + $0x8] sm:$0xf] %vm1489_vm3, %v1475_v10  ;;  %v1428_v31 = vadd.f32 %v2564_v19, %v1408_v57 }
 0x182   : > { %v984_v2 = vpop.f32.mrf.mxu2 }
 0x183   : > { %v1444_v26 = vmul.f32 0.2, %v1428_v31  ;;  %v1021_v12 = vadd.f32 %v984_v2, %v2424_v38  ;;  %v1098_v59 = vpop.f32.mrf.mxu3  ;;  %v1367_v38 = vrot.slane %v1244_v9, 2 }
 0x184   : > { %v1133_v50 = vadd.f32 %v1098_v59, %v2470_v15  ;;  %v807_v43 = vpop.f32.mrf.mxu1 }
 0x185   : > { %v1460_v22 = vmax.f32 %v1428_v31, %v1444_v26  ;;  %v1326_v24 = vadd.f32 %v1283_v47, %v1021_v12  ;;  %v808_v55 = vadd.f32 %v807_v43, %v2456_v63  ;;  %v1368_v13 = vsel %vm1355_vm2, %v1365_v33, %v1367_v38 }
 0x186   : > { %v1211_v8 = vpop.f32.mrf.mxu0  ;;  %v1284_v37 = vrot.slane %v1133_v50, 1 }
 0x187   : > { %v1476_v41 = vpack.c.bf16 %v1460_v22, %v1460_v22  ;;  %v1409_v7 = vadd.f32 %v1366_v28, %v1326_v24  ;;  %v1245_v27 = vadd.f32 %v1211_v8, %v808_v55 }
 0x188   : > { %v1285_v53 = vsel %vm1272_vm1, %v1282_v62, %v1284_v37 }
 0x189   : > { %1493 = vst.msk [vmem:[%s2576_s15 + $0xc] sm:$0xf] %vm1489_vm3, %v1476_v41  ;;  %v1429_v18 = vadd.f32 %v2564_v19, %v1409_v7 }
 0x18a   : > { %v986_v15 = vpop.f32.mrf.mxu2 }
 0x18b   : > { %v1445_v40 = vmul.f32 0.2, %v1429_v18  ;;  %v1022_v34 = vadd.f32 %v986_v15, %v2435_v46  ;;  %v1100_v45 = vpop.f32.mrf.mxu3  ;;  %v1369_v46 = vrot.slane %v1245_v27, 2 }
 0x18c   : > { %v1134_v23 = vadd.f32 %v1100_v45, %v2476_v25  ;;  %v810_v54 = vpop.f32.mrf.mxu1 }
 0x18d   : > { %v1461_v16 = vmax.f32 %v1429_v18, %v1445_v40  ;;  %v1327_v36 = vadd.f32 %v1285_v53, %v1022_v34  ;;  %v811_v47 = vadd.f32 %v810_v54, %v2463_v11  ;;  %v1370_v22 = vsel %vm1355_vm2, %v1367_v38, %v1369_v46 }
 0x18e   : > { %v1214_v17 = vpop.f32.mrf.mxu0  ;;  %v1286_v49 = vrot.slane %v1134_v23, 1 }
 0x18f   : > { %v1477_v62 = vpack.c.bf16 %v1461_v16, %v1461_v16  ;;  %v1410_v10 = vadd.f32 %v1368_v13, %v1327_v36  ;;  %v1246_v43 = vadd.f32 %v1214_v17, %v811_v47  ;;  %v458_v36 = vadd.f32 %v2460_v4, %v2358_v56 }
 0x190   : > { %v1287_v63 = vsel %vm1272_vm1, %v1284_v37, %v1286_v49 }
 0x191   : > { %1494 = vst.msk [vmem:[%s2576_s15 + $0x10] sm:$0xf] %vm1489_vm3, %v1477_v62  ;;  %v1430_v57 = vadd.f32 %v2564_v19, %v1410_v10 }
 0x192   : > { %v989_v25 = vpop.f32.mrf.mxu2 }
 0x193   : > { %v1446_v31 = vmul.f32 0.2, %v1430_v57  ;;  %v1023_v0 = vadd.f32 %v989_v25, %v2442_v52  ;;  %v1103_v2 = vpop.f32.mrf.mxu3  ;;  %v1371_v52 = vrot.slane %v1246_v43, 2 }
 0x194   : > { %v1135_v33 = vadd.f32 %v1103_v2, %v2488_v39  ;;  %v812_v26 = vpop.f32.mrf.mxu1 }
 0x195   : > { %v1462_v12 = vmax.f32 %v1430_v57, %v1446_v31  ;;  %v1328_v59 = vadd.f32 %v1287_v63, %v1023_v0  ;;  %v813_v37 = vadd.f32 %v812_v26, %v2474_v21  ;;  %v1372_v45 = vsel %vm1355_vm2, %v1369_v46, %v1371_v52 }
 0x196   : > { %v1216_v50 = vpop.f32.mrf.mxu0  ;;  %v1288_v24 = vrot.slane %v1135_v33, 1 }
 0x197   : > { %v1478_v8 = vpack.c.bf16 %v1462_v12, %v1462_v12  ;;  %v1411_v9 = vadd.f32 %v1370_v22, %v1328_v59  ;;  %v1247_v34 = vadd.f32 %v1216_v50, %v813_v37 }
 0x198   : > { %v1289_v11 = vsel %vm1272_vm1, %v1286_v49, %v1288_v24 }
 0x199   : > { %1495 = vst.msk [vmem:[%s2576_s15 + $0x14] sm:$0xf] %vm1489_vm3, %v1478_v8  ;;  %v1431_v28 = vadd.f32 %v2564_v19, %v1411_v9 }
 0x19a   : > { %v991_v39 = vpop.f32.mrf.mxu2 }
 0x19b   : > { %v1447_v41 = vmul.f32 0.2, %v1431_v28  ;;  %v1024_v7 = vadd.f32 %v991_v39, %v2454_v60  ;;  %v1105_v53 = vpop.f32.mrf.mxu3 }
 0x19c   : > { %v1136_v18 = vadd.f32 %v1105_v53, %v2494_v48  ;;  %v815_v38 = vpop.f32.mrf.mxu1  ;;  %v1373_v48 = vrot.slane %v1247_v34, 2 }
 0x19d   : > { %v1463_v55 = vmax.f32 %v1431_v28, %v1447_v41  ;;  %v1329_v15 = vadd.f32 %v1289_v11, %v1024_v7  ;;  %v816_v17 = vadd.f32 %v815_v38, %v2481_v35  ;;  %v460_v35 = vadd.f32 %v2472_v20, %v2365_v61 }
 0x19e   : > { %v1219_v40 = vpop.f32.mrf.mxu0  ;;  %v1290_v23 = vrot.slane %v1136_v18, 1  ;;  %v1374_v56 = vsel %vm1355_vm2, %v1371_v52, %v1373_v48 }
 0x19f   : > { %v1479_v54 = vpack.c.bf16 %v1463_v55, %v1463_v55  ;;  %v1412_v16 = vadd.f32 %v1372_v45, %v1329_v15  ;;  %v1248_v25 = vadd.f32 %v1219_v40, %v816_v17 }
 0x1a0   : > { %v1291_v21 = vsel %vm1272_vm1, %v1288_v24, %v1290_v23 }
 0x1a1   : > { %1496 = vst.msk [vmem:[%s2576_s15 + $0x18] sm:$0xf] %vm1489_vm3, %v1479_v54  ;;  %v1432_v60 = vadd.f32 %v2564_v19, %v1412_v16 }
 0x1a2   : > { %v994_v27 = vpop.f32.mrf.mxu2 }
 0x1a3   : > { %v1448_v13 = vmul.f32 0.2, %v1432_v60  ;;  %v1025_v49 = vadd.f32 %v994_v27, %v458_v36  ;;  %v1108_v62 = vpop.f32.mrf.mxu3 }
 0x1a4   : > { %v1137_v10 = vadd.f32 %v1108_v62, %v2506_v58  ;;  %v817_v63 = vpop.f32.mrf.mxu1  ;;  %v1375_v58 = vrot.slane %v1248_v25, 2 }
 0x1a5   : > { %v1464_v57 = vmax.f32 %v1432_v60, %v1448_v13  ;;  %v1330_v46 = vadd.f32 %v1291_v21, %v1025_v49  ;;  %v818_v26 = vadd.f32 %v817_v63, %v2492_v44  ;;  %v463_v44 = vadd.f32 %v2478_v32, %v2377_v1 }
 0x1a6   : > { %v1221_v47 = vpop.f32.mrf.mxu0  ;;  %v1292_v4 = vrot.slane %v1137_v10, 1  ;;  %v1376_v61 = vsel %vm1355_vm2, %v1373_v48, %v1375_v58 }
 0x1a7   : > { %v1480_v31 = vpack.c.bf16 %v1464_v57, %v1464_v57  ;;  %v1413_v0 = vadd.f32 %v1374_v56, %v1330_v46  ;;  %v1249_v28 = vadd.f32 %v1221_v47, %v818_v26 }
 0x1a8   : > { %v1293_v2 = vsel %vm1272_vm1, %v1290_v23, %v1292_v4 }
 0x1a9   : > { %1497 = vst.msk [vmem:[%s2576_s15 + $0x1c] sm:$0xf] %vm1489_vm3, %v1480_v31  ;;  %v1433_v33 = vadd.f32 %v2564_v19, %v1413_v0 }
 0x1aa   : > { %v996_v12 = vpop.f32.mrf.mxu2 }
 0x1ab   : > { %v1449_v59 = vmul.f32 0.2, %v1433_v33  ;;  %v1026_v50 = vadd.f32 %v996_v12, %v460_v35  ;;  %v1110_v43 = vpop.f32.mrf.mxu3 }
 0x1ac   : > { %v1138_v22 = vadd.f32 %v1110_v43, %v2512_v3  ;;  %v820_v24 = vpop.f32.mrf.mxu1  ;;  %v1377_v3 = vrot.slane %v1249_v28, 2 }
 0x1ad   : > { %v1465_v8 = vmax.f32 %v1433_v33, %v1449_v59  ;;  %v1331_v9 = vadd.f32 %v1293_v2, %v1026_v50  ;;  %v821_v7 = vadd.f32 %v820_v24, %v2499_v51  ;;  %v465_v51 = vadd.f32 %v2490_v42, %v2381_v5  ;;  %v2723_v2 = vld [vmem:[#allocation8_spill] sm:$0xff] }
 0x1ae   : > { %v1224_v11 = vpop.f32.mrf.mxu0  ;;  %v1294_v20 = vrot.slane %v1138_v22, 1  ;;  %v1378_v1 = vsel %vm1355_vm2, %v1375_v58, %v1377_v3  ;;  %v2724_v59 = vld [vmem:[#allocation12_spill] sm:$0xff] }
 0x1af   : > { %v1481_v52 = vpack.c.bf16 %v1465_v8, %v1465_v8  ;;  %v1414_v37 = vadd.f32 %v1376_v61, %v1331_v9  ;;  %v1250_v54 = vadd.f32 %v1224_v11, %v821_v7 }
 0x1b0   : > { %v1295_v39 = vsel %vm1272_vm1, %v1292_v4, %v1294_v20 }
 0x1b1   : > { %1498 = vst.msk [vmem:[%s2576_s15 + $0x20] sm:$0xf] %vm1489_vm3, %v1481_v52  ;;  %v1434_v41 = vadd.f32 %v2564_v19, %v1414_v37  ;;  %v2725_v52 = vld [vmem:[#allocation4_spill] sm:$0xff]  ;;  %v2726_v37 = vld [vmem:[#allocation6_spill] sm:$0xff] }
 0x1b2   : > { %v999_v53 = vpop.f32.mrf.mxu2 }
 0x1b3   : > { %v1450_v18 = vmul.f32 0.2, %v1434_v41  ;;  %v1027_v38 = vadd.f32 %v999_v53, %v463_v44  ;;  %v1113_v55 = vpop.f32.mrf.mxu3 }
 0x1b4   : > { %v1139_v15 = vadd.f32 %v1113_v55, %v2524_v29  ;;  %v822_v40 = vpop.f32.mrf.mxu1  ;;  %v1379_v29 = vrot.slane %v1250_v54, 2 }
 0x1b5   : > { %v1466_v34 = vmax.f32 %v1434_v41, %v1450_v18  ;;  %v1332_v45 = vadd.f32 %v1295_v39, %v1027_v38  ;;  %v823_v48 = vadd.f32 %v822_v40, %v2510_v30  ;;  %v2722_v30 = vld [vmem:[#allocation5_spill] sm:$0xff]  ;;  %v470_v39 = vadd.f32 %v2726_v37, %v2725_v52 }
 0x1b6   : > { %v1226_v23 = vpop.f32.mrf.mxu0  ;;  %v1296_v32 = vrot.slane %v1139_v15, 1  ;;  %v1380_v5 = vsel %vm1355_vm2, %v1377_v3, %v1379_v29  ;;  %v468_v31 = vadd.f32 %v2722_v30, %v2395_v14  ;;  %v2727_v3 = vld [vmem:[#allocation10_spill] sm:$0xff]  ;;  %v2728_v15 = vld [vmem:[#allocation13_spill] sm:$0xff] }
 0x1b7   : > { %v1482_v16 = vpack.c.bf16 %v1466_v34, %v1466_v34  ;;  %v1415_v21 = vadd.f32 %v1378_v1, %v1332_v45  ;;  %v1251_v47 = vadd.f32 %v1226_v23, %v823_v48 }
 0x1b8   : > { %v1297_v36 = vsel %vm1272_vm1, %v1294_v20, %v1296_v32 }
 0x1b9   : > { %1499 = vst.msk [vmem:[%s2576_s15 + $0x24] sm:$0xf] %vm1489_vm3, %v1482_v16  ;;  %v1435_v60 = vadd.f32 %v2564_v19, %v1415_v21 }
 0x1ba   : > { %v1001_v17 = vpop.f32.mrf.mxu2 }
 0x1bb   : > { %v1451_v27 = vmul.f32 0.2, %v1435_v60  ;;  %v1028_v13 = vadd.f32 %v1001_v17, %v465_v51  ;;  %v1115_v49 = vpop.f32.mrf.mxu3 }
 0x1bc   : > { %v1140_v62 = vadd.f32 %v1115_v49, %v2530_v6  ;;  %v825_v10 = vpop.f32.mrf.mxu1  ;;  %v1381_v6 = vrot.slane %v1251_v47, 2 }
 0x1bd   : > { %v1467_v63 = vmax.f32 %v1435_v60, %v1451_v27  ;;  %v1333_v57 = vadd.f32 %v1297_v36, %v1028_v13  ;;  %v826_v35 = vadd.f32 %v825_v10, %v2723_v2  ;;  %v2729_v60 = vld [vmem:[#allocation2_spill] sm:$0xff]  ;;  %v2731_v13 = vld [vmem:[#allocation11_spill] sm:$0xff] }
 0x1be   : > { %v1229_v46 = vpop.f32.mrf.mxu0  ;;  %v1298_v42 = vrot.slane %v1140_v62, 1  ;;  %v1382_v14 = vsel %vm1355_vm2, %v1379_v29, %v1381_v6  ;;  %v2730_v29 = vld [vmem:[#allocation7_spill] sm:$0xff] }
 0x1bf   : > { %v1483_v25 = vpack.c.bf16 %v1467_v63, %v1467_v63  ;;  %v1416_v56 = vadd.f32 %v1380_v5, %v1333_v57  ;;  %v1252_v9 = vadd.f32 %v1229_v46, %v826_v35  ;;  %v473_v48 = vadd.f32 %v2730_v29, %v2729_v60  ;;  %v2732_v46 = vld [vmem:[#allocation14_spill] sm:$0xff]  ;;  %v2733_v35 = vld [vmem:[#allocation3_spill] sm:$0xff] }
 0x1c0   : > { %v1299_v4 = vsel %vm1272_vm1, %v1296_v32, %v1298_v42 }
 0x1c1   : > { %1500 = vst.msk [vmem:[%s2576_s15 + $0x28] sm:$0xf] %vm1489_vm3, %v1483_v25  ;;  %v1436_v0 = vadd.f32 %v2564_v19, %v1416_v56  ;;  %v1383_v41 = vrot.slane %v1252_v9, 2 }
 0x1c2   : > { %v1004_v33 = vpop.f32.mrf.mxu2 }
 0x1c3   : > { %v1452_v58 = vmul.f32 0.2, %v1436_v0  ;;  %v1029_v26 = vadd.f32 %v1004_v33, %v468_v31  ;;  %v1118_v12 = vpop.f32.mrf.mxu3  ;;  %v1384_v32 = vsel %vm1355_vm2, %v1381_v6, %v1383_v41  ;;  %v2734_v33 = vld [vmem:[#allocation9_spill] sm:$0xff] }
 0x1c4   : > { %v1141_v50 = vadd.f32 %v1118_v12, %v2724_v59  ;;  %v827_v43 = vpop.f32.mrf.mxu1 }
 0x1c5   : > { %v1468_v22 = vmax.f32 %v1436_v0, %v1452_v58  ;;  %v1334_v24 = vadd.f32 %v1299_v4, %v1029_v26  ;;  %v828_v7 = vadd.f32 %v827_v43, %v2727_v3  ;;  %v475_v58 = vadd.f32 %v2734_v33, %v2733_v35 }
 0x1c6   : > { %v1231_v8 = vpop.f32.mrf.mxu0  ;;  %v1300_v11 = vrot.slane %v1141_v50, 1 }
 0x1c7   : > { %v1484_v28 = vpack.c.bf16 %v1468_v22, %v1468_v22  ;;  %v1417_v61 = vadd.f32 %v1382_v14, %v1334_v24  ;;  %v1253_v1 = vadd.f32 %v1231_v8, %v828_v7 }
 0x1c8   : > { %v1301_v20 = vsel %vm1272_vm1, %v1298_v42, %v1300_v11 }
 0x1c9   : > { %1501 = vst.msk [vmem:[%s2576_s15 + $0x2c] sm:$0xf] %vm1489_vm3, %v1484_v28  ;;  %v1437_v44 = vadd.f32 %v2564_v19, %v1417_v61  ;;  %v1385_v27 = vrot.slane %v1253_v1, 2 }
 0x1ca   : > { %v1006_v53 = vpop.f32.mrf.mxu2 }
 0x1cb   : > { %v1453_v18 = vmul.f32 0.2, %v1437_v44  ;;  %v1030_v38 = vadd.f32 %v1006_v53, %v470_v39  ;;  %v1120_v55 = vpop.f32.mrf.mxu3  ;;  %v1386_v30 = vsel %vm1355_vm2, %v1383_v41, %v1385_v27 }
 0x1cc   : > { %v1142_v40 = vadd.f32 %v1120_v55, %v2728_v15  ;;  %v830_v34 = vpop.f32.mrf.mxu1 }
 0x1cd   : > { %v1469_v45 = vmax.f32 %v1437_v44, %v1453_v18  ;;  %v1335_v23 = vadd.f32 %v1301_v20, %v1030_v38  ;;  %v831_v49 = vadd.f32 %v830_v34, %v2731_v13 }
 0x1ce   : > { %v1234_v54 = vpop.f32.mrf.mxu0  ;;  %v1302_v16 = vrot.slane %v1142_v40, 1 }
 0x1cf   : > { %v1485_v21 = vpack.c.bf16 %v1469_v45, %v1469_v45  ;;  %v1418_v36 = vadd.f32 %v1384_v32, %v1335_v23  ;;  %v1254_v4 = vadd.f32 %v1234_v54, %v831_v49 }
 0x1d0   : > { %v1303_v51 = vsel %vm1272_vm1, %v1300_v11, %v1302_v16 }
 0x1d1   : > { %1502 = vst.msk [vmem:[%s2576_s15 + $0x30] sm:$0xf] %vm1489_vm3, %v1485_v21  ;;  %v1438_v17 = vadd.f32 %v2564_v19, %v1418_v36  ;;  %v1387_v12 = vrot.slane %v1254_v4, 2 }
 0x1d2   : > { %v1009_v62 = vpop.f32.mrf.mxu2 }
 0x1d3   : > { %v1454_v10 = vmul.f32 0.2, %v1438_v17  ;;  %v1031_v63 = vadd.f32 %v1009_v62, %v473_v48  ;;  %v1123_v57 = vpop.f32.mrf.mxu3  ;;  %v1388_v9 = vsel %vm1355_vm2, %v1385_v27, %v1387_v12 }
 0x1d4   : > { %v1143_v47 = vadd.f32 %v1123_v57, %v2732_v46  ;;  %v832_v5 = vpop.f32.mrf.mxu1 }
 0x1d5   : > { %v1470_v42 = vmax.f32 %v1438_v17, %v1454_v10  ;;  %v1336_v25 = vadd.f32 %v1303_v51, %v1031_v63 }
 0x1d6   : > { %v1236_v56 = vpop.f32.mrf.mxu0  ;;  %v1304_v31 = vrot.slane %v1143_v47, 1 }
 0x1d7   : > { %v1486_v0 = vpack.c.bf16 %v1470_v42, %v1470_v42  ;;  %v1419_v6 = vadd.f32 %v1386_v30, %v1336_v25 }
 0x1d8   : > { %v1305_v2 = vsel %vm1272_vm1, %v1302_v16, %v1304_v31 }
 0x1d9   : > { %1503 = vst.msk [vmem:[%s2576_s15 + $0x34] sm:$0xf] %vm1489_vm3, %v1486_v0  ;;  %v1439_v26 = vadd.f32 %v2564_v19, %v1419_v6 }
 0x1da   : > { %v1011_v59 = vpop.f32.mrf.mxu2 }
 0x1db   : > { %v1455_v50 = vmul.f32 0.2, %v1439_v26  ;;  %v1032_v43 = vadd.f32 %v1011_v59, %v475_v58  ;;  %v1125_v22 = vpop.f32.mrf.mxu3 }
 0x1dd   : > { %v1471_v24 = vmax.f32 %v1439_v26, %v1455_v50  ;;  %v1337_v8 = vadd.f32 %v1305_v2, %v1032_v43 }
 0x1df   : > { %v1487_v14 = vpack.c.bf16 %v1471_v24, %v1471_v24  ;;  %v1420_v11 = vadd.f32 %v1388_v9, %v1337_v8 }
 0x1e1   : > { %1504 = vst.msk [vmem:[%s2576_s15 + $0x38] sm:$0xf] %vm1489_vm3, %v1487_v14  ;;  %v1440_v28 = vadd.f32 %v2564_v19, %v1420_v11 }
 0x1e2   : > { %v1014_v61 = vpop.f32.mrf.mxu2 }
 0x1e3   : > { %v1456_v20 = vmul.f32 0.2, %v1440_v28 }
 0x1e5   : > { %v1472_v52 = vmax.f32 %v1440_v28, %v1456_v20 }
 0x1e7   : > { %v1488_v37 = vpack.c.bf16 %v1472_v52, %v1472_v52 }
 0x1e9   : > { %1505 = vst.msk [vmem:[%s2576_s15 + $0x3c] sm:$0xf] %vm1489_vm3, %v1488_v37 }
 0x1ea   : > { %v1015_v39 = vpop.f32.mrf.mxu2 }
 0x1eb PF: > { %s13_s12 = sadd.s32 1, %s2084_s12  }
 0x1ec   : > { %p10_p4 = scmp.ge.s32.totalorder %s13_s12, 4  }
 0x1ee   :  { %12 = sbr.rel (!%p10_p4) target bundleno = 1 (0x1), region = 70 }

// kernel: tile.44
= control target key start
LH: loop header
LB: loop body
LE: loop exit
PB: predicated region body
PF: predicated region fallthrough
CT: control target
= control target key end

     0   :  { %s83_s10 = smov 72   ;;  %s84_s11 = smov 56   ;;  %vm3_vm0 = vcmask 64512   ;;  %vm9_vm1 = vcmask 654912   ;;  %vm15_vm2 = vcmask 589312   ;;  %vm21_vm3 = vcmask 523712   ;;  %s135_s0 = inlined_call_operand.vmem [shape: f32[10,8], index: 0, kind: input, shape index: {}]   ;;  %s136_s1 = inlined_call_operand.vmem [shape: f32[1,1,80], index: 1, kind: output, shape index: {}]  }
   0x1   :  { %v65_v0 = vld [vmem:[%s135_s0 + $0x9] sm:$0x1]   ;;  %v67_v1 = vld [vmem:[%s135_s0 + $0x7] sm:$0x1]   ;;  %v69_v2 = vld [vmem:[%s135_s0 + $0x5] sm:$0x1]  }
   0x2   :  { %7 = vrot.lane.b32.xlu0 %v65_v0, %s83_s10  ;;  %19 = vrot.lane.b32.xlu1 %v67_v1, %s84_s11  ;;  %s85_s14 = smov 40   ;;  %v66_v3 = vld [vmem:[%s135_s0 + $0x8] sm:$0x1]   ;;  %v68_v4 = vld [vmem:[%s135_s0 + $0x6] sm:$0x1]   ;;  %s86_s19 = smov 64  }
   0x3   :  { %31 = vrot.lane.b32.xlu2 %v69_v2, %s85_s14  ;;  %s87_s20 = smov 48   ;;  %v70_v5 = vld [vmem:[%s135_s0 + $0x4] sm:$0x1]   ;;  %s88_s23 = smov 32   ;;  %v71_v6 = vld [vmem:[%s135_s0 + $0x3] sm:$0x1]  }
   0x4   :  { %v72_v7 = vld [vmem:[%s135_s0 + $0x2] sm:$0x1]   ;;  %s89_s28 = smov 24   ;;  %s90_s29 = smov 16   ;;  %v73_v8 = vld [vmem:[%s135_s0 + $0x1] sm:$0x1]  }
   0x5   :  { %s91_s3 = smov 8   ;;  %v2_v9 = vld [vmem:[%s135_s0] sm:$0x1]   ;;  %vm27_vm4 = vcmask 458112   ;;  %vm33_vm5 = vcmask 392512   ;;  %vm39_vm6 = vcmask 326912  }
   0x6   :  { %4 = vst.msk [vmem:[#allocation0] sm:$0x1] %vm3_vm0, %v2_v9   ;;  %vm45_vm7 = vcmask 261312   ;;  %vm51_vm8 = vcmask 195712   ;;  %vm57_vm9 = vcmask 130112  }
   0xa   :  { %13 = vrot.lane.b32.xlu0 %v66_v3, %s86_s19  ;;  %25 = vrot.lane.b32.xlu1 %v68_v4, %s87_s20 }
   0xb   :  { %37 = vrot.lane.b32.xlu2 %v70_v5, %s88_s23 }
  0x12   :  { %43 = vrot.lane.b32.xlu0 %v71_v6, %s89_s28  ;;  %49 = vrot.lane.b32.xlu1 %v72_v7, %s90_s29 }
  0x13   :  { %55 = vrot.lane.b32.xlu2 %v73_v8, %s91_s3 }
  0x5d   :  { %v32_v10 = vpop.permute.xlu2 %31  }
  0x65   :  { %v38_v11 = vpop.permute.xlu2 %37  }
  0x6d   :  { %v56_v12 = vpop.permute.xlu2 %55  }
  0x74   :  { %v8_v13 = vpop.permute.xlu0 %7   ;;  %v20_v14 = vpop.permute.xlu1 %19  }
  0x75   :  { %10 = vst.msk [vmem:[#allocation0] sm:$0x1] %vm9_vm1, %v8_v13  }
  0x7c   :  { %v14_v15 = vpop.permute.xlu0 %13   ;;  %v26_v16 = vpop.permute.xlu1 %25  }
  0x7d   :  { %16 = vst.msk [vmem:[#allocation0] sm:$0x1] %vm15_vm2, %v14_v15  }
  0x7e   :  { %22 = vst.msk [vmem:[#allocation0] sm:$0x1] %vm21_vm3, %v20_v14  }
  0x7f   :  { %28 = vst.msk [vmem:[#allocation0] sm:$0x1] %vm27_vm4, %v26_v16  }
  0x80   :  { %34 = vst.msk [vmem:[#allocation0] sm:$0x1] %vm33_vm5, %v32_v10  }
  0x81   :  { %40 = vst.msk [vmem:[#allocation0] sm:$0x1] %vm39_vm6, %v38_v11  }
  0x84   :  { %v44_v17 = vpop.permute.xlu0 %43   ;;  %v50_v18 = vpop.permute.xlu1 %49  }
  0x85   :  { %46 = vst.msk [vmem:[#allocation0] sm:$0x1] %vm45_vm7, %v44_v17  }
  0x86   :  { %52 = vst.msk [vmem:[#allocation0] sm:$0x1] %vm51_vm8, %v50_v18  }
  0x87   :  { %58 = vst.msk [vmem:[#allocation0] sm:$0x1] %vm57_vm9, %v56_v12  }
  0x8e   :  { %v61_v19 = vld [vmem:[#allocation0] sm:$0x1] }
  0x8f   :  { %64 = vst [vmem:[%s136_s1] sm:$0x1] %v61_v19 }

// kernel: upconv_block_forward.7
= control target key start
LH: loop header
LB: loop body
LE: loop exit
PB: predicated region body
PF: predicated region fallthrough
CT: control target
= control target key end

     0   :  { %s405_s12 = smov 0   ;;  %s508_s0 = inlined_call_operand.vmem [shape: bf16[2,128,80], index: 0, kind: input, shape index: {}]   ;;  %s509_s1 = inlined_call_operand.vmem [shape: f32[1,1,80], index: 1, kind: input, shape index: {}]   ;;  %s510_s2 = inlined_call_operand.vmem [shape: f32[1,1,80], index: 2, kind: input, shape index: {}]   ;;  %s511_s3 = inlined_call_operand.vmem [shape: f32[2,128,80], index: 3, kind: output, shape index: {}]  }
   0x1 LB: > { %s315_s13 = sadd.s32 4294967295, %s383_s12   ;;  %p319_p0 = scmp.ge.s32.totalorder %s383_s12, 1  ;;  %s383_s12 = sphi %s405_s12, %s13_s12  }
   0x2   : > { %p137_p1 = scmp.lt.s32.totalorder %s383_s12, 3 }
   0x4   : > { %p138_p2 = pnand %p319_p0, %p137_p1 }
   0x5   : > { %p161_p3 = scmp.lt.s32.totalorder (!%p138_p2), %s315_s13, 1 }
   0x6   : > { %141 = sbr.rel (%p138_p2) target bundleno = 37 (0x25), region = 32 }
   0xb   : > { %s513_s13 = smov (!%p161_p3, %s315_s13), 1  ;;  %v421_v0 = vld [vmem:[%s509_s1] ss:$0 sm:$0xff]  ;;  %vm243_vm0 = vcmask 654336  }
   0xc   : > { %s326_s14 = sshll.u32 %s513_s13, 6  ;;  %s327_s20 = sshll.u32 %s513_s13, 7  ;;  %v429_v5 = vld [vmem:[%s510_s2] ss:$0 sm:$0xff] }
   0xd   : > { %s416_s17 = scalar_lea.vmem %s508_s0, %s326_s14  ;;  %s439_s25 = scalar_lea.vmem %s511_s3, %s327_s20 }
   0xe   : > { %v329_v1 = vld [vmem:[%s416_s17] sm:$0xff]   ;;  %v360_v2 = vld [vmem:[%s416_s17 + $0x8] sm:$0xff]   ;;  %v361_v3 = vld [vmem:[%s416_s17 + $0x10] sm:$0xff]  }
   0xf   : > { %v330_v4 = vunpack.c.l.bf16 %v329_v1  ;;  %v331_v6 = vunpack.c.h.bf16 %v329_v1  ;;  %v334_v7 = vunpack.c.l.bf16 %v360_v2  ;;  %v335_v8 = vunpack.c.h.bf16 %v360_v2  ;;  %v362_v9 = vld [vmem:[%s416_s17 + $0x18] sm:$0xff]   ;;  %v363_v21 = vld [vmem:[%s416_s17 + $0x20] sm:$0xff]   ;;  %v364_v22 = vld [vmem:[%s416_s17 + $0x28] sm:$0xff]  }
  0x10   : > { %v338_v10 = vunpack.c.l.bf16 %v361_v3  ;;  %v339_v11 = vunpack.c.h.bf16 %v361_v3  ;;  %v342_v12 = vunpack.c.l.bf16 %v362_v9  ;;  %v343_v13 = vunpack.c.h.bf16 %v362_v9  ;;  %v365_v26 = vld [vmem:[%s416_s17 + $0x30] sm:$0xff]   ;;  %v366_v30 = vld [vmem:[%s416_s17 + $0x38] sm:$0xff]  }
  0x11   : > { %v207_v14 = vmul.f32 %v421_v0, %v330_v4  ;;  %v208_v15 = vmul.f32 %v421_v0, %v331_v6  ;;  %v209_v16 = vmul.f32 %v421_v0, %v334_v7  ;;  %v210_v17 = vmul.f32 %v421_v0, %v335_v8 }
  0x12   : > { %v211_v18 = vmul.f32 %v421_v0, %v338_v10  ;;  %v212_v19 = vmul.f32 %v421_v0, %v339_v11  ;;  %v213_v20 = vmul.f32 %v421_v0, %v342_v12  ;;  %v214_v29 = vmul.f32 %v421_v0, %v343_v13 }
  0x13   : > { %v227_v23 = vadd.f32 %v429_v5, %v207_v14  ;;  %v228_v24 = vadd.f32 %v429_v5, %v208_v15  ;;  %v229_v25 = vadd.f32 %v429_v5, %v209_v16  ;;  %v230_v27 = vadd.f32 %v429_v5, %v210_v17 }
  0x14   : > { %v231_v28 = vadd.f32 %v429_v5, %v211_v18  ;;  %v346_v31 = vunpack.c.l.bf16 %v363_v21  ;;  %v347_v32 = vunpack.c.h.bf16 %v363_v21  ;;  %v350_v33 = vunpack.c.l.bf16 %v364_v22 }
  0x15   : > { %244 = vst.msk [vmem:[%s439_s25] sm:$0xff] %vm243_vm0, %v227_v23  ;;  %v351_v34 = vunpack.c.h.bf16 %v364_v22  ;;  %v232_v35 = vadd.f32 %v429_v5, %v212_v19  ;;  %v233_v36 = vadd.f32 %v429_v5, %v213_v20  ;;  %v354_v37 = vunpack.c.l.bf16 %v365_v26 }
  0x16   : > { %245 = vst.msk [vmem:[%s439_s25 + $0x8] sm:$0xff] %vm243_vm0, %v228_v24  ;;  %v355_v38 = vunpack.c.h.bf16 %v365_v26  ;;  %v215_v39 = vmul.f32 %v421_v0, %v346_v31  ;;  %v216_v40 = vmul.f32 %v421_v0, %v347_v32  ;;  %v217_v41 = vmul.f32 %v421_v0, %v350_v33 }
  0x17   : > { %246 = vst.msk [vmem:[%s439_s25 + $0x10] sm:$0xff] %vm243_vm0, %v229_v25  ;;  %v358_v42 = vunpack.c.l.bf16 %v366_v30  ;;  %v234_v43 = vadd.f32 %v429_v5, %v214_v29  ;;  %v218_v44 = vmul.f32 %v421_v0, %v351_v34  ;;  %v359_v45 = vunpack.c.h.bf16 %v366_v30 }
  0x18   : > { %247 = vst.msk [vmem:[%s439_s25 + $0x18] sm:$0xff] %vm243_vm0, %v230_v27  ;;  %v235_v46 = vadd.f32 %v429_v5, %v215_v39  ;;  %v219_v47 = vmul.f32 %v421_v0, %v354_v37  ;;  %v236_v48 = vadd.f32 %v429_v5, %v216_v40  ;;  %v220_v49 = vmul.f32 %v421_v0, %v355_v38 }
  0x19   : > { %248 = vst.msk [vmem:[%s439_s25 + $0x20] sm:$0xff] %vm243_vm0, %v231_v28  ;;  %v237_v50 = vadd.f32 %v429_v5, %v217_v41  ;;  %v221_v51 = vmul.f32 %v421_v0, %v358_v42  ;;  %v238_v52 = vadd.f32 %v429_v5, %v218_v44  ;;  %v222_v53 = vmul.f32 %v421_v0, %v359_v45 }
  0x1a   : > { %249 = vst.msk [vmem:[%s439_s25 + $0x28] sm:$0xff] %vm243_vm0, %v232_v35  ;;  %v239_v54 = vadd.f32 %v429_v5, %v219_v47  ;;  %v240_v55 = vadd.f32 %v429_v5, %v220_v49 }
  0x1b   : > { %250 = vst.msk [vmem:[%s439_s25 + $0x30] sm:$0xff] %vm243_vm0, %v233_v36  ;;  %v241_v56 = vadd.f32 %v429_v5, %v221_v51  ;;  %v242_v57 = vadd.f32 %v429_v5, %v222_v53 }
  0x1c   : > { %251 = vst.msk [vmem:[%s439_s25 + $0x38] sm:$0xff] %vm243_vm0, %v234_v43 }
  0x1d   : > { %252 = vst.msk [vmem:[%s439_s25 + $0x40] sm:$0xff] %vm243_vm0, %v235_v46 }
  0x1e   : > { %253 = vst.msk [vmem:[%s439_s25 + $0x48] sm:$0xff] %vm243_vm0, %v236_v48 }
  0x1f   : > { %254 = vst.msk [vmem:[%s439_s25 + $0x50] sm:$0xff] %vm243_vm0, %v237_v50 }
  0x20   : > { %255 = vst.msk [vmem:[%s439_s25 + $0x58] sm:$0xff] %vm243_vm0, %v238_v52 }
  0x21   : > { %256 = vst.msk [vmem:[%s439_s25 + $0x60] sm:$0xff] %vm243_vm0, %v239_v54 }
  0x22   : > { %257 = vst.msk [vmem:[%s439_s25 + $0x68] sm:$0xff] %vm243_vm0, %v240_v55 }
  0x23   : > { %258 = vst.msk [vmem:[%s439_s25 + $0x70] sm:$0xff] %vm243_vm0, %v241_v56 }
  0x24   : > { %259 = vst.msk [vmem:[%s439_s25 + $0x78] sm:$0xff] %vm243_vm0, %v242_v57 }
  0x25 PF: > { %s13_s12 = sadd.s32 1, %s383_s12  }
  0x26   : > { %p10_p4 = scmp.ge.s32.totalorder %s13_s12, 4  }
  0x28   :  { %12 = sbr.rel (!%p10_p4) target bundleno = 1 (0x1), region = 62 }

// kernel: upconv_block_forward.6
= control target key start
LH: loop header
LB: loop body
LE: loop exit
PB: predicated region body
PF: predicated region fallthrough
CT: control target
= control target key end

     0   :  { %s2548_s15 = smov 0   ;;  %s3167_s0 = inlined_call_operand.vmem [shape: bf16[2,176,80], index: 0, kind: input, shape index: {}]   ;;  %s3168_s1 = inlined_call_operand.vmem [shape: bf16[3,3,80,80], index: 1, kind: input, shape index: {}]   ;;  %s3169_s2 = inlined_call_operand.vmem [shape: f32[1,80], index: 2, kind: input, shape index: {}]   ;;  %s3170_s3 = inlined_call_operand.vmem [shape: bf16[2,128,80], index: 3, kind: output, shape index: {0}]   ;;  %s3171_s4 = inlined_call_operand.vmem [shape: f32[2,2,80], index: 4, kind: output, shape index: {1}]  }
   0x1 LB: > { %s1997_s16 = sadd.s32 4294967295, %s2521_s15   ;;  %p2001_p0 = scmp.ge.s32.totalorder %s2521_s15, 1  ;;  %s2521_s15 = sphi %s2548_s15, %s15_s15  }
   0x2   : > { %p165_p1 = scmp.lt.s32.totalorder %s2521_s15, 3 }
   0x4   : > { %p166_p2 = pnand %p2001_p0, %p165_p1 }
   0x6   : > { %169 = sbr.rel (%p166_p2) target bundleno = 498 (0x1f2), region = 32 }
   0xb   : > { %v2455_v0 = vld [vmem:[%s3168_s1 + $0x98] sm:$0xff]  ;;  %v2454_v1 = vld [vmem:[%s3168_s1 + $0x90] sm:$0xff]  ;;  %p195_p3 = scmp.lt.s32.totalorder %s1997_s16, 1  ;;  %v2453_v2 = vld [vmem:[%s3168_s1 + $0x88] sm:$0xff]  ;;  %vm348_vm0 = vcmask 654336   ;;  %vm1310_vm1 = vcmask 1046528  }
   0xc   : > { %2490 = vmatpush.bf16.msra.mxu1 %v2455_v0  ;;  %2491 = vmatpush.bf16.msra.mxu2 %v2455_v0  ;;  %v2452_v3 = vld [vmem:[%s3168_s1 + $0x80] sm:$0xff]  ;;  %v2451_v4 = vld [vmem:[%s3168_s1 + $0x78] sm:$0xff]  ;;  %v2444_v6 = vld [vmem:[%s3168_s1 + $0x48] sm:$0xff]  ;;  %vm1393_vm2 = vcmask 1045504   ;;  %vm1527_vm3 = vcmask 650240   ;;  %vm1907_vm4 = vcmask 1040384  }
   0xd   : > { %2492 = vmatpush.bf16.msra.mxu3 %v2455_v0  ;;  %379 = vmatpush.bf16.msra.mxu0 %v2455_v0  ;;  %s3199_s16 = smov (!%p195_p3, %s1997_s16), 1  ;;  %v2460_v5 = vld [vmem:[%s3168_s1 + $0xc0] sm:$0xff]  ;;  %v2465_v12 = vld [vmem:[%s3168_s1 + $0xe8] sm:$0xff]  ;;  %v2459_v13 = vld [vmem:[%s3168_s1 + $0xb8] sm:$0xff]  ;;  %vm1909_vm5 = vcmask 648192  }
   0xe   : > { %s2505_s25 = smul.u32 88, %s3199_s16  ;;  %v2439_v11 = vld [vmem:[%s3168_s1 + $0x20] sm:$0xff]  ;;  %v2438_v15 = vld [vmem:[%s3168_s1 + $0x18] sm:$0xff]  ;;  %v2458_v18 = vld [vmem:[%s3168_s1 + $0xb0] sm:$0xff]  ;;  %s2425_s19 = sshll.u32 %s3199_s16, 6 }
   0xf   : > { %v2443_v14 = vld [vmem:[%s3168_s1 + $0x40] sm:$0xff]  ;;  %v2442_v17 = vld [vmem:[%s3168_s1 + $0x38] sm:$0xff]  ;;  %v2437_v19 = vld [vmem:[%s3168_s1 + $0x10] sm:$0xff]  ;;  %s3018_s22 = scalar_lea.vmem %s3170_s3, %s2425_s19  ;;  %s2005_s23 = sshll.u32 %s3199_s16, 1 }
  0x10   : > { %2493 = vmatpush.bf16.msra.mxu1 %v2454_v1  ;;  %2494 = vmatpush.bf16.msra.mxu2 %v2454_v1  ;;  %s2577_s30 = scalar_lea.vmem %s3167_s0, %s2505_s25  ;;  %v2464_v16 = vld [vmem:[%s3168_s1 + $0xe0] sm:$0xff]  ;;  %v2463_v20 = vld [vmem:[%s3168_s1 + $0xd8] sm:$0xff]  ;;  %v2441_v21 = vld [vmem:[%s3168_s1 + $0x30] sm:$0xff]  ;;  %s208_s26 = scalar_lea.vmem %s3171_s4, %s2005_s23 }
  0x11   : > { %2495 = vmatpush.bf16.msra.mxu3 %v2454_v1  ;;  %380 = vmatpush.bf16.msra.mxu0 %v2454_v1  ;;  %v2586_v7 = vld [vmem:[%s2577_s30 + $0x18] sm:$0xff]  ;;  %v2589_v8 = vld [vmem:[%s2577_s30 + $0x28] sm:$0xff]  ;;  %v2592_v9 = vld [vmem:[%s2577_s30 + $0x40] sm:$0xff] }
  0x12   : > { %v2595_v10 = vld [vmem:[%s2577_s30 + $0x8] sm:$0xff]  ;;  %v2462_v24 = vld [vmem:[%s3168_s1 + $0xd0] sm:$0xff]  ;;  %v2456_v26 = vld [vmem:[%s3168_s1 + $0xa0] sm:$0xff] }
  0x13   : > { %v2457_v22 = vld [vmem:[%s3168_s1 + $0xa8] sm:$0xff]  ;;  %v2654_v27 = vld [vmem:[%s2577_s30 + $0x20] sm:$0xff]  ;;  %v2657_v28 = vld [vmem:[%s2577_s30 + $0x30] sm:$0xff] }
  0x14   : > { %2496 = vmatpush.bf16.msra.mxu1 %v2453_v2  ;;  %2497 = vmatpush.bf16.msra.mxu2 %v2453_v2  ;;  %v2436_v23 = vld [vmem:[%s3168_s1 + $0x8] sm:$0xff]  ;;  %v2663_v30 = vld [vmem:[%s2577_s30 + $0x10] sm:$0xff]  ;;  %v2435_v31 = vld [vmem:[%s3168_s1] sm:$0xff] }
  0x15   : > { %2498 = vmatpush.bf16.msra.mxu3 %v2453_v2  ;;  %381 = vmatpush.bf16.msra.mxu0 %v2453_v2  ;;  %v2440_v25 = vld [vmem:[%s3168_s1 + $0x28] sm:$0xff]  ;;  %v2484_v33 = vld [vmem:[%s3168_s1 + $0x138] sm:$0xff]  ;;  %v2449_v34 = vld [vmem:[%s3168_s1 + $0x70] sm:$0xff] }
  0x16   : > { %v2660_v29 = vld [vmem:[%s2577_s30 + $0x48] sm:$0xff]  ;;  %v2489_v35 = vld [vmem:[%s3168_s1 + $0x160] sm:$0xff]  ;;  %v2479_v36 = vld [vmem:[%s3168_s1 + $0x110] sm:$0xff] }
  0x17   : > { %v2461_v32 = vld [vmem:[%s3168_s1 + $0xc8] sm:$0xff]  ;;  %v2692_v37 = vld [vmem:[%s2577_s30 + $0x38] sm:$0xff]  ;;  %v2695_v38 = vld [vmem:[%s2577_s30] sm:$0xff] }
  0x18   : > { %2499 = vmatpush.bf16.msra.mxu1 %v2452_v3  ;;  %2500 = vmatpush.bf16.msra.mxu2 %v2452_v3  ;;  %v2483_v39 = vld [vmem:[%s3168_s1 + $0x130] sm:$0xff]  ;;  %v2448_v40 = vld [vmem:[%s3168_s1 + $0x68] sm:$0xff]  ;;  %v2488_v41 = vld [vmem:[%s3168_s1 + $0x158] sm:$0xff] }
  0x19   : > { %2501 = vmatpush.bf16.msra.mxu3 %v2452_v3  ;;  %382 = vmatpush.bf16.msra.mxu0 %v2452_v3  ;;  %v2478_v42 = vld [vmem:[%s3168_s1 + $0x108] sm:$0xff]  ;;  %v2447_v44 = vld [vmem:[%s3168_s1 + $0x60] sm:$0xff]  ;;  %v2487_v45 = vld [vmem:[%s3168_s1 + $0x150] sm:$0xff] }
  0x1a   : > { %v2482_v43 = vld [vmem:[%s3168_s1 + $0x128] sm:$0xff]  ;;  %v2477_v46 = vld [vmem:[%s3168_s1 + $0x100] sm:$0xff]  ;;  %v2446_v48 = vld [vmem:[%s3168_s1 + $0x58] sm:$0xff] }
  0x1b   : > { %v2481_v47 = vld [vmem:[%s3168_s1 + $0x120] sm:$0xff]  ;;  %v2486_v49 = vld [vmem:[%s3168_s1 + $0x148] sm:$0xff]  ;;  %v2476_v50 = vld [vmem:[%s3168_s1 + $0xf8] sm:$0xff] }
  0x1c   : > { %2502 = vmatpush.bf16.msra.mxu1 %v2451_v4  ;;  %2503 = vmatpush.bf16.msra.mxu2 %v2451_v4  ;;  %v2480_v51 = vld [vmem:[%s3168_s1 + $0x118] sm:$0xff]  ;;  %v2445_v54 = vld [vmem:[%s3168_s1 + $0x50] sm:$0xff]  ;;  %v2485_v55 = vld [vmem:[%s3168_s1 + $0x140] sm:$0xff] }
  0x1d   : > { %2504 = vmatpush.bf16.msra.mxu3 %v2451_v4  ;;  %383 = vmatpush.bf16.msra.mxu0 %v2451_v4  ;;  %v2475_v58 = vld [vmem:[%s3168_s1 + $0xf0] sm:$0xff] }
  0x1f   : > { %2094 = vmatmul.msk.bf16.vlgmr.msra.gmra.mxu1 %vm348_vm0, %v2586_v7  ;;  %2096 = vmatmul.msk.bf16.vlgmr.msra.gmra.mxu2 %vm348_vm0, %v2589_v8 }
  0x20   : > { %562 = vmatpush.bf16.msrb.mxu2 %v2460_v5  ;;  %2099 = vmatmul.msk.bf16.vlgmr.msra.gmra.mxu3 %vm348_vm0, %v2592_v9 }
  0x21   : > { %645 = vmatpush.bf16.msrb.mxu3 %v2444_v6  ;;  %2092 = vmatmul.msk.bf16.vlgmr.msra.gmra.mxu0 %vm348_vm0, %v2595_v10 }
  0x22   : > { %469 = vmatpush.bf16.msrb.mxu1 %v2439_v11  ;;  %739 = vmatpush.bf16.msrb.mxu0 %v2465_v12 }
  0x24   : > { %563 = vmatpush.bf16.msrb.mxu2 %v2459_v13 }
  0x25   : > { %646 = vmatpush.bf16.msrb.mxu3 %v2443_v14 }
  0x26   : > { %470 = vmatpush.bf16.msrb.mxu1 %v2438_v15  ;;  %740 = vmatpush.bf16.msrb.mxu0 %v2464_v16 }
  0x28   : > { %564 = vmatpush.bf16.msrb.mxu2 %v2458_v18 }
  0x29   : > { %647 = vmatpush.bf16.msrb.mxu3 %v2442_v17 }
  0x2a   : > { %471 = vmatpush.bf16.msrb.mxu1 %v2437_v19  ;;  %741 = vmatpush.bf16.msrb.mxu0 %v2463_v20 }
  0x2c   : > { %565 = vmatpush.bf16.msrb.mxu2 %v2457_v22  ;;  %v2466_v22 = vld [vmem:[%s2577_s30 + $0x10] sm:$0xff] }
  0x2d   : > { %648 = vmatpush.bf16.msrb.mxu3 %v2441_v21 }
  0x2e   : > { %472 = vmatpush.bf16.msrb.mxu1 %v2436_v23  ;;  %742 = vmatpush.bf16.msrb.mxu0 %v2462_v24 }
  0x2f   : > { %2095 = vmatmul.msk.bf16.gmra.mxu1 %vm348_vm0, %v2654_v27  ;;  %2097 = vmatmul.msk.bf16.gmra.mxu2 %vm348_vm0, %v2657_v28 }
  0x30   : > { %566 = vmatpush.bf16.msrb.mxu2 %v2456_v26  ;;  %2100 = vmatmul.msk.bf16.gmra.mxu3 %vm348_vm0, %v2660_v29 }
  0x31   : > { %649 = vmatpush.bf16.msrb.mxu3 %v2440_v25  ;;  %2093 = vmatmul.msk.bf16.gmra.mxu0 %vm348_vm0, %v2663_v30 }
  0x32   : > { %473 = vmatpush.bf16.msrb.mxu1 %v2435_v31  ;;  %743 = vmatpush.bf16.msrb.mxu0 %v2461_v32 }
  0x34   : > { %1006 = vmatpush.bf16.msra.mxu2 %v2479_v36 }
  0x35   : > { %1115 = vmatpush.bf16.msra.mxu3 %v2484_v33 }
  0x36   : > { %822 = vmatpush.bf16.msra.mxu1 %v2449_v34  ;;  %1226 = vmatpush.bf16.msra.mxu0 %v2489_v35 }
  0x38   : > { %1007 = vmatpush.bf16.msra.mxu2 %v2478_v42 }
  0x39   : > { %1116 = vmatpush.bf16.msra.mxu3 %v2483_v39 }
  0x3a   : > { %823 = vmatpush.bf16.msra.mxu1 %v2448_v40  ;;  %1227 = vmatpush.bf16.msra.mxu0 %v2488_v41  ;;  %v2467_v40 = vld [vmem:[%s2577_s30 + $0x18] sm:$0xff] }
  0x3c   : > { %1008 = vmatpush.bf16.msra.mxu2 %v2477_v46 }
  0x3d   : > { %1117 = vmatpush.bf16.msra.mxu3 %v2482_v43 }
  0x3e   : > { %824 = vmatpush.bf16.msra.mxu1 %v2447_v44  ;;  %1228 = vmatpush.bf16.msra.mxu0 %v2487_v45 }
  0x3f   : > { %2098 = vmatmul.msk.bf16.gmra.mxu2 %vm348_vm0, %v2692_v37  ;;  %2125 = vmatmul.msk.bf16.vlgmr.msrb.gmra.mxu1 %vm348_vm0, %v2695_v38 }
  0x40   : > { %2193 = vmatmul.msk.bf16.vlgmr.msrb.gmra.mxu3 %vm348_vm0, %v2695_v38  ;;  %1009 = vmatpush.bf16.msra.mxu2 %v2476_v50 }
  0x41   : > { %2232 = vmatmul.msk.bf16.vlgmr.msrb.gmra.mxu0 %vm348_vm0, %v2595_v10  ;;  %1118 = vmatpush.bf16.msra.mxu3 %v2481_v47 }
  0x42   : > { %825 = vmatpush.bf16.msra.mxu1 %v2446_v48  ;;  %1229 = vmatpush.bf16.msra.mxu0 %v2486_v49 }
  0x44   : > { %1010 = vmatpush.bf16.msra.mxu2 %v2475_v58 }
  0x45   : > { %1119 = vmatpush.bf16.msra.mxu3 %v2480_v51  ;;  %v2468_v51 = vld [vmem:[%s2577_s30 + $0x20] sm:$0xff] }
  0x46   : > { %826 = vmatpush.bf16.msra.mxu1 %v2445_v54  ;;  %1230 = vmatpush.bf16.msra.mxu0 %v2485_v55 }
  0x4f   : > { %2126 = vmatmul.msk.bf16.gmra.mxu1 %vm348_vm0, %v2595_v10  ;;  %2164 = vmatmul.msk.bf16.vlgmr.msrb.gmra.mxu2 %vm348_vm0, %v2595_v10 }
  0x50   : > { %2194 = vmatmul.msk.bf16.gmra.mxu3 %vm348_vm0, %v2595_v10 }
  0x51   : > { %2233 = vmatmul.msk.bf16.gmra.mxu0 %vm348_vm0, %v2663_v30 }
  0x5f   : > { %2127 = vmatmul.msk.bf16.gmra.mxu1 %vm348_vm0, %v2663_v30  ;;  %2165 = vmatmul.msk.bf16.gmra.mxu2 %vm348_vm0, %v2663_v30 }
  0x60   : > { %2195 = vmatmul.msk.bf16.gmra.mxu3 %vm348_vm0, %v2663_v30 }
  0x61   : > { %2234 = vmatmul.msk.bf16.gmra.mxu0 %vm348_vm0, %v2586_v7 }
  0x6f   : > { %2128 = vmatmul.msk.bf16.gmra.mxu1 %vm348_vm0, %v2586_v7  ;;  %2166 = vmatmul.msk.bf16.gmra.mxu2 %vm348_vm0, %v2586_v7 }
  0x70   : > { %2196 = vmatmul.msk.bf16.gmra.mxu3 %vm348_vm0, %v2586_v7 }
  0x71   : > { %2235 = vmatmul.msk.bf16.gmra.mxu0 %vm348_vm0, %v2654_v27 }
  0x7f   : > { %2129 = vmatmul.msk.bf16.gmra.mxu1 %vm348_vm0, %v2654_v27  ;;  %2167 = vmatmul.msk.bf16.gmra.mxu2 %vm348_vm0, %v2654_v27 }
  0x80   : > { %2197 = vmatmul.msk.bf16.gmra.mxu3 %vm348_vm0, %v2654_v27 }
  0x81   : > { %2236 = vmatmul.msk.bf16.gmra.mxu0 %vm348_vm0, %v2589_v8 }
  0x8f   : > { %2130 = vmatmul.msk.bf16.gmra.mxu1 %vm348_vm0, %v2589_v8  ;;  %2168 = vmatmul.msk.bf16.gmra.mxu2 %vm348_vm0, %v2589_v8 }
  0x90   : > { %2198 = vmatmul.msk.bf16.gmra.mxu3 %vm348_vm0, %v2589_v8 }
  0x91   : > { %2237 = vmatmul.msk.bf16.gmra.mxu0 %vm348_vm0, %v2657_v28 }
  0x9c   : > { %v2784_v52 = vpop.f32.mrf.mxu1 }
  0x9e   : > { %v385_v53 = vpop.f32.mrf.mxu0 }
  0x9f   : > { %2131 = vmatmul.msk.bf16.gmra.mxu1 %vm348_vm0, %v2657_v28  ;;  %2169 = vmatmul.msk.bf16.gmra.mxu2 %vm348_vm0, %v2657_v28 }
  0xa0   : > { %2199 = vmatmul.msk.bf16.gmra.mxu3 %vm348_vm0, %v2657_v28 }
  0xa1   : > { %2238 = vmatmul.msk.bf16.gmra.mxu0 %vm348_vm0, %v2692_v37 }
  0xa2   : > { %v2800_v56 = vpop.f32.mrf.mxu2 }
  0xa3   : > { %v2802_v57 = vpop.f32.mrf.mxu3 }
  0xa4   : > { %3172 = vst [vmem:[#allocation2_spill] sm:$0xff] %v2802_v57  ;;  %v397_v59 = vpop.f32.mrf.mxu1 }
  0xa6   : > { %v387_v60 = vpop.f32.mrf.mxu0 }
  0xaa   : > { %v2807_v61 = vpop.f32.mrf.mxu2 }
  0xab   : > { %v2809_v62 = vpop.f32.mrf.mxu3 }
  0xac   : > { %3173 = vst [vmem:[#allocation3_spill] sm:$0xff] %v2809_v62  ;;  %v400_v63 = vpop.f32.mrf.mxu1 }
  0xae   : > { %v390_v0 = vpop.f32.mrf.mxu0 }
  0xaf   : > { %2132 = vmatmul.msk.bf16.gmra.mxu1 %vm348_vm0, %v2692_v37  ;;  %2170 = vmatmul.msk.bf16.gmra.mxu2 %vm348_vm0, %v2692_v37 }
  0xb0   : > { %2200 = vmatmul.msk.bf16.gmra.mxu3 %vm348_vm0, %v2692_v37 }
  0xb1   : > { %2239 = vmatmul.msk.bf16.gmra.mxu0 %vm348_vm0, %v2592_v9 }
  0xb2   : > { %v2819_v1 = vpop.f32.mrf.mxu2 }
  0xb3   : > { %v425_v2 = vpop.f32.mrf.mxu3 }
  0xb4   : > { %v2821_v3 = vpop.f32.mrf.mxu1 }
  0xb6   : > { %v392_v4 = vpop.f32.mrf.mxu0 }
  0xba   : > { %v2823_v5 = vpop.f32.mrf.mxu2 }
  0xbb   : > { %v426_v6 = vpop.f32.mrf.mxu3 }
  0xbc   : > { %v475_v11 = vpop.f32.mrf.mxu1  ;;  %v2469_v6 = vld [vmem:[%s2577_s30 + $0x28] sm:$0xff] }
  0xbd   : > { %v2825_v12 = vadd.f32 %v475_v11, %v385_v53 }
  0xbe   : > { %v2827_v13 = vpop.f32.mrf.mxu0 }
  0xbf   : > { %2133 = vmatmul.msk.bf16.gmra.mxu1 %vm348_vm0, %v2592_v9  ;;  %2171 = vmatmul.msk.bf16.gmra.mxu2 %vm348_vm0, %v2592_v9 }
  0xc0   : > { %2201 = vmatmul.msk.bf16.gmra.mxu3 %vm348_vm0, %v2592_v9 }
  0xc1   : > { %2240 = vmatmul.msk.bf16.gmra.mxu0 %vm348_vm0, %v2660_v29 }
  0xc2   : > { %v2837_v14 = vpop.f32.mrf.mxu2 }
  0xc3   : > { %v651_v15 = vpop.f32.mrf.mxu3 }
  0xc4   : > { %v477_v16 = vpop.f32.mrf.mxu1 }
  0xc5   : > { %v2839_v17 = vadd.f32 %v477_v16, %v387_v60 }
  0xc6   : > { %v2841_v18 = vpop.f32.mrf.mxu0 }
  0xca   : > { %v2843_v19 = vpop.f32.mrf.mxu2 }
  0xcb   : > { %3174 = vst [vmem:[#allocation4_spill] sm:$0xff] %v2843_v19  ;;  %v653_v20 = vpop.f32.mrf.mxu3 }
  0xcc   : > { %v480_v21 = vpop.f32.mrf.mxu1 }
  0xcd   : > { %v2846_v23 = vadd.f32 %v480_v21, %v390_v0 }
  0xce   : > { %v2848_v24 = vpop.f32.mrf.mxu0 }
  0xcf   : > { %2172 = vmatmul.msk.bf16.gmra.mxu2 %vm348_vm0, %v2660_v29  ;;  %2261 = vmatmul.msk.bf16.vlgmr.msra.gmra.mxu1 %vm348_vm0, %v2695_v38 }
  0xd0   : > { %2375 = vmatmul.msk.bf16.vlgmr.msra.gmra.mxu3 %vm348_vm0, %v2466_v22 }
  0xd1   : > { %2414 = vmatmul.msk.bf16.vlgmr.msra.gmra.mxu0 %vm348_vm0, %v2466_v22 }
  0xd2   : > { %v568_v25 = vpop.f32.mrf.mxu2 }
  0xd3   : > { %v2856_v26 = vadd.f32 %v651_v15, %v568_v25  ;;  %v656_v31 = vpop.f32.mrf.mxu3 }
  0xd4   : > { %v482_v32 = vpop.f32.mrf.mxu1 }
  0xd5   : > { %v2858_v33 = vadd.f32 %v482_v32, %v392_v4 }
  0xd6   : > { %v2860_v34 = vpop.f32.mrf.mxu0 }
  0xda   : > { %v570_v35 = vpop.f32.mrf.mxu2 }
  0xdb   : > { %v2862_v36 = vadd.f32 %v653_v20, %v570_v35  ;;  %v658_v29 = vpop.f32.mrf.mxu3 }
  0xdc   : > { %v485_v39 = vpop.f32.mrf.mxu1 }
  0xdd   : > { %v2866_v38 = vadd.f32 %v485_v39, %v2784_v52 }
  0xde   : > { %v2868_v41 = vpop.f32.mrf.mxu0 }
  0xdf   : > { %2262 = vmatmul.msk.bf16.gmra.mxu1 %vm348_vm0, %v2595_v10  ;;  %2336 = vmatmul.msk.bf16.vlgmr.msra.gmra.mxu2 %vm348_vm0, %v2466_v22 }
  0xe0   : > { %2376 = vmatmul.msk.bf16.gmra.mxu3 %vm348_vm0, %v2467_v40 }
  0xe1   : > { %2415 = vmatmul.msk.bf16.gmra.mxu0 %vm348_vm0, %v2467_v40 }
  0xe2   : > { %v573_v42 = vpop.f32.mrf.mxu2 }
  0xe3   : > { %v2875_v43 = vadd.f32 %v656_v31, %v573_v42  ;;  %v661_v44 = vpop.f32.mrf.mxu3 }
  0xe4   : > { %v487_v45 = vpop.f32.mrf.mxu1 }
  0xe5   : > { %v2877_v46 = vadd.f32 %v487_v45, %v397_v59 }
  0xe6   : > { %v2879_v47 = vpop.f32.mrf.mxu0 }
  0xea   : > { %v575_v48 = vpop.f32.mrf.mxu2 }
  0xeb   : > { %v2881_v49 = vadd.f32 %v658_v29, %v575_v48  ;;  %v663_v50 = vpop.f32.mrf.mxu3 }
  0xec   : > { %v490_v10 = vpop.f32.mrf.mxu1 }
  0xed   : > { %v2884_v52 = vadd.f32 %v490_v10, %v400_v63 }
  0xee   : > { %v2886_v53 = vpop.f32.mrf.mxu0 }
  0xef   : > { %2263 = vmatmul.msk.bf16.gmra.mxu1 %vm348_vm0, %v2663_v30  ;;  %2337 = vmatmul.msk.bf16.gmra.mxu2 %vm348_vm0, %v2467_v40 }
  0xf0   : > { %2377 = vmatmul.msk.bf16.gmra.mxu3 %vm348_vm0, %v2468_v51 }
  0xf1   : > { %2416 = vmatmul.msk.bf16.gmra.mxu0 %vm348_vm0, %v2468_v51 }
  0xf2   : > { %v578_v54 = vpop.f32.mrf.mxu2 }
  0xf3   : > { %v2893_v55 = vadd.f32 %v661_v44, %v578_v54  ;;  %v666_v58 = vpop.f32.mrf.mxu3 }
  0xf4   : > { %v492_v59 = vpop.f32.mrf.mxu1 }
  0xf5   : > { %v2896_v60 = vadd.f32 %v492_v59, %v2821_v3 }
  0xf6   : > { %v2898_v63 = vpop.f32.mrf.mxu0 }
  0xfa   : > { %v580_v0 = vpop.f32.mrf.mxu2 }
  0xfb   : > { %v2900_v2 = vadd.f32 %v663_v50, %v580_v0  ;;  %v668_v30 = vpop.f32.mrf.mxu3 }
  0xfc   : > { %v2902_v4 = vpop.f32.mrf.mxu1 }
  0xfe   : > { %v2905_v11 = vpop.f32.mrf.mxu0 }
  0xff   : > { %2264 = vmatmul.msk.bf16.gmra.mxu1 %vm348_vm0, %v2586_v7  ;;  %2338 = vmatmul.msk.bf16.gmra.mxu2 %vm348_vm0, %v2468_v51  ;;  %v2470_v7 = vld [vmem:[%s2577_s30 + $0x30] sm:$0xff] }
 0x100   : > { %2378 = vmatmul.msk.bf16.gmra.mxu3 %vm348_vm0, %v2469_v6 }
 0x101   : > { %2417 = vmatmul.msk.bf16.gmra.mxu0 %vm348_vm0, %v2469_v6 }
 0x102   : > { %v583_v3 = vpop.f32.mrf.mxu2 }
 0x103   : > { %v2912_v15 = vadd.f32 %v666_v58, %v583_v3  ;;  %v671_v16 = vpop.f32.mrf.mxu3 }
 0x104   : > { %v2914_v20 = vpop.f32.mrf.mxu1 }
 0x106   : > { %v2916_v21 = vpop.f32.mrf.mxu0 }
 0x10a   : > { %v585_v22 = vpop.f32.mrf.mxu2 }
 0x10b   : > { %v2918_v25 = vadd.f32 %v668_v30, %v585_v22  ;;  %v673_v31 = vpop.f32.mrf.mxu3 }
 0x10c   : > { %v2920_v32 = vpop.f32.mrf.mxu1 }
 0x10e   : > { %v2923_v35 = vpop.f32.mrf.mxu0 }
 0x10f   : > { %2265 = vmatmul.msk.bf16.gmra.mxu1 %vm348_vm0, %v2654_v27  ;;  %2339 = vmatmul.msk.bf16.gmra.mxu2 %vm348_vm0, %v2469_v6  ;;  %v2471_v27 = vld [vmem:[%s2577_s30 + $0x38] sm:$0xff] }
 0x110   : > { %2379 = vmatmul.msk.bf16.gmra.mxu3 %vm348_vm0, %v2470_v7 }
 0x111   : > { %2418 = vmatmul.msk.bf16.gmra.mxu0 %vm348_vm0, %v2470_v7 }
 0x112   : > { %v588_v29 = vpop.f32.mrf.mxu2 }
 0x113   : > { %v2930_v39 = vadd.f32 %v671_v16, %v588_v29  ;;  %v676_v40 = vpop.f32.mrf.mxu3 }
 0x114   : > { %v2932_v42 = vpop.f32.mrf.mxu1 }
 0x116   : > { %v2934_v44 = vpop.f32.mrf.mxu0 }
 0x11a   : > { %v590_v45 = vpop.f32.mrf.mxu2 }
 0x11b   : > { %v2936_v48 = vadd.f32 %v673_v31, %v590_v45  ;;  %v678_v50 = vpop.f32.mrf.mxu3 }
 0x11c   : > { %v2938_v10 = vpop.f32.mrf.mxu1 }
 0x11d   : > { %3175 = vst [vmem:[#allocation5_spill] sm:$0xff] %v2938_v10 }
 0x11e   : > { %v2941_v51 = vpop.f32.mrf.mxu0 }
 0x11f   : > { %2266 = vmatmul.msk.bf16.gmra.mxu1 %vm348_vm0, %v2589_v8  ;;  %2340 = vmatmul.msk.bf16.gmra.mxu2 %vm348_vm0, %v2470_v7  ;;  %v2472_v8 = vld [vmem:[%s2577_s30 + $0x40] sm:$0xff] }
 0x120   : > { %2380 = vmatmul.msk.bf16.gmra.mxu3 %vm348_vm0, %v2471_v27 }
 0x121   : > { %2419 = vmatmul.msk.bf16.gmra.mxu0 %vm348_vm0, %v2471_v27 }
 0x122   : > { %v593_v54 = vpop.f32.mrf.mxu2 }
 0x123   : > { %v2948_v58 = vadd.f32 %v676_v40, %v593_v54  ;;  %v681_v59 = vpop.f32.mrf.mxu3 }
 0x124   : > { %v2950_v0 = vpop.f32.mrf.mxu1 }
 0x125   : > { %3176 = vst [vmem:[#allocation6_spill] sm:$0xff] %v2950_v0  ;;  %v2474_v0 = vld [vmem:[%s2577_s30 + $0x50] sm:$0xff] }
 0x126   : > { %v2952_v30 = vpop.f32.mrf.mxu0 }
 0x12a   : > { %v595_v6 = vpop.f32.mrf.mxu2 }
 0x12b   : > { %v2954_v3 = vadd.f32 %v678_v50, %v595_v6  ;;  %v683_v16 = vpop.f32.mrf.mxu3 }
 0x12c   : > { %v2956_v22 = vpop.f32.mrf.mxu1 }
 0x12d   : > { %3177 = vst [vmem:[#allocation7_spill] sm:$0xff] %v2956_v22 }
 0x12e   : > { %v2959_v31 = vpop.f32.mrf.mxu0 }
 0x12f   : > { %3178 = vst [vmem:[#allocation8_spill] sm:$0xff] %v2959_v31  ;;  %2267 = vmatmul.msk.bf16.gmra.mxu1 %vm348_vm0, %v2657_v28  ;;  %2341 = vmatmul.msk.bf16.gmra.mxu2 %vm348_vm0, %v2471_v27  ;;  %v2473_v28 = vld [vmem:[%s2577_s30 + $0x48] sm:$0xff] }
 0x130   : > { %2381 = vmatmul.msk.bf16.gmra.mxu3 %vm348_vm0, %v2472_v8 }
 0x131   : > { %2420 = vmatmul.msk.bf16.gmra.mxu0 %vm348_vm0, %v2472_v8 }
 0x132   : > { %v598_v7 = vpop.f32.mrf.mxu2 }
 0x133   : > { %v2966_v29 = vadd.f32 %v681_v59, %v598_v7  ;;  %v686_v40 = vpop.f32.mrf.mxu3 }
 0x134   : > { %v2968_v45 = vpop.f32.mrf.mxu1 }
 0x135   : > { %3179 = vst [vmem:[#allocation9_spill] sm:$0xff] %v2968_v45 }
 0x136   : > { %v2970_v50 = vpop.f32.mrf.mxu0 }
 0x137   : > { %3180 = vst [vmem:[#allocation10_spill] sm:$0xff] %v2970_v50 }
 0x13a   : > { %v600_v54 = vpop.f32.mrf.mxu2 }
 0x13b   : > { %v2972_v6 = vadd.f32 %v683_v16, %v600_v54  ;;  %v688_v62 = vpop.f32.mrf.mxu3 }
 0x13c   : > { %v515_v22 = vpop.f32.mrf.mxu1 }
 0x13e   : > { %v2975_v27 = vpop.f32.mrf.mxu0 }
 0x13f   : > { %3181 = vst [vmem:[#allocation11_spill] sm:$0xff] %v2975_v27  ;;  %2268 = vmatmul.msk.bf16.gmra.mxu1 %vm348_vm0, %v2692_v37  ;;  %2342 = vmatmul.msk.bf16.gmra.mxu2 %vm348_vm0, %v2472_v8 }
 0x140   : > { %2382 = vmatmul.msk.bf16.gmra.mxu3 %vm348_vm0, %v2473_v28 }
 0x141   : > { %2421 = vmatmul.msk.bf16.gmra.mxu0 %vm348_vm0, %v2473_v28 }
 0x142   : > { %v603_v59 = vpop.f32.mrf.mxu2 }
 0x143   : > { %v2982_v7 = vadd.f32 %v686_v40, %v603_v59  ;;  %v691_v16 = vpop.f32.mrf.mxu3 }
 0x144   : > { %v516_v54 = vpop.f32.mrf.mxu1 }
 0x145   : > { %3182 = vst [vmem:[#allocation12_spill] sm:$0xff] %v2982_v7 }
 0x146   : > { %v787_v45 = vpop.f32.mrf.mxu0 }
 0x14a   : > { %v605_v22 = vpop.f32.mrf.mxu2 }
 0x14b   : > { %v2984_v57 = vadd.f32 %v688_v62, %v605_v22  ;;  %v693_v50 = vpop.f32.mrf.mxu3 }
 0x14c   : > { %v828_v27 = vpop.f32.mrf.mxu1 }
 0x14d   : > { %3183 = vst [vmem:[#allocation13_spill] sm:$0xff] %v2984_v57 }
 0x14e   : > { %v1232_v19 = vpop.f32.mrf.mxu0 }
 0x14f   : > { %2269 = vmatmul.msk.bf16.gmra.mxu1 %vm348_vm0, %v2592_v9  ;;  %2343 = vmatmul.msk.bf16.gmra.mxu2 %vm348_vm0, %v2473_v28  ;;  %v829_v9 = vadd.f32 %v828_v27, %v2827_v13 }
 0x150   : > { %2383 = vmatmul.msk.bf16.gmra.mxu3 %vm348_vm0, %v2474_v0 }
 0x151   : > { %2422 = vmatmul.msk.bf16.gmra.mxu0 %vm348_vm0, %v2474_v0 }
 0x152   : > { %v608_v37 = vpop.f32.mrf.mxu2 }
 0x153   : > { %v2992_v8 = vadd.f32 %v691_v16, %v608_v37  ;;  %v1121_v40 = vpop.f32.mrf.mxu3  ;;  %v1276_v37 = vadd.f32 %v1232_v19, %v829_v9  ;;  %v3006_v19 = vld [vmem:[%s3169_s2] ss:$0 sm:$0xff] }
 0x154   : > { %v830_v45 = vpop.f32.mrf.mxu1  ;;  %v1165_v50 = vadd.f32 %v1121_v40, %v2856_v26 }
 0x155   : > { %3184 = vst [vmem:[#allocation14_spill] sm:$0xff] %v2992_v8  ;;  %v831_v59 = vadd.f32 %v830_v45, %v2841_v18 }
 0x156   : > { %v1234_v62 = vpop.f32.mrf.mxu0  ;;  %v1311_v31 = vrot.slane %v1165_v50, 1 }
 0x157   : > { %v1277_v10 = vadd.f32 %v1234_v62, %v831_v59 }
 0x159   : > { %v1395_v26 = vrot.slane %v1277_v10, 2 }
 0x15a   : > { %v610_v54 = vpop.f32.mrf.mxu2 }
 0x15b   : > { %v1123_v22 = vpop.f32.mrf.mxu3 }
 0x15c   : > { %v1166_v28 = vadd.f32 %v1123_v22, %v2862_v36  ;;  %v833_v57 = vpop.f32.mrf.mxu1  ;;  %v1394_v36 = vrot.slane %v1276_v37, 2 }
 0x15d   : > { %v834_v18 = vadd.f32 %v833_v57, %v2848_v24 }
 0x15e   : > { %v1237_v7 = vpop.f32.mrf.mxu0  ;;  %v1312_v16 = vrot.slane %v1166_v28, 1  ;;  %v1396_v57 = vsel %vm1393_vm2, %v1394_v36, %v1395_v26 }
 0x15f   : > { %2344 = vmatmul.msk.bf16.gmra.mxu2 %vm348_vm0, %v2474_v0  ;;  %v1278_v10 = vadd.f32 %v1237_v7, %v834_v18 }
 0x160   : > { %v1313_v8 = vsel %vm1310_vm1, %v1311_v31, %v1312_v16 }
 0x161   : > { %v1397_v54 = vrot.slane %v1278_v10, 2 }
 0x162   : > { %v1012_v40 = vpop.f32.mrf.mxu2 }
 0x163   : > { %v1055_v45 = vadd.f32 %v1012_v40, %v2825_v12  ;;  %v1126_v13 = vpop.f32.mrf.mxu3 }
 0x164   : > { %v1167_v27 = vadd.f32 %v1126_v13, %v2875_v43  ;;  %v835_v50 = vpop.f32.mrf.mxu1 }
 0x165   : > { %v1360_v62 = vadd.f32 %v1313_v8, %v1055_v45  ;;  %v836_v43 = vadd.f32 %v835_v50, %v2860_v34 }
 0x166   : > { %v1239_v0 = vpop.f32.mrf.mxu0  ;;  %v1314_v24 = vrot.slane %v1167_v27, 1 }
 0x167   : > { %v1443_v31 = vadd.f32 %v1396_v57, %v1360_v62  ;;  %v1279_v34 = vadd.f32 %v1239_v0, %v836_v43 }
 0x168   : > { %v1315_v12 = vsel %vm1310_vm1, %v1312_v16, %v1314_v24  ;;  %v1398_v16 = vsel %vm1393_vm2, %v1395_v26, %v1397_v54 }
 0x169   : > { %v1463_v59 = vadd.f32 %v3006_v19, %v1443_v31  ;;  %v1399_v50 = vrot.slane %v1279_v34, 2 }
 0x16a   : > { %v1014_v22 = vpop.f32.mrf.mxu2 }
 0x16b   : > { %v1479_v8 = vmul.f32 0.2, %v1463_v59  ;;  %v1056_v9 = vadd.f32 %v1014_v22, %v2839_v17  ;;  %v1128_v28 = vpop.f32.mrf.mxu3 }
 0x16c   : > { %v1168_v37 = vadd.f32 %v1128_v28, %v2881_v49  ;;  %v838_v7 = vpop.f32.mrf.mxu1 }
 0x16d   : > { %v1495_v18 = vmax.f32 %v1463_v59, %v1479_v8  ;;  %v1361_v40 = vadd.f32 %v1315_v12, %v1056_v9  ;;  %v839_v62 = vadd.f32 %v838_v7, %v2868_v41  ;;  %v1400_v8 = vsel %vm1393_vm2, %v1397_v54, %v1399_v50 }
 0x16e   : > { %v1242_v45 = vpop.f32.mrf.mxu0  ;;  %v1316_v13 = vrot.slane %v1168_v37, 1 }
 0x16f   : > { %v1511_v36 = vpack.c.bf16 %v1495_v18, %v1495_v18  ;;  %v1444_v17 = vadd.f32 %v1398_v16, %v1361_v40 }
 0x170   : > { %v1317_v27 = vsel %vm1310_vm1, %v1314_v24, %v1316_v13  ;;  %v1280_v24 = vadd.f32 %v1242_v45, %v839_v62  ;;  %v1817_v62 = vsel %vm348_vm0, %v1495_v18, 0.0 }
 0x171   : > { %1528 = vst.msk [vmem:[%s3018_s22] sm:$0xf] %vm1527_vm3, %v1511_v36  ;;  %v1464_v49 = vadd.f32 %v3006_v19, %v1444_v17  ;;  %v1854_v17 = vmul.f32 %v1495_v18, %v1495_v18 }
 0x172   : > { %v1017_v10 = vpop.f32.mrf.mxu2 }
 0x173   : > { %v1480_v57 = vmul.f32 0.2, %v1464_v49  ;;  %v1057_v31 = vadd.f32 %v1017_v10, %v2846_v23  ;;  %v1131_v0 = vpop.f32.mrf.mxu3  ;;  %v1401_v23 = vrot.slane %v1280_v24, 2 }
 0x174   : > { %v1169_v26 = vadd.f32 %v1131_v0, %v2893_v55  ;;  %v840_v12 = vpop.f32.mrf.mxu1 }
 0x175   : > { %v1496_v59 = vmax.f32 %v1464_v49, %v1480_v57  ;;  %v1362_v43 = vadd.f32 %v1317_v27, %v1057_v31  ;;  %v841_v40 = vadd.f32 %v840_v12, %v2879_v47  ;;  %v1402_v57 = vsel %vm1393_vm2, %v1399_v50, %v1401_v23 }
 0x176   : > { %v1244_v22 = vpop.f32.mrf.mxu0  ;;  %v1318_v9 = vrot.slane %v1169_v26, 1 }
 0x177   : > { %v1512_v28 = vpack.c.bf16 %v1496_v59, %v1496_v59  ;;  %v1445_v37 = vadd.f32 %v1400_v8, %v1362_v43  ;;  %v1281_v10 = vadd.f32 %v1244_v22, %v841_v40  ;;  %v1870_v59 = vsel %vm348_vm0, %v1854_v17, 0.0 }
 0x178   : > { %v1319_v41 = vsel %vm1310_vm1, %v1316_v13, %v1318_v9 }
 0x179   : > { %1529 = vst.msk [vmem:[%s3018_s22 + $0x4] sm:$0xf] %vm1527_vm3, %v1512_v28  ;;  %v1465_v7 = vadd.f32 %v3006_v19, %v1445_v37  ;;  %v1403_v24 = vrot.slane %v1281_v10, 2 }
 0x17a   : > { %v1019_v55 = vpop.f32.mrf.mxu2 }
 0x17b   : > { %v1481_v34 = vmul.f32 0.2, %v1465_v7  ;;  %v1058_v16 = vadd.f32 %v1019_v55, %v2858_v33  ;;  %v1133_v36 = vpop.f32.mrf.mxu3 }
 0x17c   : > { %v1170_v45 = vadd.f32 %v1133_v36, %v2900_v2  ;;  %v843_v54 = vpop.f32.mrf.mxu1  ;;  %v1404_v36 = vsel %vm1393_vm2, %v1401_v23, %v1403_v24 }
 0x17d   : > { %v1497_v27 = vmax.f32 %v1465_v7, %v1481_v34  ;;  %v1363_v49 = vadd.f32 %v1319_v41, %v1058_v16  ;;  %v844_v50 = vadd.f32 %v843_v54, %v2886_v53 }
 0x17e   : > { %v1247_v13 = vpop.f32.mrf.mxu0  ;;  %v1320_v31 = vrot.slane %v1170_v45, 1 }
 0x17f   : > { %v1513_v47 = vpack.c.bf16 %v1497_v27, %v1497_v27  ;;  %v1820_v0 = vsel %vm348_vm0, %v1497_v27, 0.0  ;;  %v1856_v26 = vmul.f32 %v1497_v27, %v1497_v27  ;;  %v1446_v33 = vadd.f32 %v1402_v57, %v1363_v49 }
 0x180   : > { %v1821_v12 = vadd.f32 %v1820_v0, %v1817_v62  ;;  %v1321_v2 = vsel %vm1310_vm1, %v1318_v9, %v1320_v31  ;;  %v1282_v16 = vadd.f32 %v1247_v13, %v844_v50 }
 0x181   : > { %1530 = vst.msk [vmem:[%s3018_s22 + $0x8] sm:$0xf] %vm1527_vm3, %v1513_v47  ;;  %v1873_v43 = vsel %vm348_vm0, %v1856_v26, 0.0  ;;  %v1466_v18 = vadd.f32 %v3006_v19, %v1446_v33 }
 0x182   : > { %v1874_v22 = vadd.f32 %v1873_v43, %v1870_v59  ;;  %v1022_v8 = vpop.f32.mrf.mxu2 }
 0x183   : > { %v1482_v28 = vmul.f32 0.2, %v1466_v18  ;;  %v1059_v37 = vadd.f32 %v1022_v8, %v2866_v38  ;;  %v1136_v41 = vpop.f32.mrf.mxu3  ;;  %v1405_v38 = vrot.slane %v1282_v16, 2 }
 0x184   : > { %v1171_v9 = vadd.f32 %v1136_v41, %v2912_v15  ;;  %v845_v7 = vpop.f32.mrf.mxu1 }
 0x185   : > { %v1498_v40 = vmax.f32 %v1466_v18, %v1482_v28  ;;  %v1364_v55 = vadd.f32 %v1321_v2, %v1059_v37  ;;  %v846_v49 = vadd.f32 %v845_v7, %v2898_v63  ;;  %v1406_v33 = vsel %vm1393_vm2, %v1403_v24, %v1405_v38 }
 0x186   : > { %v1249_v34 = vpop.f32.mrf.mxu0  ;;  %v1322_v45 = vrot.slane %v1171_v9, 1 }
 0x187   : > { %v1514_v17 = vpack.c.bf16 %v1498_v40, %v1498_v40  ;;  %v1447_v27 = vadd.f32 %v1404_v36, %v1364_v55 }
 0x188   : > { %v1323_v53 = vsel %vm1310_vm1, %v1320_v31, %v1322_v45  ;;  %v1283_v31 = vadd.f32 %v1249_v34, %v846_v49 }
 0x189   : > { %1531 = vst.msk [vmem:[%s3018_s22 + $0xc] sm:$0xf] %vm1527_vm3, %v1514_v17  ;;  %v1467_v54 = vadd.f32 %v3006_v19, %v1447_v27 }
 0x18a   : > { %v1024_v15 = vpop.f32.mrf.mxu2  ;;  %v1407_v37 = vrot.slane %v1283_v31, 2 }
 0x18b   : > { %v1483_v62 = vmul.f32 0.2, %v1467_v54  ;;  %v1060_v10 = vadd.f32 %v1024_v15, %v2877_v46  ;;  %v1138_v13 = vpop.f32.mrf.mxu3 }
 0x18c   : > { %v1172_v23 = vadd.f32 %v1138_v13, %v2918_v25  ;;  %v848_v57 = vpop.f32.mrf.mxu1  ;;  %v1408_v17 = vsel %vm1393_vm2, %v1405_v38, %v1407_v37 }
 0x18d   : > { %v1499_v47 = vmax.f32 %v1467_v54, %v1483_v62  ;;  %v1365_v0 = vadd.f32 %v1323_v53, %v1060_v10  ;;  %v849_v41 = vadd.f32 %v848_v57, %v2905_v11 }
 0x18e   : > { %v1252_v26 = vpop.f32.mrf.mxu0  ;;  %v1324_v2 = vrot.slane %v1172_v23, 1 }
 0x18f   : > { %v1515_v59 = vpack.c.bf16 %v1499_v47, %v1499_v47  ;;  %v1824_v43 = vsel %vm348_vm0, %v1499_v47, 0.0  ;;  %v1858_v63 = vmul.f32 %v1499_v47, %v1499_v47  ;;  %v1448_v18 = vadd.f32 %v1406_v33, %v1365_v0 }
 0x190   : > { %v1825_v50 = vadd.f32 %v1824_v43, %v1821_v12  ;;  %v1325_v46 = vsel %vm1310_vm1, %v1322_v45, %v1324_v2  ;;  %v1284_v45 = vadd.f32 %v1252_v26, %v849_v41 }
 0x191   : > { %1532 = vst.msk [vmem:[%s3018_s22 + $0x10] sm:$0xf] %vm1527_vm3, %v1515_v59  ;;  %v1877_v25 = vsel %vm348_vm0, %v1858_v63, 0.0  ;;  %v1468_v8 = vadd.f32 %v3006_v19, %v1448_v18  ;;  %v496_v63 = vadd.f32 %v2902_v4, %v2800_v56 }
 0x192   : > { %v1878_v28 = vadd.f32 %v1877_v25, %v1874_v22  ;;  %v1027_v24 = vpop.f32.mrf.mxu2 }
 0x193   : > { %v1484_v9 = vmul.f32 0.2, %v1468_v8  ;;  %v1061_v7 = vadd.f32 %v1027_v24, %v2884_v52  ;;  %v1141_v40 = vpop.f32.mrf.mxu3  ;;  %v1409_v52 = vrot.slane %v1284_v45, 2 }
 0x194   : > { %v1173_v12 = vadd.f32 %v1141_v40, %v2930_v39  ;;  %v850_v55 = vpop.f32.mrf.mxu1 }
 0x195   : > { %v1500_v34 = vmax.f32 %v1468_v8, %v1484_v9  ;;  %v1366_v16 = vadd.f32 %v1325_v46, %v1061_v7  ;;  %v851_v49 = vadd.f32 %v850_v55, %v2916_v21  ;;  %v1410_v26 = vsel %vm1393_vm2, %v1407_v37, %v1409_v52 }
 0x196   : > { %v1254_v36 = vpop.f32.mrf.mxu0  ;;  %v1326_v27 = vrot.slane %v1173_v12, 1 }
 0x197   : > { %v1516_v22 = vpack.c.bf16 %v1500_v34, %v1500_v34  ;;  %v1449_v53 = vadd.f32 %v1408_v17, %v1366_v16  ;;  %v1285_v0 = vadd.f32 %v1254_v36, %v851_v49 }
 0x198   : > { %v1327_v11 = vsel %vm1310_vm1, %v1324_v2, %v1326_v27 }
 0x199   : > { %1533 = vst.msk [vmem:[%s3018_s22 + $0x14] sm:$0xf] %vm1527_vm3, %v1516_v22  ;;  %v1469_v54 = vadd.f32 %v3006_v19, %v1449_v53  ;;  %v1411_v25 = vrot.slane %v1285_v0, 2 }
 0x19a   : > { %v1029_v39 = vpop.f32.mrf.mxu2 }
 0x19b   : > { %v1485_v15 = vmul.f32 0.2, %v1469_v54  ;;  %v1062_v62 = vadd.f32 %v1029_v39, %v2896_v60  ;;  %v1143_v10 = vpop.f32.mrf.mxu3  ;;  %v1412_v55 = vsel %vm1393_vm2, %v1409_v52, %v1411_v25 }
 0x19c   : > { %v1174_v38 = vadd.f32 %v1143_v10, %v2936_v48  ;;  %v853_v13 = vpop.f32.mrf.mxu1 }
 0x19d   : > { %v1501_v23 = vmax.f32 %v1469_v54, %v1485_v15  ;;  %v1367_v57 = vadd.f32 %v1327_v11, %v1062_v62  ;;  %v854_v8 = vadd.f32 %v853_v13, %v2923_v35  ;;  %v498_v35 = vadd.f32 %v2914_v20, %v2807_v61 }
 0x19e   : > { %v1257_v47 = vpop.f32.mrf.mxu0  ;;  %v1328_v31 = vrot.slane %v1174_v38, 1 }
 0x19f   : > { %v1517_v33 = vpack.c.bf16 %v1501_v23, %v1501_v23  ;;  %v1828_v2 = vsel %vm348_vm0, %v1501_v23, 0.0  ;;  %v1860_v21 = vmul.f32 %v1501_v23, %v1501_v23  ;;  %v1450_v59 = vadd.f32 %v1410_v26, %v1367_v57 }
 0x1a0   : > { %v1829_v43 = vadd.f32 %v1828_v2, %v1825_v50  ;;  %v1329_v60 = vsel %vm1310_vm1, %v1326_v27, %v1328_v31  ;;  %v1286_v12 = vadd.f32 %v1257_v47, %v854_v8  ;;  %v501_v47 = vadd.f32 %v2920_v32, %v2819_v1 }
 0x1a1   : > { %1534 = vst.msk [vmem:[%s3018_s22 + $0x18] sm:$0xf] %vm1527_vm3, %v1517_v33  ;;  %v1881_v48 = vsel %vm348_vm0, %v1860_v21, 0.0  ;;  %v1470_v18 = vadd.f32 %v3006_v19, %v1450_v59 }
 0x1a2   : > { %v1882_v46 = vadd.f32 %v1881_v48, %v1878_v28  ;;  %v1032_v37 = vpop.f32.mrf.mxu2 }
 0x1a3   : > { %v1486_v41 = vmul.f32 0.2, %v1470_v18  ;;  %v1063_v24 = vadd.f32 %v1032_v37, %v496_v63  ;;  %v1146_v50 = vpop.f32.mrf.mxu3 }
 0x1a4   : > { %v1175_v9 = vadd.f32 %v1146_v50, %v2948_v58  ;;  %v855_v7 = vpop.f32.mrf.mxu1  ;;  %v1413_v58 = vrot.slane %v1286_v12, 2 }
 0x1a5   : > { %v1502_v40 = vmax.f32 %v1470_v18, %v1486_v41  ;;  %v1368_v56 = vadd.f32 %v1329_v60, %v1063_v24  ;;  %v856_v17 = vadd.f32 %v855_v7, %v2934_v44 }
 0x1a6   : > { %v1259_v4 = vpop.f32.mrf.mxu0  ;;  %v1330_v34 = vrot.slane %v1175_v9, 1  ;;  %v1414_v61 = vsel %vm1393_vm2, %v1411_v25, %v1413_v58 }
 0x1a7   : > { %v1518_v16 = vpack.c.bf16 %v1502_v40, %v1502_v40  ;;  %v1451_v28 = vadd.f32 %v1412_v55, %v1368_v56  ;;  %v1287_v62 = vadd.f32 %v1259_v4, %v856_v17 }
 0x1a8   : > { %v1331_v36 = vsel %vm1310_vm1, %v1328_v31, %v1330_v34 }
 0x1a9   : > { %1535 = vst.msk [vmem:[%s3018_s22 + $0x1c] sm:$0xf] %vm1527_vm3, %v1518_v16  ;;  %v1471_v45 = vadd.f32 %v3006_v19, %v1451_v28  ;;  %v1415_v31 = vrot.slane %v1287_v62, 2 }
 0x1aa   : > { %v1034_v27 = vpop.f32.mrf.mxu2 }
 0x1ab   : > { %v1487_v22 = vmul.f32 0.2, %v1471_v45  ;;  %v1064_v53 = vadd.f32 %v1034_v27, %v498_v35  ;;  %v1148_v11 = vpop.f32.mrf.mxu3  ;;  %v1416_v25 = vsel %vm1393_vm2, %v1413_v58, %v1415_v31  ;;  %v3185_v27 = vld [vmem:[#allocation5_spill] sm:$0xff] }
 0x1ac   : > { %v1176_v54 = vadd.f32 %v1148_v11, %v2954_v3  ;;  %v858_v52 = vpop.f32.mrf.mxu1 }
 0x1ad   : > { %v1503_v49 = vmax.f32 %v1471_v45, %v1487_v22  ;;  %v1369_v39 = vadd.f32 %v1331_v36, %v1064_v53  ;;  %v859_v33 = vadd.f32 %v858_v52, %v2941_v51  ;;  %v503_v51 = vadd.f32 %v2932_v42, %v2823_v5  ;;  %v3186_v52 = vld [vmem:[#allocation8_spill] sm:$0xff] }
 0x1ae   : > { %v1262_v15 = vpop.f32.mrf.mxu0  ;;  %v1332_v20 = vrot.slane %v1176_v54, 1  ;;  %v506_v22 = vadd.f32 %v3185_v27, %v2837_v14  ;;  %v3195_v27 = vld [vmem:[#allocation14_spill] sm:$0xff] }
 0x1af   : > { %v1519_v10 = vpack.c.bf16 %v1503_v49, %v1503_v49  ;;  %v1832_v38 = vsel %vm348_vm0, %v1503_v49, 0.0  ;;  %v1862_v13 = vmul.f32 %v1503_v49, %v1503_v49  ;;  %v1452_v44 = vadd.f32 %v1414_v61, %v1369_v39 }
 0x1b0   : > { %v1833_v23 = vadd.f32 %v1832_v38, %v1829_v43  ;;  %v1333_v57 = vsel %vm1310_vm1, %v1330_v34, %v1332_v20  ;;  %v1288_v18 = vadd.f32 %v1262_v15, %v859_v33  ;;  %v3189_v33 = vld [vmem:[#allocation6_spill] sm:$0xff] }
 0x1b1   : > { %1536 = vst.msk [vmem:[%s3018_s22 + $0x20] sm:$0xf] %vm1527_vm3, %v1519_v10  ;;  %v1885_v3 = vsel %vm348_vm0, %v1862_v13, 0.0  ;;  %v1472_v0 = vadd.f32 %v3006_v19, %v1452_v44 }
 0x1b2   : > { %v1886_v26 = vadd.f32 %v1885_v3, %v1882_v46  ;;  %v1037_v2 = vpop.f32.mrf.mxu2 }
 0x1b3   : > { %v1488_v21 = vmul.f32 0.2, %v1472_v0  ;;  %v1065_v59 = vadd.f32 %v1037_v2, %v501_v47  ;;  %v1151_v43 = vpop.f32.mrf.mxu3 }
 0x1b4   : > { %v1177_v60 = vadd.f32 %v1151_v43, %v2966_v29  ;;  %v860_v63 = vpop.f32.mrf.mxu1  ;;  %v1417_v29 = vrot.slane %v1288_v18, 2  ;;  %v3190_v43 = vld [vmem:[#allocation10_spill] sm:$0xff]  ;;  %v3191_v18 = vld [vmem:[#allocation13_spill] sm:$0xff] }
 0x1b5   : > { %v1504_v48 = vmax.f32 %v1472_v0, %v1488_v21  ;;  %v1370_v1 = vadd.f32 %v1333_v57, %v1065_v59  ;;  %v861_v50 = vadd.f32 %v860_v63, %v2952_v30 }
 0x1b6   : > { %v1264_v32 = vpop.f32.mrf.mxu0  ;;  %v1334_v8 = vrot.slane %v1177_v60, 1  ;;  %v1418_v5 = vsel %vm1393_vm2, %v1415_v31, %v1417_v29  ;;  %v3188_v31 = vld [vmem:[#allocation4_spill] sm:$0xff] }
 0x1b7   : > { %v1520_v37 = vpack.c.bf16 %v1504_v48, %v1504_v48  ;;  %v1453_v46 = vadd.f32 %v1416_v25, %v1370_v1  ;;  %v1289_v28 = vadd.f32 %v1264_v32, %v861_v50  ;;  %v508_v2 = vadd.f32 %v3189_v33, %v3188_v31 }
 0x1b8   : > { %v1335_v41 = vsel %vm1310_vm1, %v1332_v20, %v1334_v8  ;;  %v3187_v20 = vld [vmem:[#allocation12_spill] sm:$0xff] }
 0x1b9   : > { %1537 = vst.msk [vmem:[%s3018_s22 + $0x24] sm:$0xf] %vm1527_vm3, %v1520_v37  ;;  %v1473_v24 = vadd.f32 %v3006_v19, %v1453_v46  ;;  %v1419_v54 = vrot.slane %v1289_v28, 2 }
 0x1ba   : > { %v1039_v9 = vpop.f32.mrf.mxu2 }
 0x1bb   : > { %v1489_v7 = vmul.f32 0.2, %v1473_v24  ;;  %v1066_v40 = vadd.f32 %v1039_v9, %v503_v51  ;;  %v1153_v56 = vpop.f32.mrf.mxu3  ;;  %v1420_v57 = vsel %vm1393_vm2, %v1417_v29, %v1419_v54 }
 0x1bc   : > { %v1178_v4 = vadd.f32 %v1153_v56, %v2972_v6  ;;  %v863_v12 = vpop.f32.mrf.mxu1 }
 0x1bd   : > { %v1505_v55 = vmax.f32 %v1473_v24, %v1489_v7  ;;  %v1371_v34 = vadd.f32 %v1335_v41, %v1066_v40  ;;  %v864_v49 = vadd.f32 %v863_v12, %v3186_v52  ;;  %v3192_v12 = vld [vmem:[#allocation2_spill] sm:$0xff] }
 0x1be   : > { %v1267_v16 = vpop.f32.mrf.mxu0  ;;  %v1336_v42 = vrot.slane %v1178_v4, 1 }
 0x1bf   : > { %v1521_v36 = vpack.c.bf16 %v1505_v55, %v1505_v55  ;;  %v1836_v35 = vsel %vm348_vm0, %v1505_v55, 0.0  ;;  %v1864_v45 = vmul.f32 %v1505_v55, %v1505_v55  ;;  %v1454_v30 = vadd.f32 %v1418_v5, %v1371_v34  ;;  %v3193_v55 = vld [vmem:[#allocation7_spill] sm:$0xff] }
 0x1c0   : > { %v1837_v58 = vadd.f32 %v1836_v35, %v1833_v23  ;;  %v1337_v17 = vsel %vm1310_vm1, %v1334_v8, %v1336_v42  ;;  %v1290_v23 = vadd.f32 %v1267_v16, %v864_v49  ;;  %v511_v34 = vadd.f32 %v3193_v55, %v3192_v12 }
 0x1c1   : > { %1538 = vst.msk [vmem:[%s3018_s22 + $0x28] sm:$0xf] %vm1527_vm3, %v1521_v36  ;;  %v1889_v6 = vsel %vm348_vm0, %v1864_v45, 0.0  ;;  %v1474_v53 = vadd.f32 %v3006_v19, %v1454_v30  ;;  %v3194_v36 = vld [vmem:[#allocation11_spill] sm:$0xff] }
 0x1c2   : > { %v1890_v11 = vadd.f32 %v1889_v6, %v1886_v26  ;;  %v1042_v39 = vpop.f32.mrf.mxu2  ;;  %v1421_v59 = vrot.slane %v1290_v23, 2 }
 0x1c3   : > { %v1490_v15 = vmul.f32 0.2, %v1474_v53  ;;  %v1067_v62 = vadd.f32 %v1042_v39, %v506_v22  ;;  %v1156_v61 = vpop.f32.mrf.mxu3 }
 0x1c4   : > { %v1179_v10 = vadd.f32 %v1156_v61, %v3187_v20  ;;  %v865_v38 = vpop.f32.mrf.mxu1  ;;  %v1422_v24 = vsel %vm1393_vm2, %v1419_v54, %v1421_v59  ;;  %v3196_v20 = vld [vmem:[#allocation3_spill] sm:$0xff] }
 0x1c5   : > { %v1506_v13 = vmax.f32 %v1474_v53, %v1490_v15  ;;  %v1372_v14 = vadd.f32 %v1337_v17, %v1067_v62  ;;  %v866_v60 = vadd.f32 %v865_v38, %v3190_v43 }
 0x1c6   : > { %v1269_v44 = vpop.f32.mrf.mxu0  ;;  %v1338_v47 = vrot.slane %v1179_v10, 1  ;;  %v3197_v10 = vld [vmem:[#allocation9_spill] sm:$0xff] }
 0x1c7   : > { %v1522_v3 = vpack.c.bf16 %v1506_v13, %v1506_v13  ;;  %v1455_v0 = vadd.f32 %v1420_v57, %v1372_v14  ;;  %v1291_v51 = vadd.f32 %v1269_v44, %v866_v60  ;;  %v513_v38 = vadd.f32 %v3197_v10, %v3196_v20 }
 0x1c8   : > { %v1339_v26 = vsel %vm1310_vm1, %v1336_v42, %v1338_v47 }
 0x1c9   : > { %1539 = vst.msk [vmem:[%s3018_s22 + $0x2c] sm:$0xf] %vm1527_vm3, %v1522_v3  ;;  %v1475_v21 = vadd.f32 %v3006_v19, %v1455_v0  ;;  %v1423_v42 = vrot.slane %v1291_v51, 2 }
 0x1ca   : > { %v1044_v63 = vpop.f32.mrf.mxu2 }
 0x1cb   : > { %v1491_v48 = vmul.f32 0.2, %v1475_v21  ;;  %v1068_v1 = vadd.f32 %v1044_v63, %v508_v2  ;;  %v1158_v32 = vpop.f32.mrf.mxu3  ;;  %v1424_v39 = vsel %vm1393_vm2, %v1421_v59, %v1423_v42 }
 0x1cc   : > { %v1180_v25 = vadd.f32 %v1158_v32, %v3191_v18  ;;  %v868_v8 = vpop.f32.mrf.mxu1 }
 0x1cd   : > { %v1507_v37 = vmax.f32 %v1475_v21, %v1491_v48  ;;  %v1373_v46 = vadd.f32 %v1339_v26, %v1068_v1  ;;  %v869_v35 = vadd.f32 %v868_v8, %v3194_v36 }
 0x1ce   : > { %v1272_v41 = vpop.f32.mrf.mxu0  ;;  %v1340_v29 = vrot.slane %v1180_v25, 1 }
 0x1cf   : > { %v1523_v50 = vpack.c.bf16 %v1507_v37, %v1507_v37  ;;  %v1840_v9 = vsel %vm348_vm0, %v1507_v37, 0.0  ;;  %v1866_v7 = vmul.f32 %v1507_v37, %v1507_v37  ;;  %v1456_v40 = vadd.f32 %v1422_v24, %v1373_v46 }
 0x1d0   : > { %v1841_v56 = vadd.f32 %v1840_v9, %v1837_v58  ;;  %v1341_v4 = vsel %vm1310_vm1, %v1338_v47, %v1340_v29  ;;  %v1292_v49 = vadd.f32 %v1272_v41, %v869_v35 }
 0x1d1   : > { %1540 = vst.msk [vmem:[%s3018_s22 + $0x30] sm:$0xf] %vm1527_vm3, %v1523_v50  ;;  %v1893_v16 = vsel %vm348_vm0, %v1866_v7, 0.0  ;;  %v1476_v28 = vadd.f32 %v3006_v19, %v1456_v40 }
 0x1d2   : > { %v1894_v5 = vadd.f32 %v1893_v16, %v1890_v11  ;;  %v1047_v45 = vpop.f32.mrf.mxu2  ;;  %v1425_v14 = vrot.slane %v1292_v49, 2 }
 0x1d3   : > { %v1492_v30 = vmul.f32 0.2, %v1476_v28  ;;  %v1069_v17 = vadd.f32 %v1047_v45, %v511_v34  ;;  %v1161_v58 = vpop.f32.mrf.mxu3 }
 0x1d4   : > { %v1181_v22 = vadd.f32 %v1161_v58, %v3195_v27  ;;  %v870_v6 = vpop.f32.mrf.mxu1  ;;  %v1426_v26 = vsel %vm1393_vm2, %v1423_v42, %v1425_v14 }
 0x1d5   : > { %v1508_v53 = vmax.f32 %v1476_v28, %v1492_v30  ;;  %v1374_v54 = vadd.f32 %v1341_v4, %v1069_v17 }
 0x1d6   : > { %v1274_v52 = vpop.f32.mrf.mxu0  ;;  %v1342_v15 = vrot.slane %v1181_v22, 1 }
 0x1d7   : > { %v1524_v62 = vpack.c.bf16 %v1508_v53, %v1508_v53  ;;  %v1457_v11 = vadd.f32 %v1424_v39, %v1374_v54 }
 0x1d8   : > { %v1343_v61 = vsel %vm1310_vm1, %v1340_v29, %v1342_v15 }
 0x1d9   : > { %1541 = vst.msk [vmem:[%s3018_s22 + $0x34] sm:$0xf] %vm1527_vm3, %v1524_v62  ;;  %v1477_v13 = vadd.f32 %v3006_v19, %v1457_v11 }
 0x1da   : > { %v1049_v44 = vpop.f32.mrf.mxu2 }
 0x1db   : > { %v1493_v23 = vmul.f32 0.2, %v1477_v13  ;;  %v1070_v57 = vadd.f32 %v1049_v44, %v513_v38  ;;  %v1163_v47 = vpop.f32.mrf.mxu3 }
 0x1dd   : > { %v1509_v3 = vmax.f32 %v1477_v13, %v1493_v23  ;;  %v1375_v0 = vadd.f32 %v1343_v61, %v1070_v57 }
 0x1df   : > { %v1525_v31 = vpack.c.bf16 %v1509_v3, %v1509_v3  ;;  %v1844_v33 = vsel %vm348_vm0, %v1509_v3, 0.0  ;;  %v1868_v2 = vmul.f32 %v1509_v3, %v1509_v3  ;;  %v1458_v21 = vadd.f32 %v1426_v26, %v1375_v0 }
 0x1e0   : > { %v1845_v59 = vadd.f32 %v1844_v33, %v1841_v56 }
 0x1e1   : > { %1542 = vst.msk [vmem:[%s3018_s22 + $0x38] sm:$0xf] %vm1527_vm3, %v1525_v31  ;;  %v1897_v43 = vsel %vm348_vm0, %v1868_v2, 0.0  ;;  %v1478_v60 = vadd.f32 %v3006_v19, %v1458_v21 }
 0x1e2   : > { %v1848_v63 = vrot.slane %v1845_v59, 4  ;;  %v1898_v48 = vadd.f32 %v1897_v43, %v1894_v5  ;;  %v1052_v1 = vpop.f32.mrf.mxu2 }
 0x1e3   : > { %v1494_v32 = vmul.f32 0.2, %v1478_v60 }
 0x1e4   : > { %v1849_v18 = vadd.f32 %v1848_v63, %v1845_v59  ;;  %v1901_v25 = vrot.slane %v1898_v48, 4 }
 0x1e5   : > { %v1510_v8 = vmax.f32 %v1478_v60, %v1494_v32 }
 0x1e6   : > { %v1850_v37 = vrot.slane %v1849_v18, 2  ;;  %v1902_v46 = vadd.f32 %v1901_v25, %v1898_v48 }
 0x1e7   : > { %v1526_v41 = vpack.c.bf16 %v1510_v8, %v1510_v8 }
 0x1e8   : > { %v1851_v51 = vadd.f32 %v1850_v37, %v1849_v18  ;;  %v1903_v24 = vrot.slane %v1902_v46, 2 }
 0x1e9   : > { %1543 = vst.msk [vmem:[%s3018_s22 + $0x3c] sm:$0xf] %vm1527_vm3, %v1526_v41 }
 0x1ea   : > { %v1852_v29 = vrot.slane %v1851_v51, 1  ;;  %v1904_v50 = vadd.f32 %v1903_v24, %v1902_v46  ;;  %v1053_v9 = vpop.f32.mrf.mxu2 }
 0x1ec   : > { %v1905_v19 = vrot.slane %v1904_v50, 1  ;;  %v1853_v7 = vadd.f32 %v1852_v29, %v1851_v51 }
 0x1ee   : > { %v1906_v40 = vadd.f32 %v1905_v19, %v1904_v50 }
 0x1f0   : > { %v1908_v56 = vsel %vm1907_vm4, %v1853_v7, %v1906_v40 }
 0x1f1   : > { %1910 = vst.msk [vmem:[%s208_s26] sm:$0x3] %vm1909_vm5, %v1908_v56 }
 0x1f2 PF: > { %s15_s15 = sadd.s32 1, %s2521_s15  }
 0x1f3   : > { %p12_p4 = scmp.ge.s32.totalorder %s15_s15, 4  }
 0x1f5   :  { %14 = sbr.rel (!%p12_p4) target bundleno = 1 (0x1), region = 82 }

</bundles_post_ra>
